<compile_context>
chip_gen: v6e
topology: v6e:2x2x1
jax: 0.10.0
libtpu: 0.0.40
codegen_flags: <defaults>
</compile_context>

<pallas_src>
import functools

import jax
import jax.numpy as jnp
from jax import lax
from jax.experimental import pallas as pl
from jax.experimental.pallas import tpu as pltpu


def _srnn_kernel(tt, time_step,
                 # inputs
                 h1_ref, w_r1, w2p, w3p, w_3o,
                 b2, b3, bo, p1, p2, p3, alpha_ref,
                 init_mem, init_outmem,
                 # outputs
                 out_ref, sum1_ref, sum2_ref,
                 # scratch
                 mem_s, spk_s, outmem_s):
    tb = pl.program_id(1)          # time-block index (innermost grid axis)

    @pl.when(tb == 0)
    def _init():
        mem_s[...] = init_mem[...]
        spk_s[...] = jnp.zeros_like(spk_s)
        outmem_s[...] = init_outmem[...]
        out_ref[...] = jnp.zeros_like(out_ref)
        sum1_ref[...] = jnp.zeros_like(sum1_ref)
        sum2_ref[...] = jnp.zeros_like(sum2_ref)

    # ---- hoisted per-block constants (read once, reused across TT steps) ----
    thr1, dec1, rst1 = p1[0:1, :], p1[1:2, :], p1[2:3, :]
    thr2, dec2, rst2 = p2[0:1, :], p2[1:2, :], p2[2:3, :]
    thr3, dec3, rst3 = p3[0:1, :], p3[1:2, :], p3[2:3, :]
    alpha = alpha_ref[...]
    one_m_alpha = 1.0 - alpha
    wr1, w2, w3, w3o = w_r1[...], w2p[...], w3p[...], w_3o[...]
    b2v, b3v, bov = b2[...], b3[...], bo[...]

    def mem_update(inp, mem, spk_b, thr, decay, rst):
        spk = spk_b.astype(jnp.float32)
        mem_new = rst * spk + mem * decay * (1.0 - spk) + inp
        spike = (mem_new > thr).astype(jnp.bfloat16)   # ActFun_adp fwd: gt(0)
        return mem_new, spike

    carry0 = (mem_s[0], spk_s[0], mem_s[1], spk_s[1], mem_s[2], spk_s[2],
              outmem_s[...],
              jnp.zeros_like(mem_s[0]),        # sum1 accumulator (f32)
              jnp.zeros_like(mem_s[0]),        # sum2 accumulator (f32)
              jnp.zeros_like(outmem_s))        # softmax accumulator (f32)

    def step(i, carry):
        (mem1, spk1, mem2, spk2, mem3, spk3, out_mem,
         s1_acc, s2_acc, o_acc) = carry
        t_glob = tb * tt + i
        h1_t = h1_ref[i]                       # (Bt, H) f32: x@W_ih1 + b1

        # layer 1: feed-forward part precomputed; bf16 recurrent matmul
        i1 = h1_t + jnp.dot(spk1, wr1, preferred_element_type=jnp.float32)
        mem1, spk1 = mem_update(i1, mem1, spk1, thr1, dec1, rst1)
        s1_acc = s1_acc + spk1.astype(jnp.float32)

        # layer 2: fused [W_12; W_r2] dot, K = 2H (spk1 new, spk2 old)
        lhs2 = jnp.concatenate([spk1, spk2], axis=-1)
        i2 = jnp.dot(lhs2, w2, preferred_element_type=jnp.float32) + b2v
        mem2, spk2 = mem_update(i2, mem2, spk2, thr2, dec2, rst2)
        s2_acc = s2_acc + spk2.astype(jnp.float32)

        # layer 3: fused [W_23; W_r3] dot, K = 2H (spk2 new, spk3 old)
        lhs3 = jnp.concatenate([spk2, spk3], axis=-1)
        i3 = jnp.dot(lhs3, w3, preferred_element_type=jnp.float32) + b3v
        mem3, spk3 = mem_update(i3, mem3, spk3, thr3, dec3, rst3)

        # readout: leaky integrator (no spike), R_m = 1
        i_out = jnp.dot(spk3, w3o, preferred_element_type=jnp.float32) + bov
        out_mem = out_mem * alpha + one_m_alpha * i_out

        # softmax accumulation for t > 10 (divide on the EUP slot)
        m = jnp.max(out_mem, axis=-1, keepdims=True)
        e = jnp.exp(out_mem - m)
        sm = e * pl.reciprocal(jnp.sum(e, axis=-1, keepdims=True), approx=True)
        pred = (t_glob > 10).astype(jnp.float32)
        o_acc = o_acc + pred * sm

        return (mem1, spk1, mem2, spk2, mem3, spk3, out_mem,
                s1_acc, s2_acc, o_acc)

    (mem1, spk1, mem2, spk2, mem3, spk3, out_mem,
     s1_acc, s2_acc, o_acc) = lax.fori_loop(0, tt, step, carry0, unroll=True)

    mem_s[0], spk_s[0] = mem1, spk1
    mem_s[1], spk_s[1] = mem2, spk2
    mem_s[2], spk_s[2] = mem3, spk3
    outmem_s[...] = out_mem
    sum1_ref[...] += s1_acc
    sum2_ref[...] += s2_acc
    out_ref[...] += o_acc

    @pl.when(tb == pl.num_programs(1) - 1)
    def _final():
        inv_t = 1.0 / float(time_step)
        sum1_ref[...] *= inv_t
        sum2_ref[...] *= inv_t
        # NOTE: sum3_spk is accumulated in the PyTorch code but never
        # normalized nor returned, so it is omitted here.


def srnn_forward(x_tbi, params, init_mem, init_outmem, *, tt=8, bt=None):
    """x_tbi: (T, B, I) float32. Returns (output, sum1_spk, sum2_spk, A_norm)."""
    T, B, I = x_tbi.shape
    H = params["w_r1"].shape[0]
    O = params["w_3o"].shape[1]
    if bt is None:
        bt = B
    assert T % tt == 0 and B % bt == 0

    f32, bf16 = jnp.float32, jnp.bfloat16

    # --- hoisted, time-independent work (plain XLA, outside the recurrence) ---
    # input projection as one big matmul: (T*B, I) @ (I, H)
    h1_in = jnp.dot(x_tbi.reshape(T * B, I).astype(bf16),
                    params["w_ih1"].astype(bf16),
                    preferred_element_type=f32).reshape(T, B, H)
    h1_in = h1_in + params["b1"].reshape(1, 1, H)
    # A_norm = ||W_h1h1||_1 + ||W_h2h2||_1 + ||W_h3h3||_1 (elementwise L1)
    a_norm = (jnp.sum(jnp.abs(params["w_r1"]))
              + jnp.sum(jnp.abs(params["w_r2"]))
              + jnp.sum(jnp.abs(params["w_r3"])))

    # pack feed-forward + recurrent weights along K (single K=2H dot per layer)
    w_r1 = params["w_r1"].astype(bf16)
    w2p = jnp.concatenate([params["w_12"], params["w_r2"]], axis=0).astype(bf16)
    w3p = jnp.concatenate([params["w_23"], params["w_r3"]], axis=0).astype(bf16)
    w_3o = params["w_3o"].astype(bf16)

    def rep(shape):
        n = len(shape)
        return pl.BlockSpec(shape, lambda b, t, n=n: (0,) * n)

    in_specs = [
        pl.BlockSpec((tt, bt, H), lambda b, t: (t, b, 0)),   # h1_in, time/batch blocked
        rep((H, H)), rep((2 * H, H)), rep((2 * H, H)), rep((H, O)),
        rep((1, H)), rep((1, H)), rep((1, O)),
        rep((3, H)), rep((3, H)), rep((3, H)), rep((1, O)),
        pl.BlockSpec((3, bt, H), lambda b, t: (0, b, 0)),    # init_mem
        pl.BlockSpec((bt, O), lambda b, t: (b, 0)),          # init_outmem
    ]
    out_specs = [
        pl.BlockSpec((bt, O), lambda b, t: (b, 0)),
        pl.BlockSpec((bt, H), lambda b, t: (b, 0)),
        pl.BlockSpec((bt, H), lambda b, t: (b, 0)),
    ]
    out_shape = [
        jax.ShapeDtypeStruct((B, O), f32),
        jax.ShapeDtypeStruct((B, H), f32),
        jax.ShapeDtypeStruct((B, H), f32),
    ]
    scratch_shapes = [
        pltpu.VMEM((3, bt, H), f32),    # hid{1,2,3}_mem
        pltpu.VMEM((3, bt, H), bf16),   # hid{1,2,3}_spk (exact {0,1} in bf16)
        pltpu.VMEM((bt, O), f32),       # out_mem
    ]

    kernel = functools.partial(_srnn_kernel, tt, T)
    grid_spec = pltpu.PrefetchScalarGridSpec(
        num_scalar_prefetch=0,
        grid=(B // bt, T // tt),        # (batch blocks, time blocks)
        in_specs=in_specs,
        out_specs=out_specs,
        scratch_shapes=scratch_shapes,
    )
    out, s1, s2 = pl.pallas_call(
        kernel,
        grid_spec=grid_spec,
        out_shape=out_shape,
        compiler_params=pltpu.CompilerParams(
            # batch axis is embarrassingly parallel (megacore on v7x);
            # time axis carries the recurrence.
            dimension_semantics=("parallel", "arbitrary")),
    )(h1_in, w_r1, w2p, w3p, w_3o,
      params["b2"], params["b3"], params["bo"],
      params["p1"], params["p2"], params["p3"], params["alpha"],
      init_mem, init_outmem)
    return out, s1, s2, a_norm


def make_params(key, input_dim, hid, out_dim):
    """Deterministic synthetic parameters (shapes follow SRNN.__init__)."""
    decay_scale = 0.5   # config.decay (not given in snippet) — chosen constant
    rst_scale = 0.05    # config.rst   (not given in snippet) — chosen constant
    ks = jax.random.split(key, 16)
    f32 = jnp.float32

    def lin(kw, kb, fan_in, fan_out):
        w = jax.random.normal(kw, (fan_out, fan_in), f32) * (1.0 / jnp.sqrt(fan_in))
        b = jax.random.uniform(kb, (fan_out,), f32, -0.05, 0.05)
        return w, b

    w_ih1, b_ih1 = lin(ks[0], ks[1], input_dim, hid)
    w_r1, b_r1 = lin(ks[2], ks[3], hid, hid)
    w_12, b_12 = lin(ks[4], ks[5], hid, hid)
    w_r2, b_r2 = lin(ks[6], ks[7], hid, hid)
    w_23, b_23 = lin(ks[8], ks[9], hid, hid)
    w_r3, b_r3 = lin(ks[10], ks[11], hid, hid)
    w_3o, b_3o = lin(ks[12], ks[13], hid, out_dim)

    kp = jax.random.split(ks[14], 10)

    def layer_params(k0, k1, k2):
        thr = jax.random.uniform(k0, (hid,), f32)
        decay = jax.random.uniform(k1, (hid,), f32) * decay_scale
        rst = jax.random.uniform(k2, (hid,), f32) * rst_scale
        return jnp.stack([thr, decay, rst], axis=0)  # (3, H)

    params = dict(
        w_ih1=w_ih1.T, w_r1=w_r1.T, w_12=w_12.T, w_r2=w_r2.T,
        w_23=w_23.T, w_r3=w_r3.T, w_3o=w_3o.T,
        b1=(b_ih1 + b_r1).reshape(1, hid),   # biases of the two summed Linears
        b2=(b_12 + b_r2).reshape(1, hid),
        b3=(b_23 + b_r3).reshape(1, hid),
        bo=b_3o.reshape(1, out_dim),
        p1=layer_params(kp[0], kp[1], kp[2]),
        p2=layer_params(kp[3], kp[4], kp[5]),
        p3=layer_params(kp[6], kp[7], kp[8]),
        alpha=jax.random.uniform(kp[9], (1, out_dim), f32),
    )
    return params


if __name__ == "__main__":
    # Small shapes consistent with the module (input=700, hid=128, out=20,
    # time_step=250, batch=256 in config — scaled down here).  B is a multiple
    # of 8 (f32 sublanes); T is a multiple of the time-block TT.
    B, T, I, H, O = 8, 24, 64, 32, 16
    TT = 8

    key = jax.random.PRNGKey(0)
    k_x, k_p, k_m1, k_m2 = jax.random.split(key, 4)

    # Spike-like binary input, PyTorch layout (B, T, I) -> kernel layout (T, B, I)
    x_bti = jax.random.bernoulli(k_x, p=0.3, shape=(B, T, I)).astype(jnp.float32)
    x_tbi = jnp.transpose(x_bti, (1, 0, 2))

    params = make_params(k_p, I, H, O)
    # forward() initializes hidden / output membranes with torch.rand
    init_mem = jax.random.uniform(k_m1, (3, B, H), jnp.float32)
    init_outmem = jax.random.uniform(k_m2, (B, O), jnp.float32)

    # TODO(synk): dropout connectivity masks (A1/A2/A3_mask) are unused because
    # config.dropout == 0 in the reference; not implemented.
    output, sum1_spk, sum2_spk, a_norm = jax.block_until_ready(
        srnn_forward(x_tbi, params, init_mem, init_outmem, tt=TT))

    # Sanity: softmax rows sum to 1 and are accumulated for t in (11..T-1),
    # i.e. T - 11 steps per batch row (loose tolerance: approx reciprocal).
    expected = float(T - 11)
    row_sums = jnp.sum(output, axis=1)
    assert jnp.all(jnp.abs(row_sums - expected) < 5e-2), row_sums
    assert sum1_spk.shape == (B, H) and sum2_spk.shape == (B, H)
    assert jnp.isfinite(a_norm)

    print("KERNEL_OK")
</pallas_src>

<mosaic_0001>
module attributes {stable_mosaic.version = 11 : i64} {
  func.func @_srnn_kernel(%arg0: i32, %arg1: i32, %arg2: memref<8x8x32xf32, #tpu.memory_space<vmem>>, %arg3: memref<32x32xbf16, #tpu.memory_space<vmem>>, %arg4: memref<64x32xbf16, #tpu.memory_space<vmem>>, %arg5: memref<64x32xbf16, #tpu.memory_space<vmem>>, %arg6: memref<32x16xbf16, #tpu.memory_space<vmem>>, %arg7: memref<1x32xf32, #tpu.memory_space<vmem>>, %arg8: memref<1x32xf32, #tpu.memory_space<vmem>>, %arg9: memref<1x16xf32, #tpu.memory_space<vmem>>, %arg10: memref<3x32xf32, #tpu.memory_space<vmem>>, %arg11: memref<3x32xf32, #tpu.memory_space<vmem>>, %arg12: memref<3x32xf32, #tpu.memory_space<vmem>>, %arg13: memref<1x16xf32, #tpu.memory_space<vmem>>, %arg14: memref<3x8x32xf32, #tpu.memory_space<vmem>>, %arg15: memref<8x16xf32, #tpu.memory_space<vmem>>, %arg16: memref<8x16xf32, #tpu.memory_space<vmem>>, %arg17: memref<8x32xf32, #tpu.memory_space<vmem>>, %arg18: memref<8x32xf32, #tpu.memory_space<vmem>>, %arg19: memref<3x8x32xf32, #tpu.memory_space<vmem>>, %arg20: memref<3x8x32xbf16, #tpu.memory_space<vmem>>, %arg21: memref<8x16xf32, #tpu.memory_space<vmem>>) attributes {dimension_semantics = [#tpu.dimension_semantics<parallel>, #tpu.dimension_semantics<arbitrary>], iteration_bounds = array<i64: 1, 3>, scalar_prefetch = 0 : i64, scratch_operands = 3 : i64, tpu.core_type = #tpu.core_type<tc>, window_params = [{transform_indices = @transform_0, window_bounds = array<i64: 8, 8, 32>}, {pipeline_mode = #tpu.pipeline_mode<synchronous>, transform_indices = @transform_1, window_bounds = array<i64: 32, 32>}, {pipeline_mode = #tpu.pipeline_mode<synchronous>, transform_indices = @transform_2, window_bounds = array<i64: 64, 32>}, {pipeline_mode = #tpu.pipeline_mode<synchronous>, transform_indices = @transform_3, window_bounds = array<i64: 64, 32>}, {pipeline_mode = #tpu.pipeline_mode<synchronous>, transform_indices = @transform_4, window_bounds = array<i64: 32, 16>}, {pipeline_mode = #tpu.pipeline_mode<synchronous>, transform_indices = @transform_5, window_bounds = array<i64: 1, 32>}, {pipeline_mode = #tpu.pipeline_mode<synchronous>, transform_indices = @transform_6, window_bounds = array<i64: 1, 32>}, {pipeline_mode = #tpu.pipeline_mode<synchronous>, transform_indices = @transform_7, window_bounds = array<i64: 1, 16>}, {pipeline_mode = #tpu.pipeline_mode<synchronous>, transform_indices = @transform_8, window_bounds = array<i64: 3, 32>}, {pipeline_mode = #tpu.pipeline_mode<synchronous>, transform_indices = @transform_9, window_bounds = array<i64: 3, 32>}, {pipeline_mode = #tpu.pipeline_mode<synchronous>, transform_indices = @transform_10, window_bounds = array<i64: 3, 32>}, {pipeline_mode = #tpu.pipeline_mode<synchronous>, transform_indices = @transform_11, window_bounds = array<i64: 1, 16>}, {transform_indices = @transform_12, window_bounds = array<i64: 3, 8, 32>}, {transform_indices = @transform_13, window_bounds = array<i64: 8, 16>}, {transform_indices = @transform_14, window_bounds = array<i64: 8, 16>}, {transform_indices = @transform_15, window_bounds = array<i64: 8, 32>}, {transform_indices = @transform_16, window_bounds = array<i64: 8, 32>}]} {
    %c0_i32 = arith.constant 0 : i32
    %0 = arith.cmpi eq, %arg1, %c0_i32 : i32
    %1 = arith.extui %0 : i1 to i32
    %c0_i32_0 = arith.constant 0 : i32
    %2 = arith.cmpi ne, %1, %c0_i32_0 : i32
    scf.if %2 {
      %c0_193 = arith.constant 0 : index
      %c0_194 = arith.constant 0 : index
      %c0_195 = arith.constant 0 : index
      %773 = vector.load %arg14[%c0_193, %c0_194, %c0_195] : memref<3x8x32xf32, #tpu.memory_space<vmem>>, vector<3x8x32xf32>
      %c0_196 = arith.constant 0 : index
      %c0_197 = arith.constant 0 : index
      %c0_198 = arith.constant 0 : index
      %774 = vector.load %arg19[%c0_196, %c0_197, %c0_198] : memref<3x8x32xf32, #tpu.memory_space<vmem>>, vector<3x8x32xf32>
      tpu.vector_store %arg19[%c0_196, %c0_197, %c0_198], %773 {strides = array<i32>} : memref<3x8x32xf32, #tpu.memory_space<vmem>>, vector<3x8x32xf32>,
      %cst_199 = arith.constant 0.000000e+00 : bf16
      %775 = vector.broadcast %cst_199 : bf16 to vector<3x8x32xbf16>
      %c0_200 = arith.constant 0 : index
      %c0_201 = arith.constant 0 : index
      %c0_202 = arith.constant 0 : index
      %776 = vector.load %arg20[%c0_200, %c0_201, %c0_202] : memref<3x8x32xbf16, #tpu.memory_space<vmem>>, vector<3x8x32xbf16>
      tpu.vector_store %arg20[%c0_200, %c0_201, %c0_202], %775 {strides = array<i32>} : memref<3x8x32xbf16, #tpu.memory_space<vmem>>, vector<3x8x32xbf16>,
      %c0_203 = arith.constant 0 : index
      %c0_204 = arith.constant 0 : index
      %777 = vector.load %arg15[%c0_203, %c0_204] : memref<8x16xf32, #tpu.memory_space<vmem>>, vector<8x16xf32>
      %c0_205 = arith.constant 0 : index
      %c0_206 = arith.constant 0 : index
      %778 = vector.load %arg21[%c0_205, %c0_206] : memref<8x16xf32, #tpu.memory_space<vmem>>, vector<8x16xf32>
      tpu.vector_store %arg21[%c0_205, %c0_206], %777 {strides = array<i32>} : memref<8x16xf32, #tpu.memory_space<vmem>>, vector<8x16xf32>,
      %cst_207 = arith.constant 0.000000e+00 : f32
      %779 = vector.broadcast %cst_207 : f32 to vector<8x16xf32>
      %c0_208 = arith.constant 0 : index
      %c0_209 = arith.constant 0 : index
      %780 = vector.load %arg16[%c0_208, %c0_209] : memref<8x16xf32, #tpu.memory_space<vmem>>, vector<8x16xf32>
      tpu.vector_store %arg16[%c0_208, %c0_209], %779 {strides = array<i32>} : memref<8x16xf32, #tpu.memory_space<vmem>>, vector<8x16xf32>,
      %cst_210 = arith.constant 0.000000e+00 : f32
      %781 = vector.broadcast %cst_210 : f32 to vector<8x32xf32>
      %c0_211 = arith.constant 0 : index
      %c0_212 = arith.constant 0 : index
      %782 = vector.load %arg17[%c0_211, %c0_212] : memref<8x32xf32, #tpu.memory_space<vmem>>, vector<8x32xf32>
      tpu.vector_store %arg17[%c0_211, %c0_212], %781 {strides = array<i32>} : memref<8x32xf32, #tpu.memory_space<vmem>>, vector<8x32xf32>,
      %cst_213 = arith.constant 0.000000e+00 : f32
      %783 = vector.broadcast %cst_213 : f32 to vector<8x32xf32>
      %c0_214 = arith.constant 0 : index
      %c0_215 = arith.constant 0 : index
      %784 = vector.load %arg18[%c0_214, %c0_215] : memref<8x32xf32, #tpu.memory_space<vmem>>, vector<8x32xf32>
      tpu.vector_store %arg18[%c0_214, %c0_215], %783 {strides = array<i32>} : memref<8x32xf32, #tpu.memory_space<vmem>>, vector<8x32xf32>,
    } else {
    }
    %c0 = arith.constant 0 : index
    %c0_1 = arith.constant 0 : index
    %3 = vector.load %arg10[%c0, %c0_1] : memref<3x32xf32, #tpu.memory_space<vmem>>, vector<1x32xf32>
    %c1 = arith.constant 1 : index
    %c0_2 = arith.constant 0 : index
    %4 = vector.load %arg10[%c1, %c0_2] : memref<3x32xf32, #tpu.memory_space<vmem>>, vector<1x32xf32>
    %c2 = arith.constant 2 : index
    %c0_3 = arith.constant 0 : index
    %5 = vector.load %arg10[%c2, %c0_3] : memref<3x32xf32, #tpu.memory_space<vmem>>, vector<1x32xf32>
    %c0_4 = arith.constant 0 : index
    %c0_5 = arith.constant 0 : index
    %6 = vector.load %arg11[%c0_4, %c0_5] : memref<3x32xf32, #tpu.memory_space<vmem>>, vector<1x32xf32>
    %c1_6 = arith.constant 1 : index
    %c0_7 = arith.constant 0 : index
    %7 = vector.load %arg11[%c1_6, %c0_7] : memref<3x32xf32, #tpu.memory_space<vmem>>, vector<1x32xf32>
    %c2_8 = arith.constant 2 : index
    %c0_9 = arith.constant 0 : index
    %8 = vector.load %arg11[%c2_8, %c0_9] : memref<3x32xf32, #tpu.memory_space<vmem>>, vector<1x32xf32>
    %c0_10 = arith.constant 0 : index
    %c0_11 = arith.constant 0 : index
    %9 = vector.load %arg12[%c0_10, %c0_11] : memref<3x32xf32, #tpu.memory_space<vmem>>, vector<1x32xf32>
    %c1_12 = arith.constant 1 : index
    %c0_13 = arith.constant 0 : index
    %10 = vector.load %arg12[%c1_12, %c0_13] : memref<3x32xf32, #tpu.memory_space<vmem>>, vector<1x32xf32>
    %c2_14 = arith.constant 2 : index
    %c0_15 = arith.constant 0 : index
    %11 = vector.load %arg12[%c2_14, %c0_15] : memref<3x32xf32, #tpu.memory_space<vmem>>, vector<1x32xf32>
    %c0_16 = arith.constant 0 : index
    %c0_17 = arith.constant 0 : index
    %12 = vector.load %arg13[%c0_16, %c0_17] : memref<1x16xf32, #tpu.memory_space<vmem>>, vector<1x16xf32>
    %cst = arith.constant 1.000000e+00 : f32
    %13 = vector.broadcast %cst : f32 to vector<1x16xf32>
    %14 = arith.subf %13, %12 : vector<1x16xf32>
    %c0_18 = arith.constant 0 : index
    %c0_19 = arith.constant 0 : index
    %15 = vector.load %arg3[%c0_18, %c0_19] : memref<32x32xbf16, #tpu.memory_space<vmem>>, vector<32x32xbf16>
    %c0_20 = arith.constant 0 : index
    %c0_21 = arith.constant 0 : index
    %16 = vector.load %arg4[%c0_20, %c0_21] : memref<64x32xbf16, #tpu.memory_space<vmem>>, vector<64x32xbf16>
    %c0_22 = arith.constant 0 : index
    %c0_23 = arith.constant 0 : index
    %17 = vector.load %arg5[%c0_22, %c0_23] : memref<64x32xbf16, #tpu.memory_space<vmem>>, vector<64x32xbf16>
    %c0_24 = arith.constant 0 : index
    %c0_25 = arith.constant 0 : index
    %18 = vector.load %arg6[%c0_24, %c0_25] : memref<32x16xbf16, #tpu.memory_space<vmem>>, vector<32x16xbf16>
    %c0_26 = arith.constant 0 : index
    %c0_27 = arith.constant 0 : index
    %19 = vector.load %arg7[%c0_26, %c0_27] : memref<1x32xf32, #tpu.memory_space<vmem>>, vector<1x32xf32>
    %c0_28 = arith.constant 0 : index
    %c0_29 = arith.constant 0 : index
    %20 = vector.load %arg8[%c0_28, %c0_29] : memref<1x32xf32, #tpu.memory_space<vmem>>, vector<1x32xf32>
    %c0_30 = arith.constant 0 : index
    %c0_31 = arith.constant 0 : index
    %21 = vector.load %arg9[%c0_30, %c0_31] : memref<1x16xf32, #tpu.memory_space<vmem>>, vector<1x16xf32>
    %c0_32 = arith.constant 0 : index
    %c0_33 = arith.constant 0 : index
    %c0_34 = arith.constant 0 : index
    %22 = vector.load %arg19[%c0_32, %c0_33, %c0_34] : memref<3x8x32xf32, #tpu.memory_space<vmem>>, vector<1x8x32xf32>
    %23 = vector.shape_cast %22 : vector<1x8x32xf32> to vector<8x32xf32>
    %c0_35 = arith.constant 0 : index
    %c0_36 = arith.constant 0 : index
    %c0_37 = arith.constant 0 : index
    %24 = vector.load %arg20[%c0_35, %c0_36, %c0_37] : memref<3x8x32xbf16, #tpu.memory_space<vmem>>, vector<1x8x32xbf16>
    %25 = vector.shape_cast %24 : vector<1x8x32xbf16> to vector<8x32xbf16>
    %c1_38 = arith.constant 1 : index
    %c0_39 = arith.constant 0 : index
    %c0_40 = arith.constant 0 : index
    %26 = vector.load %arg19[%c1_38, %c0_39, %c0_40] : memref<3x8x32xf32, #tpu.memory_space<vmem>>, vector<1x8x32xf32>
    %27 = vector.shape_cast %26 : vector<1x8x32xf32> to vector<8x32xf32>
    %c1_41 = arith.constant 1 : index
    %c0_42 = arith.constant 0 : index
    %c0_43 = arith.constant 0 : index
    %28 = vector.load %arg20[%c1_41, %c0_42, %c0_43] : memref<3x8x32xbf16, #tpu.memory_space<vmem>>, vector<1x8x32xbf16>
    %29 = vector.shape_cast %28 : vector<1x8x32xbf16> to vector<8x32xbf16>
    %c2_44 = arith.constant 2 : index
    %c0_45 = arith.constant 0 : index
    %c0_46 = arith.constant 0 : index
    %30 = vector.load %arg19[%c2_44, %c0_45, %c0_46] : memref<3x8x32xf32, #tpu.memory_space<vmem>>, vector<1x8x32xf32>
    %31 = vector.shape_cast %30 : vector<1x8x32xf32> to vector<8x32xf32>
    %c2_47 = arith.constant 2 : index
    %c0_48 = arith.constant 0 : index
    %c0_49 = arith.constant 0 : index
    %32 = vector.load %arg20[%c2_47, %c0_48, %c0_49] : memref<3x8x32xbf16, #tpu.memory_space<vmem>>, vector<1x8x32xbf16>
    %33 = vector.shape_cast %32 : vector<1x8x32xbf16> to vector<8x32xbf16>
    %c0_50 = arith.constant 0 : index
    %c0_51 = arith.constant 0 : index
    %34 = vector.load %arg21[%c0_50, %c0_51] : memref<8x16xf32, #tpu.memory_space<vmem>>, vector<8x16xf32>
    %cst_52 = arith.constant 0.000000e+00 : f32
    %35 = vector.broadcast %cst_52 : f32 to vector<8x32xf32>
    %cst_53 = arith.constant 0.000000e+00 : f32
    %36 = vector.broadcast %cst_53 : f32 to vector<8x32xf32>
    %cst_54 = arith.constant 0.000000e+00 : f32
    %37 = vector.broadcast %cst_54 : f32 to vector<8x16xf32>
    %c0_i32_55 = arith.constant 0 : i32
    %c8_i32 = arith.constant 8 : i32
    %38 = arith.muli %arg1, %c8_i32 : i32
    %39 = arith.addi %38, %c0_i32_55 : i32
    %40 = arith.index_cast %c0_i32_55 : i32 to index
    %c0_56 = arith.constant 0 : index
    %c0_57 = arith.constant 0 : index
    %41 = vector.load %arg2[%40, %c0_56, %c0_57] : memref<8x8x32xf32, #tpu.memory_space<vmem>>, vector<1x8x32xf32>
    %42 = vector.shape_cast %41 : vector<1x8x32xf32> to vector<8x32xf32>
    %cst_58 = arith.constant dense<0.000000e+00> : vector<8x32xf32>
    %43 = tpu.matmul %25, %15, %cst_58 {dimension_numbers = #tpu.dot_dimension_numbers<[1], [0], [0], [1], [0, 0, 1, 1], [], []>} : vector<8x32xbf16>, vector<32x32xbf16>, vector<8x32xf32> -> vector<8x32xf32>
    %44 = arith.addf %42, %43 : vector<8x32xf32>
    %45 = arith.extf %25 : vector<8x32xbf16> to vector<8x32xf32>
    %46 = vector.broadcast %5 : vector<1x32xf32> to vector<8x32xf32>
    %47 = arith.mulf %46, %45 : vector<8x32xf32>
    %48 = vector.broadcast %4 : vector<1x32xf32> to vector<8x32xf32>
    %49 = arith.mulf %23, %48 : vector<8x32xf32>
    %cst_59 = arith.constant 1.000000e+00 : f32
    %50 = vector.broadcast %cst_59 : f32 to vector<8x32xf32>
    %51 = arith.subf %50, %45 : vector<8x32xf32>
    %52 = arith.mulf %49, %51 : vector<8x32xf32>
    %53 = arith.addf %47, %52 : vector<8x32xf32>
    %54 = arith.addf %53, %44 : vector<8x32xf32>
    %55 = vector.broadcast %3 : vector<1x32xf32> to vector<8x32xf32>
    %56 = arith.cmpf ogt, %54, %55 : vector<8x32xf32>
    %57 = arith.extui %56 : vector<8x32xi1> to vector<8x32xi32>
    %58 = arith.sitofp %57 : vector<8x32xi32> to vector<8x32xf32>
    %59 = arith.truncf %58 : vector<8x32xf32> to vector<8x32xbf16>
    %60 = arith.extf %59 : vector<8x32xbf16> to vector<8x32xf32>
    %61 = arith.addf %35, %60 : vector<8x32xf32>
    %62 = tpu.concatenate %59, %29 in 1 : vector<8x32xbf16>, vector<8x32xbf16> -> vector<8x64xbf16>
    %cst_60 = arith.constant dense<0.000000e+00> : vector<8x32xf32>
    %63 = tpu.matmul %62, %16, %cst_60 {dimension_numbers = #tpu.dot_dimension_numbers<[1], [0], [0], [1], [0, 0, 1, 1], [], []>} : vector<8x64xbf16>, vector<64x32xbf16>, vector<8x32xf32> -> vector<8x32xf32>
    %64 = vector.broadcast %19 : vector<1x32xf32> to vector<8x32xf32>
    %65 = arith.addf %63, %64 : vector<8x32xf32>
    %66 = arith.extf %29 : vector<8x32xbf16> to vector<8x32xf32>
    %67 = vector.broadcast %8 : vector<1x32xf32> to vector<8x32xf32>
    %68 = arith.mulf %67, %66 : vector<8x32xf32>
    %69 = vector.broadcast %7 : vector<1x32xf32> to vector<8x32xf32>
    %70 = arith.mulf %27, %69 : vector<8x32xf32>
    %cst_61 = arith.constant 1.000000e+00 : f32
    %71 = vector.broadcast %cst_61 : f32 to vector<8x32xf32>
    %72 = arith.subf %71, %66 : vector<8x32xf32>
    %73 = arith.mulf %70, %72 : vector<8x32xf32>
    %74 = arith.addf %68, %73 : vector<8x32xf32>
    %75 = arith.addf %74, %65 : vector<8x32xf32>
    %76 = vector.broadcast %6 : vector<1x32xf32> to vector<8x32xf32>
    %77 = arith.cmpf ogt, %75, %76 : vector<8x32xf32>
    %78 = arith.extui %77 : vector<8x32xi1> to vector<8x32xi32>
    %79 = arith.sitofp %78 : vector<8x32xi32> to vector<8x32xf32>
    %80 = arith.truncf %79 : vector<8x32xf32> to vector<8x32xbf16>
    %81 = arith.extf %80 : vector<8x32xbf16> to vector<8x32xf32>
    %82 = arith.addf %36, %81 : vector<8x32xf32>
    %83 = tpu.concatenate %80, %33 in 1 : vector<8x32xbf16>, vector<8x32xbf16> -> vector<8x64xbf16>
    %cst_62 = arith.constant dense<0.000000e+00> : vector<8x32xf32>
    %84 = tpu.matmul %83, %17, %cst_62 {dimension_numbers = #tpu.dot_dimension_numbers<[1], [0], [0], [1], [0, 0, 1, 1], [], []>} : vector<8x64xbf16>, vector<64x32xbf16>, vector<8x32xf32> -> vector<8x32xf32>
    %85 = vector.broadcast %20 : vector<1x32xf32> to vector<8x32xf32>
    %86 = arith.addf %84, %85 : vector<8x32xf32>
    %87 = arith.extf %33 : vector<8x32xbf16> to vector<8x32xf32>
    %88 = vector.broadcast %11 : vector<1x32xf32> to vector<8x32xf32>
    %89 = arith.mulf %88, %87 : vector<8x32xf32>
    %90 = vector.broadcast %10 : vector<1x32xf32> to vector<8x32xf32>
    %91 = arith.mulf %31, %90 : vector<8x32xf32>
    %cst_63 = arith.constant 1.000000e+00 : f32
    %92 = vector.broadcast %cst_63 : f32 to vector<8x32xf32>
    %93 = arith.subf %92, %87 : vector<8x32xf32>
    %94 = arith.mulf %91, %93 : vector<8x32xf32>
    %95 = arith.addf %89, %94 : vector<8x32xf32>
    %96 = arith.addf %95, %86 : vector<8x32xf32>
    %97 = vector.broadcast %9 : vector<1x32xf32> to vector<8x32xf32>
    %98 = arith.cmpf ogt, %96, %97 : vector<8x32xf32>
    %99 = arith.extui %98 : vector<8x32xi1> to vector<8x32xi32>
    %100 = arith.sitofp %99 : vector<8x32xi32> to vector<8x32xf32>
    %101 = arith.truncf %100 : vector<8x32xf32> to vector<8x32xbf16>
    %cst_64 = arith.constant dense<0.000000e+00> : vector<8x16xf32>
    %102 = tpu.matmul %101, %18, %cst_64 {dimension_numbers = #tpu.dot_dimension_numbers<[1], [0], [0], [1], [0, 0, 1, 1], [], []>} : vector<8x32xbf16>, vector<32x16xbf16>, vector<8x16xf32> -> vector<8x16xf32>
    %103 = vector.broadcast %21 : vector<1x16xf32> to vector<8x16xf32>
    %104 = arith.addf %102, %103 : vector<8x16xf32>
    %105 = vector.broadcast %12 : vector<1x16xf32> to vector<8x16xf32>
    %106 = arith.mulf %34, %105 : vector<8x16xf32>
    %107 = vector.broadcast %14 : vector<1x16xf32> to vector<8x16xf32>
    %108 = arith.mulf %107, %104 : vector<8x16xf32>
    %109 = arith.addf %106, %108 : vector<8x16xf32>
    %cst_65 = arith.constant dense<0xFF800000> : vector<8xf32>
    %110 = vector.multi_reduction <maximumf>, %109, %cst_65 [1] : vector<8x16xf32> to vector<8xf32>
    %111 = vector.shape_cast %110 : vector<8xf32> to vector<8x1xf32>
    %112 = vector.broadcast %111 : vector<8x1xf32> to vector<8x16xf32>
    %113 = arith.subf %109, %112 : vector<8x16xf32>
    %114 = math.exp %113 : vector<8x16xf32>
    %cst_66 = arith.constant dense<0.000000e+00> : vector<8xf32>
    %115 = vector.multi_reduction <add>, %114, %cst_66 [1] : vector<8x16xf32> to vector<8xf32>
    %116 = vector.shape_cast %115 : vector<8xf32> to vector<8x1xf32>
    %117 = tpu.reciprocal %116 {approx = true} : vector<8x1xf32> -> vector<8x1xf32>
    %118 = vector.broadcast %117 : vector<8x1xf32> to vector<8x16xf32>
    %119 = arith.mulf %114, %118 : vector<8x16xf32>
    %c10_i32 = arith.constant 10 : i32
    %120 = arith.cmpi sgt, %39, %c10_i32 : i32
    %121 = arith.extui %120 : i1 to i32
    %122 = arith.sitofp %121 : i32 to f32
    %123 = vector.broadcast %122 : f32 to vector<8x16xf32>
    %124 = arith.mulf %123, %119 : vector<8x16xf32>
    %125 = arith.addf %37, %124 : vector<8x16xf32>
    %c1_i32 = arith.constant 1 : i32
    %c8_i32_67 = arith.constant 8 : i32
    %126 = arith.muli %arg1, %c8_i32_67 : i32
    %127 = arith.addi %126, %c1_i32 : i32
    %128 = arith.index_cast %c1_i32 : i32 to index
    %c0_68 = arith.constant 0 : index
    %c0_69 = arith.constant 0 : index
    %129 = vector.load %arg2[%128, %c0_68, %c0_69] : memref<8x8x32xf32, #tpu.memory_space<vmem>>, vector<1x8x32xf32>
    %130 = vector.shape_cast %129 : vector<1x8x32xf32> to vector<8x32xf32>
    %cst_70 = arith.constant dense<0.000000e+00> : vector<8x32xf32>
    %131 = tpu.matmul %59, %15, %cst_70 {dimension_numbers = #tpu.dot_dimension_numbers<[1], [0], [0], [1], [0, 0, 1, 1], [], []>} : vector<8x32xbf16>, vector<32x32xbf16>, vector<8x32xf32> -> vector<8x32xf32>
    %132 = arith.addf %130, %131 : vector<8x32xf32>
    %133 = arith.extf %59 : vector<8x32xbf16> to vector<8x32xf32>
    %134 = vector.broadcast %5 : vector<1x32xf32> to vector<8x32xf32>
    %135 = arith.mulf %134, %133 : vector<8x32xf32>
    %136 = vector.broadcast %4 : vector<1x32xf32> to vector<8x32xf32>
    %137 = arith.mulf %54, %136 : vector<8x32xf32>
    %cst_71 = arith.constant 1.000000e+00 : f32
    %138 = vector.broadcast %cst_71 : f32 to vector<8x32xf32>
    %139 = arith.subf %138, %133 : vector<8x32xf32>
    %140 = arith.mulf %137, %139 : vector<8x32xf32>
    %141 = arith.addf %135, %140 : vector<8x32xf32>
    %142 = arith.addf %141, %132 : vector<8x32xf32>
    %143 = vector.broadcast %3 : vector<1x32xf32> to vector<8x32xf32>
    %144 = arith.cmpf ogt, %142, %143 : vector<8x32xf32>
    %145 = arith.extui %144 : vector<8x32xi1> to vector<8x32xi32>
    %146 = arith.sitofp %145 : vector<8x32xi32> to vector<8x32xf32>
    %147 = arith.truncf %146 : vector<8x32xf32> to vector<8x32xbf16>
    %148 = arith.extf %147 : vector<8x32xbf16> to vector<8x32xf32>
    %149 = arith.addf %61, %148 : vector<8x32xf32>
    %150 = tpu.concatenate %147, %80 in 1 : vector<8x32xbf16>, vector<8x32xbf16> -> vector<8x64xbf16>
    %cst_72 = arith.constant dense<0.000000e+00> : vector<8x32xf32>
    %151 = tpu.matmul %150, %16, %cst_72 {dimension_numbers = #tpu.dot_dimension_numbers<[1], [0], [0], [1], [0, 0, 1, 1], [], []>} : vector<8x64xbf16>, vector<64x32xbf16>, vector<8x32xf32> -> vector<8x32xf32>
    %152 = vector.broadcast %19 : vector<1x32xf32> to vector<8x32xf32>
    %153 = arith.addf %151, %152 : vector<8x32xf32>
    %154 = arith.extf %80 : vector<8x32xbf16> to vector<8x32xf32>
    %155 = vector.broadcast %8 : vector<1x32xf32> to vector<8x32xf32>
    %156 = arith.mulf %155, %154 : vector<8x32xf32>
    %157 = vector.broadcast %7 : vector<1x32xf32> to vector<8x32xf32>
    %158 = arith.mulf %75, %157 : vector<8x32xf32>
    %cst_73 = arith.constant 1.000000e+00 : f32
    %159 = vector.broadcast %cst_73 : f32 to vector<8x32xf32>
    %160 = arith.subf %159, %154 : vector<8x32xf32>
    %161 = arith.mulf %158, %160 : vector<8x32xf32>
    %162 = arith.addf %156, %161 : vector<8x32xf32>
    %163 = arith.addf %162, %153 : vector<8x32xf32>
    %164 = vector.broadcast %6 : vector<1x32xf32> to vector<8x32xf32>
    %165 = arith.cmpf ogt, %163, %164 : vector<8x32xf32>
    %166 = arith.extui %165 : vector<8x32xi1> to vector<8x32xi32>
    %167 = arith.sitofp %166 : vector<8x32xi32> to vector<8x32xf32>
    %168 = arith.truncf %167 : vector<8x32xf32> to vector<8x32xbf16>
    %169 = arith.extf %168 : vector<8x32xbf16> to vector<8x32xf32>
    %170 = arith.addf %82, %169 : vector<8x32xf32>
    %171 = tpu.concatenate %168, %101 in 1 : vector<8x32xbf16>, vector<8x32xbf16> -> vector<8x64xbf16>
    %cst_74 = arith.constant dense<0.000000e+00> : vector<8x32xf32>
    %172 = tpu.matmul %171, %17, %cst_74 {dimension_numbers = #tpu.dot_dimension_numbers<[1], [0], [0], [1], [0, 0, 1, 1], [], []>} : vector<8x64xbf16>, vector<64x32xbf16>, vector<8x32xf32> -> vector<8x32xf32>
    %173 = vector.broadcast %20 : vector<1x32xf32> to vector<8x32xf32>
    %174 = arith.addf %172, %173 : vector<8x32xf32>
    %175 = arith.extf %101 : vector<8x32xbf16> to vector<8x32xf32>
    %176 = vector.broadcast %11 : vector<1x32xf32> to vector<8x32xf32>
    %177 = arith.mulf %176, %175 : vector<8x32xf32>
    %178 = vector.broadcast %10 : vector<1x32xf32> to vector<8x32xf32>
    %179 = arith.mulf %96, %178 : vector<8x32xf32>
    %cst_75 = arith.constant 1.000000e+00 : f32
    %180 = vector.broadcast %cst_75 : f32 to vector<8x32xf32>
    %181 = arith.subf %180, %175 : vector<8x32xf32>
    %182 = arith.mulf %179, %181 : vector<8x32xf32>
    %183 = arith.addf %177, %182 : vector<8x32xf32>
    %184 = arith.addf %183, %174 : vector<8x32xf32>
    %185 = vector.broadcast %9 : vector<1x32xf32> to vector<8x32xf32>
    %186 = arith.cmpf ogt, %184, %185 : vector<8x32xf32>
    %187 = arith.extui %186 : vector<8x32xi1> to vector<8x32xi32>
    %188 = arith.sitofp %187 : vector<8x32xi32> to vector<8x32xf32>
    %189 = arith.truncf %188 : vector<8x32xf32> to vector<8x32xbf16>
    %cst_76 = arith.constant dense<0.000000e+00> : vector<8x16xf32>
    %190 = tpu.matmul %189, %18, %cst_76 {dimension_numbers = #tpu.dot_dimension_numbers<[1], [0], [0], [1], [0, 0, 1, 1], [], []>} : vector<8x32xbf16>, vector<32x16xbf16>, vector<8x16xf32> -> vector<8x16xf32>
    %191 = vector.broadcast %21 : vector<1x16xf32> to vector<8x16xf32>
    %192 = arith.addf %190, %191 : vector<8x16xf32>
    %193 = vector.broadcast %12 : vector<1x16xf32> to vector<8x16xf32>
    %194 = arith.mulf %109, %193 : vector<8x16xf32>
    %195 = vector.broadcast %14 : vector<1x16xf32> to vector<8x16xf32>
    %196 = arith.mulf %195, %192 : vector<8x16xf32>
    %197 = arith.addf %194, %196 : vector<8x16xf32>
    %cst_77 = arith.constant dense<0xFF800000> : vector<8xf32>
    %198 = vector.multi_reduction <maximumf>, %197, %cst_77 [1] : vector<8x16xf32> to vector<8xf32>
    %199 = vector.shape_cast %198 : vector<8xf32> to vector<8x1xf32>
    %200 = vector.broadcast %199 : vector<8x1xf32> to vector<8x16xf32>
    %201 = arith.subf %197, %200 : vector<8x16xf32>
    %202 = math.exp %201 : vector<8x16xf32>
    %cst_78 = arith.constant dense<0.000000e+00> : vector<8xf32>
    %203 = vector.multi_reduction <add>, %202, %cst_78 [1] : vector<8x16xf32> to vector<8xf32>
    %204 = vector.shape_cast %203 : vector<8xf32> to vector<8x1xf32>
    %205 = tpu.reciprocal %204 {approx = true} : vector<8x1xf32> -> vector<8x1xf32>
    %206 = vector.broadcast %205 : vector<8x1xf32> to vector<8x16xf32>
    %207 = arith.mulf %202, %206 : vector<8x16xf32>
    %c10_i32_79 = arith.constant 10 : i32
    %208 = arith.cmpi sgt, %127, %c10_i32_79 : i32
    %209 = arith.extui %208 : i1 to i32
    %210 = arith.sitofp %209 : i32 to f32
    %211 = vector.broadcast %210 : f32 to vector<8x16xf32>
    %212 = arith.mulf %211, %207 : vector<8x16xf32>
    %213 = arith.addf %125, %212 : vector<8x16xf32>
    %c2_i32 = arith.constant 2 : i32
    %c8_i32_80 = arith.constant 8 : i32
    %214 = arith.muli %arg1, %c8_i32_80 : i32
    %215 = arith.addi %214, %c2_i32 : i32
    %216 = arith.index_cast %c2_i32 : i32 to index
    %c0_81 = arith.constant 0 : index
    %c0_82 = arith.constant 0 : index
    %217 = vector.load %arg2[%216, %c0_81, %c0_82] : memref<8x8x32xf32, #tpu.memory_space<vmem>>, vector<1x8x32xf32>
    %218 = vector.shape_cast %217 : vector<1x8x32xf32> to vector<8x32xf32>
    %cst_83 = arith.constant dense<0.000000e+00> : vector<8x32xf32>
    %219 = tpu.matmul %147, %15, %cst_83 {dimension_numbers = #tpu.dot_dimension_numbers<[1], [0], [0], [1], [0, 0, 1, 1], [], []>} : vector<8x32xbf16>, vector<32x32xbf16>, vector<8x32xf32> -> vector<8x32xf32>
    %220 = arith.addf %218, %219 : vector<8x32xf32>
    %221 = arith.extf %147 : vector<8x32xbf16> to vector<8x32xf32>
    %222 = vector.broadcast %5 : vector<1x32xf32> to vector<8x32xf32>
    %223 = arith.mulf %222, %221 : vector<8x32xf32>
    %224 = vector.broadcast %4 : vector<1x32xf32> to vector<8x32xf32>
    %225 = arith.mulf %142, %224 : vector<8x32xf32>
    %cst_84 = arith.constant 1.000000e+00 : f32
    %226 = vector.broadcast %cst_84 : f32 to vector<8x32xf32>
    %227 = arith.subf %226, %221 : vector<8x32xf32>
    %228 = arith.mulf %225, %227 : vector<8x32xf32>
    %229 = arith.addf %223, %228 : vector<8x32xf32>
    %230 = arith.addf %229, %220 : vector<8x32xf32>
    %231 = vector.broadcast %3 : vector<1x32xf32> to vector<8x32xf32>
    %232 = arith.cmpf ogt, %230, %231 : vector<8x32xf32>
    %233 = arith.extui %232 : vector<8x32xi1> to vector<8x32xi32>
    %234 = arith.sitofp %233 : vector<8x32xi32> to vector<8x32xf32>
    %235 = arith.truncf %234 : vector<8x32xf32> to vector<8x32xbf16>
    %236 = arith.extf %235 : vector<8x32xbf16> to vector<8x32xf32>
    %237 = arith.addf %149, %236 : vector<8x32xf32>
    %238 = tpu.concatenate %235, %168 in 1 : vector<8x32xbf16>, vector<8x32xbf16> -> vector<8x64xbf16>
    %cst_85 = arith.constant dense<0.000000e+00> : vector<8x32xf32>
    %239 = tpu.matmul %238, %16, %cst_85 {dimension_numbers = #tpu.dot_dimension_numbers<[1], [0], [0], [1], [0, 0, 1, 1], [], []>} : vector<8x64xbf16>, vector<64x32xbf16>, vector<8x32xf32> -> vector<8x32xf32>
    %240 = vector.broadcast %19 : vector<1x32xf32> to vector<8x32xf32>
    %241 = arith.addf %239, %240 : vector<8x32xf32>
    %242 = arith.extf %168 : vector<8x32xbf16> to vector<8x32xf32>
    %243 = vector.broadcast %8 : vector<1x32xf32> to vector<8x32xf32>
    %244 = arith.mulf %243, %242 : vector<8x32xf32>
    %245 = vector.broadcast %7 : vector<1x32xf32> to vector<8x32xf32>
    %246 = arith.mulf %163, %245 : vector<8x32xf32>
    %cst_86 = arith.constant 1.000000e+00 : f32
    %247 = vector.broadcast %cst_86 : f32 to vector<8x32xf32>
    %248 = arith.subf %247, %242 : vector<8x32xf32>
    %249 = arith.mulf %246, %248 : vector<8x32xf32>
    %250 = arith.addf %244, %249 : vector<8x32xf32>
    %251 = arith.addf %250, %241 : vector<8x32xf32>
    %252 = vector.broadcast %6 : vector<1x32xf32> to vector<8x32xf32>
    %253 = arith.cmpf ogt, %251, %252 : vector<8x32xf32>
    %254 = arith.extui %253 : vector<8x32xi1> to vector<8x32xi32>
    %255 = arith.sitofp %254 : vector<8x32xi32> to vector<8x32xf32>
    %256 = arith.truncf %255 : vector<8x32xf32> to vector<8x32xbf16>
    %257 = arith.extf %256 : vector<8x32xbf16> to vector<8x32xf32>
    %258 = arith.addf %170, %257 : vector<8x32xf32>
    %259 = tpu.concatenate %256, %189 in 1 : vector<8x32xbf16>, vector<8x32xbf16> -> vector<8x64xbf16>
    %cst_87 = arith.constant dense<0.000000e+00> : vector<8x32xf32>
    %260 = tpu.matmul %259, %17, %cst_87 {dimension_numbers = #tpu.dot_dimension_numbers<[1], [0], [0], [1], [0, 0, 1, 1], [], []>} : vector<8x64xbf16>, vector<64x32xbf16>, vector<8x32xf32> -> vector<8x32xf32>
    %261 = vector.broadcast %20 : vector<1x32xf32> to vector<8x32xf32>
    %262 = arith.addf %260, %261 : vector<8x32xf32>
    %263 = arith.extf %189 : vector<8x32xbf16> to vector<8x32xf32>
    %264 = vector.broadcast %11 : vector<1x32xf32> to vector<8x32xf32>
    %265 = arith.mulf %264, %263 : vector<8x32xf32>
    %266 = vector.broadcast %10 : vector<1x32xf32> to vector<8x32xf32>
    %267 = arith.mulf %184, %266 : vector<8x32xf32>
    %cst_88 = arith.constant 1.000000e+00 : f32
    %268 = vector.broadcast %cst_88 : f32 to vector<8x32xf32>
    %269 = arith.subf %268, %263 : vector<8x32xf32>
    %270 = arith.mulf %267, %269 : vector<8x32xf32>
    %271 = arith.addf %265, %270 : vector<8x32xf32>
    %272 = arith.addf %271, %262 : vector<8x32xf32>
    %273 = vector.broadcast %9 : vector<1x32xf32> to vector<8x32xf32>
    %274 = arith.cmpf ogt, %272, %273 : vector<8x32xf32>
    %275 = arith.extui %274 : vector<8x32xi1> to vector<8x32xi32>
    %276 = arith.sitofp %275 : vector<8x32xi32> to vector<8x32xf32>
    %277 = arith.truncf %276 : vector<8x32xf32> to vector<8x32xbf16>
    %cst_89 = arith.constant dense<0.000000e+00> : vector<8x16xf32>
    %278 = tpu.matmul %277, %18, %cst_89 {dimension_numbers = #tpu.dot_dimension_numbers<[1], [0], [0], [1], [0, 0, 1, 1], [], []>} : vector<8x32xbf16>, vector<32x16xbf16>, vector<8x16xf32> -> vector<8x16xf32>
    %279 = vector.broadcast %21 : vector<1x16xf32> to vector<8x16xf32>
    %280 = arith.addf %278, %279 : vector<8x16xf32>
    %281 = vector.broadcast %12 : vector<1x16xf32> to vector<8x16xf32>
    %282 = arith.mulf %197, %281 : vector<8x16xf32>
    %283 = vector.broadcast %14 : vector<1x16xf32> to vector<8x16xf32>
    %284 = arith.mulf %283, %280 : vector<8x16xf32>
    %285 = arith.addf %282, %284 : vector<8x16xf32>
    %cst_90 = arith.constant dense<0xFF800000> : vector<8xf32>
    %286 = vector.multi_reduction <maximumf>, %285, %cst_90 [1] : vector<8x16xf32> to vector<8xf32>
    %287 = vector.shape_cast %286 : vector<8xf32> to vector<8x1xf32>
    %288 = vector.broadcast %287 : vector<8x1xf32> to vector<8x16xf32>
    %289 = arith.subf %285, %288 : vector<8x16xf32>
    %290 = math.exp %289 : vector<8x16xf32>
    %cst_91 = arith.constant dense<0.000000e+00> : vector<8xf32>
    %291 = vector.multi_reduction <add>, %290, %cst_91 [1] : vector<8x16xf32> to vector<8xf32>
    %292 = vector.shape_cast %291 : vector<8xf32> to vector<8x1xf32>
    %293 = tpu.reciprocal %292 {approx = true} : vector<8x1xf32> -> vector<8x1xf32>
    %294 = vector.broadcast %293 : vector<8x1xf32> to vector<8x16xf32>
    %295 = arith.mulf %290, %294 : vector<8x16xf32>
    %c10_i32_92 = arith.constant 10 : i32
    %296 = arith.cmpi sgt, %215, %c10_i32_92 : i32
    %297 = arith.extui %296 : i1 to i32
    %298 = arith.sitofp %297 : i32 to f32
    %299 = vector.broadcast %298 : f32 to vector<8x16xf32>
    %300 = arith.mulf %299, %295 : vector<8x16xf32>
    %301 = arith.addf %213, %300 : vector<8x16xf32>
    %c3_i32 = arith.constant 3 : i32
    %c8_i32_93 = arith.constant 8 : i32
    %302 = arith.muli %arg1, %c8_i32_93 : i32
    %303 = arith.addi %302, %c3_i32 : i32
    %304 = arith.index_cast %c3_i32 : i32 to index
    %c0_94 = arith.constant 0 : index
    %c0_95 = arith.constant 0 : index
    %305 = vector.load %arg2[%304, %c0_94, %c0_95] : memref<8x8x32xf32, #tpu.memory_space<vmem>>, vector<1x8x32xf32>
    %306 = vector.shape_cast %305 : vector<1x8x32xf32> to vector<8x32xf32>
    %cst_96 = arith.constant dense<0.000000e+00> : vector<8x32xf32>
    %307 = tpu.matmul %235, %15, %cst_96 {dimension_numbers = #tpu.dot_dimension_numbers<[1], [0], [0], [1], [0, 0, 1, 1], [], []>} : vector<8x32xbf16>, vector<32x32xbf16>, vector<8x32xf32> -> vector<8x32xf32>
    %308 = arith.addf %306, %307 : vector<8x32xf32>
    %309 = arith.extf %235 : vector<8x32xbf16> to vector<8x32xf32>
    %310 = vector.broadcast %5 : vector<1x32xf32> to vector<8x32xf32>
    %311 = arith.mulf %310, %309 : vector<8x32xf32>
    %312 = vector.broadcast %4 : vector<1x32xf32> to vector<8x32xf32>
    %313 = arith.mulf %230, %312 : vector<8x32xf32>
    %cst_97 = arith.constant 1.000000e+00 : f32
    %314 = vector.broadcast %cst_97 : f32 to vector<8x32xf32>
    %315 = arith.subf %314, %309 : vector<8x32xf32>
    %316 = arith.mulf %313, %315 : vector<8x32xf32>
    %317 = arith.addf %311, %316 : vector<8x32xf32>
    %318 = arith.addf %317, %308 : vector<8x32xf32>
    %319 = vector.broadcast %3 : vector<1x32xf32> to vector<8x32xf32>
    %320 = arith.cmpf ogt, %318, %319 : vector<8x32xf32>
    %321 = arith.extui %320 : vector<8x32xi1> to vector<8x32xi32>
    %322 = arith.sitofp %321 : vector<8x32xi32> to vector<8x32xf32>
    %323 = arith.truncf %322 : vector<8x32xf32> to vector<8x32xbf16>
    %324 = arith.extf %323 : vector<8x32xbf16> to vector<8x32xf32>
    %325 = arith.addf %237, %324 : vector<8x32xf32>
    %326 = tpu.concatenate %323, %256 in 1 : vector<8x32xbf16>, vector<8x32xbf16> -> vector<8x64xbf16>
    %cst_98 = arith.constant dense<0.000000e+00> : vector<8x32xf32>
    %327 = tpu.matmul %326, %16, %cst_98 {dimension_numbers = #tpu.dot_dimension_numbers<[1], [0], [0], [1], [0, 0, 1, 1], [], []>} : vector<8x64xbf16>, vector<64x32xbf16>, vector<8x32xf32> -> vector<8x32xf32>
    %328 = vector.broadcast %19 : vector<1x32xf32> to vector<8x32xf32>
    %329 = arith.addf %327, %328 : vector<8x32xf32>
    %330 = arith.extf %256 : vector<8x32xbf16> to vector<8x32xf32>
    %331 = vector.broadcast %8 : vector<1x32xf32> to vector<8x32xf32>
    %332 = arith.mulf %331, %330 : vector<8x32xf32>
    %333 = vector.broadcast %7 : vector<1x32xf32> to vector<8x32xf32>
    %334 = arith.mulf %251, %333 : vector<8x32xf32>
    %cst_99 = arith.constant 1.000000e+00 : f32
    %335 = vector.broadcast %cst_99 : f32 to vector<8x32xf32>
    %336 = arith.subf %335, %330 : vector<8x32xf32>
    %337 = arith.mulf %334, %336 : vector<8x32xf32>
    %338 = arith.addf %332, %337 : vector<8x32xf32>
    %339 = arith.addf %338, %329 : vector<8x32xf32>
    %340 = vector.broadcast %6 : vector<1x32xf32> to vector<8x32xf32>
    %341 = arith.cmpf ogt, %339, %340 : vector<8x32xf32>
    %342 = arith.extui %341 : vector<8x32xi1> to vector<8x32xi32>
    %343 = arith.sitofp %342 : vector<8x32xi32> to vector<8x32xf32>
    %344 = arith.truncf %343 : vector<8x32xf32> to vector<8x32xbf16>
    %345 = arith.extf %344 : vector<8x32xbf16> to vector<8x32xf32>
    %346 = arith.addf %258, %345 : vector<8x32xf32>
    %347 = tpu.concatenate %344, %277 in 1 : vector<8x32xbf16>, vector<8x32xbf16> -> vector<8x64xbf16>
    %cst_100 = arith.constant dense<0.000000e+00> : vector<8x32xf32>
    %348 = tpu.matmul %347, %17, %cst_100 {dimension_numbers = #tpu.dot_dimension_numbers<[1], [0], [0], [1], [0, 0, 1, 1], [], []>} : vector<8x64xbf16>, vector<64x32xbf16>, vector<8x32xf32> -> vector<8x32xf32>
    %349 = vector.broadcast %20 : vector<1x32xf32> to vector<8x32xf32>
    %350 = arith.addf %348, %349 : vector<8x32xf32>
    %351 = arith.extf %277 : vector<8x32xbf16> to vector<8x32xf32>
    %352 = vector.broadcast %11 : vector<1x32xf32> to vector<8x32xf32>
    %353 = arith.mulf %352, %351 : vector<8x32xf32>
    %354 = vector.broadcast %10 : vector<1x32xf32> to vector<8x32xf32>
    %355 = arith.mulf %272, %354 : vector<8x32xf32>
    %cst_101 = arith.constant 1.000000e+00 : f32
    %356 = vector.broadcast %cst_101 : f32 to vector<8x32xf32>
    %357 = arith.subf %356, %351 : vector<8x32xf32>
    %358 = arith.mulf %355, %357 : vector<8x32xf32>
    %359 = arith.addf %353, %358 : vector<8x32xf32>
    %360 = arith.addf %359, %350 : vector<8x32xf32>
    %361 = vector.broadcast %9 : vector<1x32xf32> to vector<8x32xf32>
    %362 = arith.cmpf ogt, %360, %361 : vector<8x32xf32>
    %363 = arith.extui %362 : vector<8x32xi1> to vector<8x32xi32>
    %364 = arith.sitofp %363 : vector<8x32xi32> to vector<8x32xf32>
    %365 = arith.truncf %364 : vector<8x32xf32> to vector<8x32xbf16>
    %cst_102 = arith.constant dense<0.000000e+00> : vector<8x16xf32>
    %366 = tpu.matmul %365, %18, %cst_102 {dimension_numbers = #tpu.dot_dimension_numbers<[1], [0], [0], [1], [0, 0, 1, 1], [], []>} : vector<8x32xbf16>, vector<32x16xbf16>, vector<8x16xf32> -> vector<8x16xf32>
    %367 = vector.broadcast %21 : vector<1x16xf32> to vector<8x16xf32>
    %368 = arith.addf %366, %367 : vector<8x16xf32>
    %369 = vector.broadcast %12 : vector<1x16xf32> to vector<8x16xf32>
    %370 = arith.mulf %285, %369 : vector<8x16xf32>
    %371 = vector.broadcast %14 : vector<1x16xf32> to vector<8x16xf32>
    %372 = arith.mulf %371, %368 : vector<8x16xf32>
    %373 = arith.addf %370, %372 : vector<8x16xf32>
    %cst_103 = arith.constant dense<0xFF800000> : vector<8xf32>
    %374 = vector.multi_reduction <maximumf>, %373, %cst_103 [1] : vector<8x16xf32> to vector<8xf32>
    %375 = vector.shape_cast %374 : vector<8xf32> to vector<8x1xf32>
    %376 = vector.broadcast %375 : vector<8x1xf32> to vector<8x16xf32>
    %377 = arith.subf %373, %376 : vector<8x16xf32>
    %378 = math.exp %377 : vector<8x16xf32>
    %cst_104 = arith.constant dense<0.000000e+00> : vector<8xf32>
    %379 = vector.multi_reduction <add>, %378, %cst_104 [1] : vector<8x16xf32> to vector<8xf32>
    %380 = vector.shape_cast %379 : vector<8xf32> to vector<8x1xf32>
    %381 = tpu.reciprocal %380 {approx = true} : vector<8x1xf32> -> vector<8x1xf32>
    %382 = vector.broadcast %381 : vector<8x1xf32> to vector<8x16xf32>
    %383 = arith.mulf %378, %382 : vector<8x16xf32>
    %c10_i32_105 = arith.constant 10 : i32
    %384 = arith.cmpi sgt, %303, %c10_i32_105 : i32
    %385 = arith.extui %384 : i1 to i32
    %386 = arith.sitofp %385 : i32 to f32
    %387 = vector.broadcast %386 : f32 to vector<8x16xf32>
    %388 = arith.mulf %387, %383 : vector<8x16xf32>
    %389 = arith.addf %301, %388 : vector<8x16xf32>
    %c4_i32 = arith.constant 4 : i32
    %c8_i32_106 = arith.constant 8 : i32
    %390 = arith.muli %arg1, %c8_i32_106 : i32
    %391 = arith.addi %390, %c4_i32 : i32
    %392 = arith.index_cast %c4_i32 : i32 to index
    %c0_107 = arith.constant 0 : index
    %c0_108 = arith.constant 0 : index
    %393 = vector.load %arg2[%392, %c0_107, %c0_108] : memref<8x8x32xf32, #tpu.memory_space<vmem>>, vector<1x8x32xf32>
    %394 = vector.shape_cast %393 : vector<1x8x32xf32> to vector<8x32xf32>
    %cst_109 = arith.constant dense<0.000000e+00> : vector<8x32xf32>
    %395 = tpu.matmul %323, %15, %cst_109 {dimension_numbers = #tpu.dot_dimension_numbers<[1], [0], [0], [1], [0, 0, 1, 1], [], []>} : vector<8x32xbf16>, vector<32x32xbf16>, vector<8x32xf32> -> vector<8x32xf32>
    %396 = arith.addf %394, %395 : vector<8x32xf32>
    %397 = arith.extf %323 : vector<8x32xbf16> to vector<8x32xf32>
    %398 = vector.broadcast %5 : vector<1x32xf32> to vector<8x32xf32>
    %399 = arith.mulf %398, %397 : vector<8x32xf32>
    %400 = vector.broadcast %4 : vector<1x32xf32> to vector<8x32xf32>
    %401 = arith.mulf %318, %400 : vector<8x32xf32>
    %cst_110 = arith.constant 1.000000e+00 : f32
    %402 = vector.broadcast %cst_110 : f32 to vector<8x32xf32>
    %403 = arith.subf %402, %397 : vector<8x32xf32>
    %404 = arith.mulf %401, %403 : vector<8x32xf32>
    %405 = arith.addf %399, %404 : vector<8x32xf32>
    %406 = arith.addf %405, %396 : vector<8x32xf32>
    %407 = vector.broadcast %3 : vector<1x32xf32> to vector<8x32xf32>
    %408 = arith.cmpf ogt, %406, %407 : vector<8x32xf32>
    %409 = arith.extui %408 : vector<8x32xi1> to vector<8x32xi32>
    %410 = arith.sitofp %409 : vector<8x32xi32> to vector<8x32xf32>
    %411 = arith.truncf %410 : vector<8x32xf32> to vector<8x32xbf16>
    %412 = arith.extf %411 : vector<8x32xbf16> to vector<8x32xf32>
    %413 = arith.addf %325, %412 : vector<8x32xf32>
    %414 = tpu.concatenate %411, %344 in 1 : vector<8x32xbf16>, vector<8x32xbf16> -> vector<8x64xbf16>
    %cst_111 = arith.constant dense<0.000000e+00> : vector<8x32xf32>
    %415 = tpu.matmul %414, %16, %cst_111 {dimension_numbers = #tpu.dot_dimension_numbers<[1], [0], [0], [1], [0, 0, 1, 1], [], []>} : vector<8x64xbf16>, vector<64x32xbf16>, vector<8x32xf32> -> vector<8x32xf32>
    %416 = vector.broadcast %19 : vector<1x32xf32> to vector<8x32xf32>
    %417 = arith.addf %415, %416 : vector<8x32xf32>
    %418 = arith.extf %344 : vector<8x32xbf16> to vector<8x32xf32>
    %419 = vector.broadcast %8 : vector<1x32xf32> to vector<8x32xf32>
    %420 = arith.mulf %419, %418 : vector<8x32xf32>
    %421 = vector.broadcast %7 : vector<1x32xf32> to vector<8x32xf32>
    %422 = arith.mulf %339, %421 : vector<8x32xf32>
    %cst_112 = arith.constant 1.000000e+00 : f32
    %423 = vector.broadcast %cst_112 : f32 to vector<8x32xf32>
    %424 = arith.subf %423, %418 : vector<8x32xf32>
    %425 = arith.mulf %422, %424 : vector<8x32xf32>
    %426 = arith.addf %420, %425 : vector<8x32xf32>
    %427 = arith.addf %426, %417 : vector<8x32xf32>
    %428 = vector.broadcast %6 : vector<1x32xf32> to vector<8x32xf32>
    %429 = arith.cmpf ogt, %427, %428 : vector<8x32xf32>
    %430 = arith.extui %429 : vector<8x32xi1> to vector<8x32xi32>
    %431 = arith.sitofp %430 : vector<8x32xi32> to vector<8x32xf32>
    %432 = arith.truncf %431 : vector<8x32xf32> to vector<8x32xbf16>
    %433 = arith.extf %432 : vector<8x32xbf16> to vector<8x32xf32>
    %434 = arith.addf %346, %433 : vector<8x32xf32>
    %435 = tpu.concatenate %432, %365 in 1 : vector<8x32xbf16>, vector<8x32xbf16> -> vector<8x64xbf16>
    %cst_113 = arith.constant dense<0.000000e+00> : vector<8x32xf32>
    %436 = tpu.matmul %435, %17, %cst_113 {dimension_numbers = #tpu.dot_dimension_numbers<[1], [0], [0], [1], [0, 0, 1, 1], [], []>} : vector<8x64xbf16>, vector<64x32xbf16>, vector<8x32xf32> -> vector<8x32xf32>
    %437 = vector.broadcast %20 : vector<1x32xf32> to vector<8x32xf32>
    %438 = arith.addf %436, %437 : vector<8x32xf32>
    %439 = arith.extf %365 : vector<8x32xbf16> to vector<8x32xf32>
    %440 = vector.broadcast %11 : vector<1x32xf32> to vector<8x32xf32>
    %441 = arith.mulf %440, %439 : vector<8x32xf32>
    %442 = vector.broadcast %10 : vector<1x32xf32> to vector<8x32xf32>
    %443 = arith.mulf %360, %442 : vector<8x32xf32>
    %cst_114 = arith.constant 1.000000e+00 : f32
    %444 = vector.broadcast %cst_114 : f32 to vector<8x32xf32>
    %445 = arith.subf %444, %439 : vector<8x32xf32>
    %446 = arith.mulf %443, %445 : vector<8x32xf32>
    %447 = arith.addf %441, %446 : vector<8x32xf32>
    %448 = arith.addf %447, %438 : vector<8x32xf32>
    %449 = vector.broadcast %9 : vector<1x32xf32> to vector<8x32xf32>
    %450 = arith.cmpf ogt, %448, %449 : vector<8x32xf32>
    %451 = arith.extui %450 : vector<8x32xi1> to vector<8x32xi32>
    %452 = arith.sitofp %451 : vector<8x32xi32> to vector<8x32xf32>
    %453 = arith.truncf %452 : vector<8x32xf32> to vector<8x32xbf16>
    %cst_115 = arith.constant dense<0.000000e+00> : vector<8x16xf32>
    %454 = tpu.matmul %453, %18, %cst_115 {dimension_numbers = #tpu.dot_dimension_numbers<[1], [0], [0], [1], [0, 0, 1, 1], [], []>} : vector<8x32xbf16>, vector<32x16xbf16>, vector<8x16xf32> -> vector<8x16xf32>
    %455 = vector.broadcast %21 : vector<1x16xf32> to vector<8x16xf32>
    %456 = arith.addf %454, %455 : vector<8x16xf32>
    %457 = vector.broadcast %12 : vector<1x16xf32> to vector<8x16xf32>
    %458 = arith.mulf %373, %457 : vector<8x16xf32>
    %459 = vector.broadcast %14 : vector<1x16xf32> to vector<8x16xf32>
    %460 = arith.mulf %459, %456 : vector<8x16xf32>
    %461 = arith.addf %458, %460 : vector<8x16xf32>
    %cst_116 = arith.constant dense<0xFF800000> : vector<8xf32>
    %462 = vector.multi_reduction <maximumf>, %461, %cst_116 [1] : vector<8x16xf32> to vector<8xf32>
    %463 = vector.shape_cast %462 : vector<8xf32> to vector<8x1xf32>
    %464 = vector.broadcast %463 : vector<8x1xf32> to vector<8x16xf32>
    %465 = arith.subf %461, %464 : vector<8x16xf32>
    %466 = math.exp %465 : vector<8x16xf32>
    %cst_117 = arith.constant dense<0.000000e+00> : vector<8xf32>
    %467 = vector.multi_reduction <add>, %466, %cst_117 [1] : vector<8x16xf32> to vector<8xf32>
    %468 = vector.shape_cast %467 : vector<8xf32> to vector<8x1xf32>
    %469 = tpu.reciprocal %468 {approx = true} : vector<8x1xf32> -> vector<8x1xf32>
    %470 = vector.broadcast %469 : vector<8x1xf32> to vector<8x16xf32>
    %471 = arith.mulf %466, %470 : vector<8x16xf32>
    %c10_i32_118 = arith.constant 10 : i32
    %472 = arith.cmpi sgt, %391, %c10_i32_118 : i32
    %473 = arith.extui %472 : i1 to i32
    %474 = arith.sitofp %473 : i32 to f32
    %475 = vector.broadcast %474 : f32 to vector<8x16xf32>
    %476 = arith.mulf %475, %471 : vector<8x16xf32>
    %477 = arith.addf %389, %476 : vector<8x16xf32>
    %c5_i32 = arith.constant 5 : i32
    %c8_i32_119 = arith.constant 8 : i32
    %478 = arith.muli %arg1, %c8_i32_119 : i32
    %479 = arith.addi %478, %c5_i32 : i32
    %480 = arith.index_cast %c5_i32 : i32 to index
    %c0_120 = arith.constant 0 : index
    %c0_121 = arith.constant 0 : index
    %481 = vector.load %arg2[%480, %c0_120, %c0_121] : memref<8x8x32xf32, #tpu.memory_space<vmem>>, vector<1x8x32xf32>
    %482 = vector.shape_cast %481 : vector<1x8x32xf32> to vector<8x32xf32>
    %cst_122 = arith.constant dense<0.000000e+00> : vector<8x32xf32>
    %483 = tpu.matmul %411, %15, %cst_122 {dimension_numbers = #tpu.dot_dimension_numbers<[1], [0], [0], [1], [0, 0, 1, 1], [], []>} : vector<8x32xbf16>, vector<32x32xbf16>, vector<8x32xf32> -> vector<8x32xf32>
    %484 = arith.addf %482, %483 : vector<8x32xf32>
    %485 = arith.extf %411 : vector<8x32xbf16> to vector<8x32xf32>
    %486 = vector.broadcast %5 : vector<1x32xf32> to vector<8x32xf32>
    %487 = arith.mulf %486, %485 : vector<8x32xf32>
    %488 = vector.broadcast %4 : vector<1x32xf32> to vector<8x32xf32>
    %489 = arith.mulf %406, %488 : vector<8x32xf32>
    %cst_123 = arith.constant 1.000000e+00 : f32
    %490 = vector.broadcast %cst_123 : f32 to vector<8x32xf32>
    %491 = arith.subf %490, %485 : vector<8x32xf32>
    %492 = arith.mulf %489, %491 : vector<8x32xf32>
    %493 = arith.addf %487, %492 : vector<8x32xf32>
    %494 = arith.addf %493, %484 : vector<8x32xf32>
    %495 = vector.broadcast %3 : vector<1x32xf32> to vector<8x32xf32>
    %496 = arith.cmpf ogt, %494, %495 : vector<8x32xf32>
    %497 = arith.extui %496 : vector<8x32xi1> to vector<8x32xi32>
    %498 = arith.sitofp %497 : vector<8x32xi32> to vector<8x32xf32>
    %499 = arith.truncf %498 : vector<8x32xf32> to vector<8x32xbf16>
    %500 = arith.extf %499 : vector<8x32xbf16> to vector<8x32xf32>
    %501 = arith.addf %413, %500 : vector<8x32xf32>
    %502 = tpu.concatenate %499, %432 in 1 : vector<8x32xbf16>, vector<8x32xbf16> -> vector<8x64xbf16>
    %cst_124 = arith.constant dense<0.000000e+00> : vector<8x32xf32>
    %503 = tpu.matmul %502, %16, %cst_124 {dimension_numbers = #tpu.dot_dimension_numbers<[1], [0], [0], [1], [0, 0, 1, 1], [], []>} : vector<8x64xbf16>, vector<64x32xbf16>, vector<8x32xf32> -> vector<8x32xf32>
    %504 = vector.broadcast %19 : vector<1x32xf32> to vector<8x32xf32>
    %505 = arith.addf %503, %504 : vector<8x32xf32>
    %506 = arith.extf %432 : vector<8x32xbf16> to vector<8x32xf32>
    %507 = vector.broadcast %8 : vector<1x32xf32> to vector<8x32xf32>
    %508 = arith.mulf %507, %506 : vector<8x32xf32>
    %509 = vector.broadcast %7 : vector<1x32xf32> to vector<8x32xf32>
    %510 = arith.mulf %427, %509 : vector<8x32xf32>
    %cst_125 = arith.constant 1.000000e+00 : f32
    %511 = vector.broadcast %cst_125 : f32 to vector<8x32xf32>
    %512 = arith.subf %511, %506 : vector<8x32xf32>
    %513 = arith.mulf %510, %512 : vector<8x32xf32>
    %514 = arith.addf %508, %513 : vector<8x32xf32>
    %515 = arith.addf %514, %505 : vector<8x32xf32>
    %516 = vector.broadcast %6 : vector<1x32xf32> to vector<8x32xf32>
    %517 = arith.cmpf ogt, %515, %516 : vector<8x32xf32>
    %518 = arith.extui %517 : vector<8x32xi1> to vector<8x32xi32>
    %519 = arith.sitofp %518 : vector<8x32xi32> to vector<8x32xf32>
    %520 = arith.truncf %519 : vector<8x32xf32> to vector<8x32xbf16>
    %521 = arith.extf %520 : vector<8x32xbf16> to vector<8x32xf32>
    %522 = arith.addf %434, %521 : vector<8x32xf32>
    %523 = tpu.concatenate %520, %453 in 1 : vector<8x32xbf16>, vector<8x32xbf16> -> vector<8x64xbf16>
    %cst_126 = arith.constant dense<0.000000e+00> : vector<8x32xf32>
    %524 = tpu.matmul %523, %17, %cst_126 {dimension_numbers = #tpu.dot_dimension_numbers<[1], [0], [0], [1], [0, 0, 1, 1], [], []>} : vector<8x64xbf16>, vector<64x32xbf16>, vector<8x32xf32> -> vector<8x32xf32>
    %525 = vector.broadcast %20 : vector<1x32xf32> to vector<8x32xf32>
    %526 = arith.addf %524, %525 : vector<8x32xf32>
    %527 = arith.extf %453 : vector<8x32xbf16> to vector<8x32xf32>
    %528 = vector.broadcast %11 : vector<1x32xf32> to vector<8x32xf32>
    %529 = arith.mulf %528, %527 : vector<8x32xf32>
    %530 = vector.broadcast %10 : vector<1x32xf32> to vector<8x32xf32>
    %531 = arith.mulf %448, %530 : vector<8x32xf32>
    %cst_127 = arith.constant 1.000000e+00 : f32
    %532 = vector.broadcast %cst_127 : f32 to vector<8x32xf32>
    %533 = arith.subf %532, %527 : vector<8x32xf32>
    %534 = arith.mulf %531, %533 : vector<8x32xf32>
    %535 = arith.addf %529, %534 : vector<8x32xf32>
    %536 = arith.addf %535, %526 : vector<8x32xf32>
    %537 = vector.broadcast %9 : vector<1x32xf32> to vector<8x32xf32>
    %538 = arith.cmpf ogt, %536, %537 : vector<8x32xf32>
    %539 = arith.extui %538 : vector<8x32xi1> to vector<8x32xi32>
    %540 = arith.sitofp %539 : vector<8x32xi32> to vector<8x32xf32>
    %541 = arith.truncf %540 : vector<8x32xf32> to vector<8x32xbf16>
    %cst_128 = arith.constant dense<0.000000e+00> : vector<8x16xf32>
    %542 = tpu.matmul %541, %18, %cst_128 {dimension_numbers = #tpu.dot_dimension_numbers<[1], [0], [0], [1], [0, 0, 1, 1], [], []>} : vector<8x32xbf16>, vector<32x16xbf16>, vector<8x16xf32> -> vector<8x16xf32>
    %543 = vector.broadcast %21 : vector<1x16xf32> to vector<8x16xf32>
    %544 = arith.addf %542, %543 : vector<8x16xf32>
    %545 = vector.broadcast %12 : vector<1x16xf32> to vector<8x16xf32>
    %546 = arith.mulf %461, %545 : vector<8x16xf32>
    %547 = vector.broadcast %14 : vector<1x16xf32> to vector<8x16xf32>
    %548 = arith.mulf %547, %544 : vector<8x16xf32>
    %549 = arith.addf %546, %548 : vector<8x16xf32>
    %cst_129 = arith.constant dense<0xFF800000> : vector<8xf32>
    %550 = vector.multi_reduction <maximumf>, %549, %cst_129 [1] : vector<8x16xf32> to vector<8xf32>
    %551 = vector.shape_cast %550 : vector<8xf32> to vector<8x1xf32>
    %552 = vector.broadcast %551 : vector<8x1xf32> to vector<8x16xf32>
    %553 = arith.subf %549, %552 : vector<8x16xf32>
    %554 = math.exp %553 : vector<8x16xf32>
    %cst_130 = arith.constant dense<0.000000e+00> : vector<8xf32>
    %555 = vector.multi_reduction <add>, %554, %cst_130 [1] : vector<8x16xf32> to vector<8xf32>
    %556 = vector.shape_cast %555 : vector<8xf32> to vector<8x1xf32>
    %557 = tpu.reciprocal %556 {approx = true} : vector<8x1xf32> -> vector<8x1xf32>
    %558 = vector.broadcast %557 : vector<8x1xf32> to vector<8x16xf32>
    %559 = arith.mulf %554, %558 : vector<8x16xf32>
    %c10_i32_131 = arith.constant 10 : i32
    %560 = arith.cmpi sgt, %479, %c10_i32_131 : i32
    %561 = arith.extui %560 : i1 to i32
    %562 = arith.sitofp %561 : i32 to f32
    %563 = vector.broadcast %562 : f32 to vector<8x16xf32>
    %564 = arith.mulf %563, %559 : vector<8x16xf32>
    %565 = arith.addf %477, %564 : vector<8x16xf32>
    %c6_i32 = arith.constant 6 : i32
    %c8_i32_132 = arith.constant 8 : i32
    %566 = arith.muli %arg1, %c8_i32_132 : i32
    %567 = arith.addi %566, %c6_i32 : i32
    %568 = arith.index_cast %c6_i32 : i32 to index
    %c0_133 = arith.constant 0 : index
    %c0_134 = arith.constant 0 : index
    %569 = vector.load %arg2[%568, %c0_133, %c0_134] : memref<8x8x32xf32, #tpu.memory_space<vmem>>, vector<1x8x32xf32>
    %570 = vector.shape_cast %569 : vector<1x8x32xf32> to vector<8x32xf32>
    %cst_135 = arith.constant dense<0.000000e+00> : vector<8x32xf32>
    %571 = tpu.matmul %499, %15, %cst_135 {dimension_numbers = #tpu.dot_dimension_numbers<[1], [0], [0], [1], [0, 0, 1, 1], [], []>} : vector<8x32xbf16>, vector<32x32xbf16>, vector<8x32xf32> -> vector<8x32xf32>
    %572 = arith.addf %570, %571 : vector<8x32xf32>
    %573 = arith.extf %499 : vector<8x32xbf16> to vector<8x32xf32>
    %574 = vector.broadcast %5 : vector<1x32xf32> to vector<8x32xf32>
    %575 = arith.mulf %574, %573 : vector<8x32xf32>
    %576 = vector.broadcast %4 : vector<1x32xf32> to vector<8x32xf32>
    %577 = arith.mulf %494, %576 : vector<8x32xf32>
    %cst_136 = arith.constant 1.000000e+00 : f32
    %578 = vector.broadcast %cst_136 : f32 to vector<8x32xf32>
    %579 = arith.subf %578, %573 : vector<8x32xf32>
    %580 = arith.mulf %577, %579 : vector<8x32xf32>
    %581 = arith.addf %575, %580 : vector<8x32xf32>
    %582 = arith.addf %581, %572 : vector<8x32xf32>
    %583 = vector.broadcast %3 : vector<1x32xf32> to vector<8x32xf32>
    %584 = arith.cmpf ogt, %582, %583 : vector<8x32xf32>
    %585 = arith.extui %584 : vector<8x32xi1> to vector<8x32xi32>
    %586 = arith.sitofp %585 : vector<8x32xi32> to vector<8x32xf32>
    %587 = arith.truncf %586 : vector<8x32xf32> to vector<8x32xbf16>
    %588 = arith.extf %587 : vector<8x32xbf16> to vector<8x32xf32>
    %589 = arith.addf %501, %588 : vector<8x32xf32>
    %590 = tpu.concatenate %587, %520 in 1 : vector<8x32xbf16>, vector<8x32xbf16> -> vector<8x64xbf16>
    %cst_137 = arith.constant dense<0.000000e+00> : vector<8x32xf32>
    %591 = tpu.matmul %590, %16, %cst_137 {dimension_numbers = #tpu.dot_dimension_numbers<[1], [0], [0], [1], [0, 0, 1, 1], [], []>} : vector<8x64xbf16>, vector<64x32xbf16>, vector<8x32xf32> -> vector<8x32xf32>
    %592 = vector.broadcast %19 : vector<1x32xf32> to vector<8x32xf32>
    %593 = arith.addf %591, %592 : vector<8x32xf32>
    %594 = arith.extf %520 : vector<8x32xbf16> to vector<8x32xf32>
    %595 = vector.broadcast %8 : vector<1x32xf32> to vector<8x32xf32>
    %596 = arith.mulf %595, %594 : vector<8x32xf32>
    %597 = vector.broadcast %7 : vector<1x32xf32> to vector<8x32xf32>
    %598 = arith.mulf %515, %597 : vector<8x32xf32>
    %cst_138 = arith.constant 1.000000e+00 : f32
    %599 = vector.broadcast %cst_138 : f32 to vector<8x32xf32>
    %600 = arith.subf %599, %594 : vector<8x32xf32>
    %601 = arith.mulf %598, %600 : vector<8x32xf32>
    %602 = arith.addf %596, %601 : vector<8x32xf32>
    %603 = arith.addf %602, %593 : vector<8x32xf32>
    %604 = vector.broadcast %6 : vector<1x32xf32> to vector<8x32xf32>
    %605 = arith.cmpf ogt, %603, %604 : vector<8x32xf32>
    %606 = arith.extui %605 : vector<8x32xi1> to vector<8x32xi32>
    %607 = arith.sitofp %606 : vector<8x32xi32> to vector<8x32xf32>
    %608 = arith.truncf %607 : vector<8x32xf32> to vector<8x32xbf16>
    %609 = arith.extf %608 : vector<8x32xbf16> to vector<8x32xf32>
    %610 = arith.addf %522, %609 : vector<8x32xf32>
    %611 = tpu.concatenate %608, %541 in 1 : vector<8x32xbf16>, vector<8x32xbf16> -> vector<8x64xbf16>
    %cst_139 = arith.constant dense<0.000000e+00> : vector<8x32xf32>
    %612 = tpu.matmul %611, %17, %cst_139 {dimension_numbers = #tpu.dot_dimension_numbers<[1], [0], [0], [1], [0, 0, 1, 1], [], []>} : vector<8x64xbf16>, vector<64x32xbf16>, vector<8x32xf32> -> vector<8x32xf32>
    %613 = vector.broadcast %20 : vector<1x32xf32> to vector<8x32xf32>
    %614 = arith.addf %612, %613 : vector<8x32xf32>
    %615 = arith.extf %541 : vector<8x32xbf16> to vector<8x32xf32>
    %616 = vector.broadcast %11 : vector<1x32xf32> to vector<8x32xf32>
    %617 = arith.mulf %616, %615 : vector<8x32xf32>
    %618 = vector.broadcast %10 : vector<1x32xf32> to vector<8x32xf32>
    %619 = arith.mulf %536, %618 : vector<8x32xf32>
    %cst_140 = arith.constant 1.000000e+00 : f32
    %620 = vector.broadcast %cst_140 : f32 to vector<8x32xf32>
    %621 = arith.subf %620, %615 : vector<8x32xf32>
    %622 = arith.mulf %619, %621 : vector<8x32xf32>
    %623 = arith.addf %617, %622 : vector<8x32xf32>
    %624 = arith.addf %623, %614 : vector<8x32xf32>
    %625 = vector.broadcast %9 : vector<1x32xf32> to vector<8x32xf32>
    %626 = arith.cmpf ogt, %624, %625 : vector<8x32xf32>
    %627 = arith.extui %626 : vector<8x32xi1> to vector<8x32xi32>
    %628 = arith.sitofp %627 : vector<8x32xi32> to vector<8x32xf32>
    %629 = arith.truncf %628 : vector<8x32xf32> to vector<8x32xbf16>
    %cst_141 = arith.constant dense<0.000000e+00> : vector<8x16xf32>
    %630 = tpu.matmul %629, %18, %cst_141 {dimension_numbers = #tpu.dot_dimension_numbers<[1], [0], [0], [1], [0, 0, 1, 1], [], []>} : vector<8x32xbf16>, vector<32x16xbf16>, vector<8x16xf32> -> vector<8x16xf32>
    %631 = vector.broadcast %21 : vector<1x16xf32> to vector<8x16xf32>
    %632 = arith.addf %630, %631 : vector<8x16xf32>
    %633 = vector.broadcast %12 : vector<1x16xf32> to vector<8x16xf32>
    %634 = arith.mulf %549, %633 : vector<8x16xf32>
    %635 = vector.broadcast %14 : vector<1x16xf32> to vector<8x16xf32>
    %636 = arith.mulf %635, %632 : vector<8x16xf32>
    %637 = arith.addf %634, %636 : vector<8x16xf32>
    %cst_142 = arith.constant dense<0xFF800000> : vector<8xf32>
    %638 = vector.multi_reduction <maximumf>, %637, %cst_142 [1] : vector<8x16xf32> to vector<8xf32>
    %639 = vector.shape_cast %638 : vector<8xf32> to vector<8x1xf32>
    %640 = vector.broadcast %639 : vector<8x1xf32> to vector<8x16xf32>
    %641 = arith.subf %637, %640 : vector<8x16xf32>
    %642 = math.exp %641 : vector<8x16xf32>
    %cst_143 = arith.constant dense<0.000000e+00> : vector<8xf32>
    %643 = vector.multi_reduction <add>, %642, %cst_143 [1] : vector<8x16xf32> to vector<8xf32>
    %644 = vector.shape_cast %643 : vector<8xf32> to vector<8x1xf32>
    %645 = tpu.reciprocal %644 {approx = true} : vector<8x1xf32> -> vector<8x1xf32>
    %646 = vector.broadcast %645 : vector<8x1xf32> to vector<8x16xf32>
    %647 = arith.mulf %642, %646 : vector<8x16xf32>
    %c10_i32_144 = arith.constant 10 : i32
    %648 = arith.cmpi sgt, %567, %c10_i32_144 : i32
    %649 = arith.extui %648 : i1 to i32
    %650 = arith.sitofp %649 : i32 to f32
    %651 = vector.broadcast %650 : f32 to vector<8x16xf32>
    %652 = arith.mulf %651, %647 : vector<8x16xf32>
    %653 = arith.addf %565, %652 : vector<8x16xf32>
    %c7_i32 = arith.constant 7 : i32
    %c8_i32_145 = arith.constant 8 : i32
    %654 = arith.muli %arg1, %c8_i32_145 : i32
    %655 = arith.addi %654, %c7_i32 : i32
    %656 = arith.index_cast %c7_i32 : i32 to index
    %c0_146 = arith.constant 0 : index
    %c0_147 = arith.constant 0 : index
    %657 = vector.load %arg2[%656, %c0_146, %c0_147] : memref<8x8x32xf32, #tpu.memory_space<vmem>>, vector<1x8x32xf32>
    %658 = vector.shape_cast %657 : vector<1x8x32xf32> to vector<8x32xf32>
    %cst_148 = arith.constant dense<0.000000e+00> : vector<8x32xf32>
    %659 = tpu.matmul %587, %15, %cst_148 {dimension_numbers = #tpu.dot_dimension_numbers<[1], [0], [0], [1], [0, 0, 1, 1], [], []>} : vector<8x32xbf16>, vector<32x32xbf16>, vector<8x32xf32> -> vector<8x32xf32>
    %660 = arith.addf %658, %659 : vector<8x32xf32>
    %661 = arith.extf %587 : vector<8x32xbf16> to vector<8x32xf32>
    %662 = vector.broadcast %5 : vector<1x32xf32> to vector<8x32xf32>
    %663 = arith.mulf %662, %661 : vector<8x32xf32>
    %664 = vector.broadcast %4 : vector<1x32xf32> to vector<8x32xf32>
    %665 = arith.mulf %582, %664 : vector<8x32xf32>
    %cst_149 = arith.constant 1.000000e+00 : f32
    %666 = vector.broadcast %cst_149 : f32 to vector<8x32xf32>
    %667 = arith.subf %666, %661 : vector<8x32xf32>
    %668 = arith.mulf %665, %667 : vector<8x32xf32>
    %669 = arith.addf %663, %668 : vector<8x32xf32>
    %670 = arith.addf %669, %660 : vector<8x32xf32>
    %671 = vector.broadcast %3 : vector<1x32xf32> to vector<8x32xf32>
    %672 = arith.cmpf ogt, %670, %671 : vector<8x32xf32>
    %673 = arith.extui %672 : vector<8x32xi1> to vector<8x32xi32>
    %674 = arith.sitofp %673 : vector<8x32xi32> to vector<8x32xf32>
    %675 = arith.truncf %674 : vector<8x32xf32> to vector<8x32xbf16>
    %676 = arith.extf %675 : vector<8x32xbf16> to vector<8x32xf32>
    %677 = arith.addf %589, %676 : vector<8x32xf32>
    %678 = tpu.concatenate %675, %608 in 1 : vector<8x32xbf16>, vector<8x32xbf16> -> vector<8x64xbf16>
    %cst_150 = arith.constant dense<0.000000e+00> : vector<8x32xf32>
    %679 = tpu.matmul %678, %16, %cst_150 {dimension_numbers = #tpu.dot_dimension_numbers<[1], [0], [0], [1], [0, 0, 1, 1], [], []>} : vector<8x64xbf16>, vector<64x32xbf16>, vector<8x32xf32> -> vector<8x32xf32>
    %680 = vector.broadcast %19 : vector<1x32xf32> to vector<8x32xf32>
    %681 = arith.addf %679, %680 : vector<8x32xf32>
    %682 = arith.extf %608 : vector<8x32xbf16> to vector<8x32xf32>
    %683 = vector.broadcast %8 : vector<1x32xf32> to vector<8x32xf32>
    %684 = arith.mulf %683, %682 : vector<8x32xf32>
    %685 = vector.broadcast %7 : vector<1x32xf32> to vector<8x32xf32>
    %686 = arith.mulf %603, %685 : vector<8x32xf32>
    %cst_151 = arith.constant 1.000000e+00 : f32
    %687 = vector.broadcast %cst_151 : f32 to vector<8x32xf32>
    %688 = arith.subf %687, %682 : vector<8x32xf32>
    %689 = arith.mulf %686, %688 : vector<8x32xf32>
    %690 = arith.addf %684, %689 : vector<8x32xf32>
    %691 = arith.addf %690, %681 : vector<8x32xf32>
    %692 = vector.broadcast %6 : vector<1x32xf32> to vector<8x32xf32>
    %693 = arith.cmpf ogt, %691, %692 : vector<8x32xf32>
    %694 = arith.extui %693 : vector<8x32xi1> to vector<8x32xi32>
    %695 = arith.sitofp %694 : vector<8x32xi32> to vector<8x32xf32>
    %696 = arith.truncf %695 : vector<8x32xf32> to vector<8x32xbf16>
    %697 = arith.extf %696 : vector<8x32xbf16> to vector<8x32xf32>
    %698 = arith.addf %610, %697 : vector<8x32xf32>
    %699 = tpu.concatenate %696, %629 in 1 : vector<8x32xbf16>, vector<8x32xbf16> -> vector<8x64xbf16>
    %cst_152 = arith.constant dense<0.000000e+00> : vector<8x32xf32>
    %700 = tpu.matmul %699, %17, %cst_152 {dimension_numbers = #tpu.dot_dimension_numbers<[1], [0], [0], [1], [0, 0, 1, 1], [], []>} : vector<8x64xbf16>, vector<64x32xbf16>, vector<8x32xf32> -> vector<8x32xf32>
    %701 = vector.broadcast %20 : vector<1x32xf32> to vector<8x32xf32>
    %702 = arith.addf %700, %701 : vector<8x32xf32>
    %703 = arith.extf %629 : vector<8x32xbf16> to vector<8x32xf32>
    %704 = vector.broadcast %11 : vector<1x32xf32> to vector<8x32xf32>
    %705 = arith.mulf %704, %703 : vector<8x32xf32>
    %706 = vector.broadcast %10 : vector<1x32xf32> to vector<8x32xf32>
    %707 = arith.mulf %624, %706 : vector<8x32xf32>
    %cst_153 = arith.constant 1.000000e+00 : f32
    %708 = vector.broadcast %cst_153 : f32 to vector<8x32xf32>
    %709 = arith.subf %708, %703 : vector<8x32xf32>
    %710 = arith.mulf %707, %709 : vector<8x32xf32>
    %711 = arith.addf %705, %710 : vector<8x32xf32>
    %712 = arith.addf %711, %702 : vector<8x32xf32>
    %713 = vector.broadcast %9 : vector<1x32xf32> to vector<8x32xf32>
    %714 = arith.cmpf ogt, %712, %713 : vector<8x32xf32>
    %715 = arith.extui %714 : vector<8x32xi1> to vector<8x32xi32>
    %716 = arith.sitofp %715 : vector<8x32xi32> to vector<8x32xf32>
    %717 = arith.truncf %716 : vector<8x32xf32> to vector<8x32xbf16>
    %cst_154 = arith.constant dense<0.000000e+00> : vector<8x16xf32>
    %718 = tpu.matmul %717, %18, %cst_154 {dimension_numbers = #tpu.dot_dimension_numbers<[1], [0], [0], [1], [0, 0, 1, 1], [], []>} : vector<8x32xbf16>, vector<32x16xbf16>, vector<8x16xf32> -> vector<8x16xf32>
    %719 = vector.broadcast %21 : vector<1x16xf32> to vector<8x16xf32>
    %720 = arith.addf %718, %719 : vector<8x16xf32>
    %721 = vector.broadcast %12 : vector<1x16xf32> to vector<8x16xf32>
    %722 = arith.mulf %637, %721 : vector<8x16xf32>
    %723 = vector.broadcast %14 : vector<1x16xf32> to vector<8x16xf32>
    %724 = arith.mulf %723, %720 : vector<8x16xf32>
    %725 = arith.addf %722, %724 : vector<8x16xf32>
    %cst_155 = arith.constant dense<0xFF800000> : vector<8xf32>
    %726 = vector.multi_reduction <maximumf>, %725, %cst_155 [1] : vector<8x16xf32> to vector<8xf32>
    %727 = vector.shape_cast %726 : vector<8xf32> to vector<8x1xf32>
    %728 = vector.broadcast %727 : vector<8x1xf32> to vector<8x16xf32>
    %729 = arith.subf %725, %728 : vector<8x16xf32>
    %730 = math.exp %729 : vector<8x16xf32>
    %cst_156 = arith.constant dense<0.000000e+00> : vector<8xf32>
    %731 = vector.multi_reduction <add>, %730, %cst_156 [1] : vector<8x16xf32> to vector<8xf32>
    %732 = vector.shape_cast %731 : vector<8xf32> to vector<8x1xf32>
    %733 = tpu.reciprocal %732 {approx = true} : vector<8x1xf32> -> vector<8x1xf32>
    %734 = vector.broadcast %733 : vector<8x1xf32> to vector<8x16xf32>
    %735 = arith.mulf %730, %734 : vector<8x16xf32>
    %c10_i32_157 = arith.constant 10 : i32
    %736 = arith.cmpi sgt, %655, %c10_i32_157 : i32
    %737 = arith.extui %736 : i1 to i32
    %738 = arith.sitofp %737 : i32 to f32
    %739 = vector.broadcast %738 : f32 to vector<8x16xf32>
    %740 = arith.mulf %739, %735 : vector<8x16xf32>
    %741 = arith.addf %653, %740 : vector<8x16xf32>
    %c8_i32_158 = arith.constant 8 : i32
    %c0_159 = arith.constant 0 : index
    %c0_160 = arith.constant 0 : index
    %c0_161 = arith.constant 0 : index
    %742 = vector.load %arg19[%c0_159, %c0_160, %c0_161] : memref<3x8x32xf32, #tpu.memory_space<vmem>>, vector<1x8x32xf32>
    %743 = vector.shape_cast %742 : vector<1x8x32xf32> to vector<8x32xf32>
    %744 = vector.shape_cast %670 : vector<8x32xf32> to vector<1x8x32xf32>
    tpu.vector_store %arg19[%c0_159, %c0_160, %c0_161], %744 {strides = array<i32>} : memref<3x8x32xf32, #tpu.memory_space<vmem>>, vector<1x8x32xf32>,
    %c0_162 = arith.constant 0 : index
    %c0_163 = arith.constant 0 : index
    %c0_164 = arith.constant 0 : index
    %745 = vector.load %arg20[%c0_162, %c0_163, %c0_164] : memref<3x8x32xbf16, #tpu.memory_space<vmem>>, vector<1x8x32xbf16>
    %746 = vector.shape_cast %745 : vector<1x8x32xbf16> to vector<8x32xbf16>
    %747 = vector.shape_cast %675 : vector<8x32xbf16> to vector<1x8x32xbf16>
    tpu.vector_store %arg20[%c0_162, %c0_163, %c0_164], %747 {strides = array<i32>} : memref<3x8x32xbf16, #tpu.memory_space<vmem>>, vector<1x8x32xbf16>,
    %c1_165 = arith.constant 1 : index
    %c0_166 = arith.constant 0 : index
    %c0_167 = arith.constant 0 : index
    %748 = vector.load %arg19[%c1_165, %c0_166, %c0_167] : memref<3x8x32xf32, #tpu.memory_space<vmem>>, vector<1x8x32xf32>
    %749 = vector.shape_cast %748 : vector<1x8x32xf32> to vector<8x32xf32>
    %750 = vector.shape_cast %691 : vector<8x32xf32> to vector<1x8x32xf32>
    tpu.vector_store %arg19[%c1_165, %c0_166, %c0_167], %750 {strides = array<i32>} : memref<3x8x32xf32, #tpu.memory_space<vmem>>, vector<1x8x32xf32>,
    %c1_168 = arith.constant 1 : index
    %c0_169 = arith.constant 0 : index
    %c0_170 = arith.constant 0 : index
    %751 = vector.load %arg20[%c1_168, %c0_169, %c0_170] : memref<3x8x32xbf16, #tpu.memory_space<vmem>>, vector<1x8x32xbf16>
    %752 = vector.shape_cast %751 : vector<1x8x32xbf16> to vector<8x32xbf16>
    %753 = vector.shape_cast %696 : vector<8x32xbf16> to vector<1x8x32xbf16>
    tpu.vector_store %arg20[%c1_168, %c0_169, %c0_170], %753 {strides = array<i32>} : memref<3x8x32xbf16, #tpu.memory_space<vmem>>, vector<1x8x32xbf16>,
    %c2_171 = arith.constant 2 : index
    %c0_172 = arith.constant 0 : index
    %c0_173 = arith.constant 0 : index
    %754 = vector.load %arg19[%c2_171, %c0_172, %c0_173] : memref<3x8x32xf32, #tpu.memory_space<vmem>>, vector<1x8x32xf32>
    %755 = vector.shape_cast %754 : vector<1x8x32xf32> to vector<8x32xf32>
    %756 = vector.shape_cast %712 : vector<8x32xf32> to vector<1x8x32xf32>
    tpu.vector_store %arg19[%c2_171, %c0_172, %c0_173], %756 {strides = array<i32>} : memref<3x8x32xf32, #tpu.memory_space<vmem>>, vector<1x8x32xf32>,
    %c2_174 = arith.constant 2 : index
    %c0_175 = arith.constant 0 : index
    %c0_176 = arith.constant 0 : index
    %757 = vector.load %arg20[%c2_174, %c0_175, %c0_176] : memref<3x8x32xbf16, #tpu.memory_space<vmem>>, vector<1x8x32xbf16>
    %758 = vector.shape_cast %757 : vector<1x8x32xbf16> to vector<8x32xbf16>
    %759 = vector.shape_cast %717 : vector<8x32xbf16> to vector<1x8x32xbf16>
    tpu.vector_store %arg20[%c2_174, %c0_175, %c0_176], %759 {strides = array<i32>} : memref<3x8x32xbf16, #tpu.memory_space<vmem>>, vector<1x8x32xbf16>,
    %c0_177 = arith.constant 0 : index
    %c0_178 = arith.constant 0 : index
    %760 = vector.load %arg21[%c0_177, %c0_178] : memref<8x16xf32, #tpu.memory_space<vmem>>, vector<8x16xf32>
    tpu.vector_store %arg21[%c0_177, %c0_178], %725 {strides = array<i32>} : memref<8x16xf32, #tpu.memory_space<vmem>>, vector<8x16xf32>,
    %c0_179 = arith.constant 0 : index
    %c0_180 = arith.constant 0 : index
    %761 = vector.load %arg17[%c0_179, %c0_180] : memref<8x32xf32, #tpu.memory_space<vmem>>, vector<8x32xf32>
    %762 = arith.addf %761, %677 : vector<8x32xf32>
    %c0_181 = arith.constant 0 : index
    %c0_182 = arith.constant 0 : index
    %763 = vector.load %arg17[%c0_181, %c0_182] : memref<8x32xf32, #tpu.memory_space<vmem>>, vector<8x32xf32>
    tpu.vector_store %arg17[%c0_181, %c0_182], %762 {strides = array<i32>} : memref<8x32xf32, #tpu.memory_space<vmem>>, vector<8x32xf32>,
    %c0_183 = arith.constant 0 : index
    %c0_184 = arith.constant 0 : index
    %764 = vector.load %arg18[%c0_183, %c0_184] : memref<8x32xf32, #tpu.memory_space<vmem>>, vector<8x32xf32>
    %765 = arith.addf %764, %698 : vector<8x32xf32>
    %c0_185 = arith.constant 0 : index
    %c0_186 = arith.constant 0 : index
    %766 = vector.load %arg18[%c0_185, %c0_186] : memref<8x32xf32, #tpu.memory_space<vmem>>, vector<8x32xf32>
    tpu.vector_store %arg18[%c0_185, %c0_186], %765 {strides = array<i32>} : memref<8x32xf32, #tpu.memory_space<vmem>>, vector<8x32xf32>,
    %c0_187 = arith.constant 0 : index
    %c0_188 = arith.constant 0 : index
    %767 = vector.load %arg16[%c0_187, %c0_188] : memref<8x16xf32, #tpu.memory_space<vmem>>, vector<8x16xf32>
    %768 = arith.addf %767, %741 : vector<8x16xf32>
    %c0_189 = arith.constant 0 : index
    %c0_190 = arith.constant 0 : index
    %769 = vector.load %arg16[%c0_189, %c0_190] : memref<8x16xf32, #tpu.memory_space<vmem>>, vector<8x16xf32>
    tpu.vector_store %arg16[%c0_189, %c0_190], %768 {strides = array<i32>} : memref<8x16xf32, #tpu.memory_space<vmem>>, vector<8x16xf32>,
    %c2_i32_191 = arith.constant 2 : i32
    %770 = arith.cmpi eq, %arg1, %c2_i32_191 : i32
    %771 = arith.extui %770 : i1 to i32
    %c0_i32_192 = arith.constant 0 : i32
    %772 = arith.cmpi ne, %771, %c0_i32_192 : i32
    scf.if %772 {
      %c0_193 = arith.constant 0 : index
      %c0_194 = arith.constant 0 : index
      %773 = vector.load %arg17[%c0_193, %c0_194] : memref<8x32xf32, #tpu.memory_space<vmem>>, vector<8x32xf32>
      %cst_195 = arith.constant 0.0416666679 : f32
      %774 = vector.broadcast %cst_195 : f32 to vector<8x32xf32>
      %775 = arith.mulf %773, %774 : vector<8x32xf32>
      %c0_196 = arith.constant 0 : index
      %c0_197 = arith.constant 0 : index
      %776 = vector.load %arg17[%c0_196, %c0_197] : memref<8x32xf32, #tpu.memory_space<vmem>>, vector<8x32xf32>
      tpu.vector_store %arg17[%c0_196, %c0_197], %775 {strides = array<i32>} : memref<8x32xf32, #tpu.memory_space<vmem>>, vector<8x32xf32>,
      %c0_198 = arith.constant 0 : index
      %c0_199 = arith.constant 0 : index
      %777 = vector.load %arg18[%c0_198, %c0_199] : memref<8x32xf32, #tpu.memory_space<vmem>>, vector<8x32xf32>
      %cst_200 = arith.constant 0.0416666679 : f32
      %778 = vector.broadcast %cst_200 : f32 to vector<8x32xf32>
      %779 = arith.mulf %777, %778 : vector<8x32xf32>
      %c0_201 = arith.constant 0 : index
      %c0_202 = arith.constant 0 : index
      %780 = vector.load %arg18[%c0_201, %c0_202] : memref<8x32xf32, #tpu.memory_space<vmem>>, vector<8x32xf32>
      tpu.vector_store %arg18[%c0_201, %c0_202], %779 {strides = array<i32>} : memref<8x32xf32, #tpu.memory_space<vmem>>, vector<8x32xf32>,
    } else {
    }
    return
  }
  func.func @transform_0(%arg0: i32, %arg1: i32) -> (i32, i32, i32) {
    %c0_i32 = arith.constant 0 : i32
    %c0_i32_0 = arith.constant 0 : i32
    return %arg1, %arg0, %c0_i32 : i32, i32, i32
  }
  func.func @transform_1(%arg0: i32, %arg1: i32) -> (i32, i32) {
    %c0_i32 = arith.constant 0 : i32
    %c0_i32_0 = arith.constant 0 : i32
    %c0_i32_1 = arith.constant 0 : i32
    return %c0_i32, %c0_i32_0 : i32, i32
  }
  func.func @transform_2(%arg0: i32, %arg1: i32) -> (i32, i32) {
    %c0_i32 = arith.constant 0 : i32
    %c0_i32_0 = arith.constant 0 : i32
    %c0_i32_1 = arith.constant 0 : i32
    return %c0_i32, %c0_i32_0 : i32, i32
  }
  func.func @transform_3(%arg0: i32, %arg1: i32) -> (i32, i32) {
    %c0_i32 = arith.constant 0 : i32
    %c0_i32_0 = arith.constant 0 : i32
    %c0_i32_1 = arith.constant 0 : i32
    return %c0_i32, %c0_i32_0 : i32, i32
  }
  func.func @transform_4(%arg0: i32, %arg1: i32) -> (i32, i32) {
    %c0_i32 = arith.constant 0 : i32
    %c0_i32_0 = arith.constant 0 : i32
    %c0_i32_1 = arith.constant 0 : i32
    return %c0_i32, %c0_i32_0 : i32, i32
  }
  func.func @transform_5(%arg0: i32, %arg1: i32) -> (i32, i32) {
    %c0_i32 = arith.constant 0 : i32
    %c0_i32_0 = arith.constant 0 : i32
    %c0_i32_1 = arith.constant 0 : i32
    return %c0_i32, %c0_i32_0 : i32, i32
  }
  func.func @transform_6(%arg0: i32, %arg1: i32) -> (i32, i32) {
    %c0_i32 = arith.constant 0 : i32
    %c0_i32_0 = arith.constant 0 : i32
    %c0_i32_1 = arith.constant 0 : i32
    return %c0_i32, %c0_i32_0 : i32, i32
  }
  func.func @transform_7(%arg0: i32, %arg1: i32) -> (i32, i32) {
    %c0_i32 = arith.constant 0 : i32
    %c0_i32_0 = arith.constant 0 : i32
    %c0_i32_1 = arith.constant 0 : i32
    return %c0_i32, %c0_i32_0 : i32, i32
  }
  func.func @transform_8(%arg0: i32, %arg1: i32) -> (i32, i32) {
    %c0_i32 = arith.constant 0 : i32
    %c0_i32_0 = arith.constant 0 : i32
    %c0_i32_1 = arith.constant 0 : i32
    return %c0_i32, %c0_i32_0 : i32, i32
  }
  func.func @transform_9(%arg0: i32, %arg1: i32) -> (i32, i32) {
    %c0_i32 = arith.constant 0 : i32
    %c0_i32_0 = arith.constant 0 : i32
    %c0_i32_1 = arith.constant 0 : i32
    return %c0_i32, %c0_i32_0 : i32, i32
  }
  func.func @transform_10(%arg0: i32, %arg1: i32) -> (i32, i32) {
    %c0_i32 = arith.constant 0 : i32
    %c0_i32_0 = arith.constant 0 : i32
    %c0_i32_1 = arith.constant 0 : i32
    return %c0_i32, %c0_i32_0 : i32, i32
  }
  func.func @transform_11(%arg0: i32, %arg1: i32) -> (i32, i32) {
    %c0_i32 = arith.constant 0 : i32
    %c0_i32_0 = arith.constant 0 : i32
    %c0_i32_1 = arith.constant 0 : i32
    return %c0_i32, %c0_i32_0 : i32, i32
  }
  func.func @transform_12(%arg0: i32, %arg1: i32) -> (i32, i32, i32) {
    %c0_i32 = arith.constant 0 : i32
    %c0_i32_0 = arith.constant 0 : i32
    %c0_i32_1 = arith.constant 0 : i32
    return %c0_i32, %arg0, %c0_i32_0 : i32, i32, i32
  }
  func.func @transform_13(%arg0: i32, %arg1: i32) -> (i32, i32) {
    %c0_i32 = arith.constant 0 : i32
    %c0_i32_0 = arith.constant 0 : i32
    return %arg0, %c0_i32 : i32, i32
  }
  func.func @transform_14(%arg0: i32, %arg1: i32) -> (i32, i32) {
    %c0_i32 = arith.constant 0 : i32
    %c0_i32_0 = arith.constant 0 : i32
    return %arg0, %c0_i32 : i32, i32
  }
  func.func @transform_15(%arg0: i32, %arg1: i32) -> (i32, i32) {
    %c0_i32 = arith.constant 0 : i32
    %c0_i32_0 = arith.constant 0 : i32
    return %arg0, %c0_i32 : i32, i32
  }
  func.func @transform_16(%arg0: i32, %arg1: i32) -> (i32, i32) {
    %c0_i32 = arith.constant 0 : i32
    %c0_i32_0 = arith.constant 0 : i32
    return %arg0, %c0_i32 : i32, i32
  }
}

</mosaic_0001>

<bundles_post_ra>
// kernel: tpu_custom_call.1
= control target key start
LH: loop header
LB: loop body
LE: loop exit
PB: predicated region body
PF: predicated region fallthrough
CT: control target
= control target key end

     0   :  { %s4985_s0 = inlined_call_operand.hbm [shape: f32[24,8,32], index: 0, kind: input, shape index: {}]   ;;  %s4986_s1 = inlined_call_operand.vmem [shape: bf16[32,32], index: 1, kind: input, shape index: {}]   ;;  %s4987_s2 = inlined_call_operand.vmem [shape: bf16[64,32], index: 2, kind: input, shape index: {}]   ;;  %s4988_s3 = inlined_call_operand.vmem [shape: bf16[64,32], index: 3, kind: input, shape index: {}]   ;;  %s4989_s4 = inlined_call_operand.vmem [shape: bf16[32,16], index: 4, kind: input, shape index: {}]   ;;  %s4990_s5 = inlined_call_operand.vmem [shape: f32[1,32], index: 5, kind: input, shape index: {}]   ;;  %s4991_s6 = inlined_call_operand.vmem [shape: f32[1,32], index: 6, kind: input, shape index: {}]   ;;  %s4992_s7 = inlined_call_operand.vmem [shape: f32[1,16], index: 7, kind: input, shape index: {}]   ;;  %s4993_s8 = inlined_call_operand.vmem [shape: f32[3,32], index: 8, kind: input, shape index: {}]   ;;  %s4994_s9 = inlined_call_operand.vmem [shape: f32[3,32], index: 9, kind: input, shape index: {}]   ;;  %s4995_s10 = inlined_call_operand.vmem [shape: f32[3,32], index: 10, kind: input, shape index: {}]   ;;  %s4996_s11 = inlined_call_operand.vmem [shape: f32[1,16], index: 11, kind: input, shape index: {}]   ;;  %s4997_s12 = inlined_call_operand.vmem [shape: f32[3,8,32], index: 12, kind: input, shape index: {}]   ;;  %s4998_s13 = inlined_call_operand.vmem [shape: f32[8,16], index: 13, kind: input, shape index: {}]   ;;  %s4999_s14 = inlined_call_operand.hbm [shape: f32[8,16], index: 14, kind: output, shape index: {0}]   ;;  %s5000_s15 = inlined_call_operand.hbm [shape: f32[8,32], index: 15, kind: output, shape index: {1}]   ;;  %s5001_s16 = inlined_call_operand.hbm [shape: f32[8,32], index: 16, kind: output, shape index: {2}]  }
   0x1   :  { %5006 = sst [smem:[#allocation17_spill]] %s4985_s0 }
   0x2   :  { %5007 = sst [smem:[#allocation18_spill]] %s4991_s6 }
   0x3   :  { %5008 = sst [smem:[#allocation19_spill]] %s4992_s7 }
   0x4   :  { %5009 = sst [smem:[#allocation20_spill]] %s4996_s11 }
   0x5   :  { %5010 = sst [smem:[#allocation21_spill]] %s4999_s14 }
   0x6   :  { %5011 = sst [smem:[#allocation22_spill]] %s5000_s15 }
   0x7   :  { %5012 = sst [smem:[#allocation23_spill]] %s5001_s16 }
   0x8   :  { %22 = vsyncpa [#allocation6], 0 }
   0x9   :  { %24 = vsyncpa [#allocation6 + $0x1], 0 }
   0xa   :  { %25 = vsyncpa [#allocation7], 0 }
   0xb   :  { %26 = vsyncpa [#allocation10], 0  ;;  %s3874_s21 = smov 0   ;;  %s3876_s22 = smov 0  }
   0xc   :  { %s3878_s23 = smov 0   ;;  %s3880_s24 = smov 0  }
   0xd   :  { %s3882_s25 = smov 0   ;;  %s3884_s26 = smov 0  }
   0xe LB: > { %5013 = sst [smem:[#allocation15_spill]] %s3772_s25  ;;  %s5003_s27 = sadd.s32 4294967295, %s3776_s26   ;;  %s3776_s26 = sphi %s3884_s26, %s32_s26   ;;  %s3772_s25 = sphi %s3882_s25, %s5033_s25   ;;  %s3768_s24 = sphi %s3880_s24, %s5032_s24   ;;  %s3764_s23 = sphi %s3878_s23, %s5036_s23   ;;  %s3760_s22 = sphi %s3876_s22, %s5035_s22   ;;  %s3756_s21 = sphi %s3874_s21, %s5034_s21  }
   0xf   : > { %s41_s28 = sadd.s32 1, %s3772_s25  ;;  %s53_s29 = sadd.s32 1, %s3764_s23 }
  0x10   : > { %p42_p0 = scmp.ge.s32.totalorder %s41_s28, 3  ;;  %p60_p1 = scmp.ne.s32.totalorder %s3764_s23, %s3760_s22 }
  0x11   : > { %p61_p2 = scmp.eq.s32.totalorder %s3776_s26, 0  ;;  %p66_p4 = scmp.ne.s32.totalorder %s3760_s22, %s3756_s21 }
  0x12   : > { %s5038_s28 = smov (%p42_p0, %s41_s28), 0  ;;  %p67_p5 = scmp.eq.s32.totalorder %s5003_s27, 0 }
  0x13   : > { %5014 = sst [smem:[#allocation16_spill]] %s5038_s28  ;;  %p3910_p3 = por %p61_p2, %p60_p1 }
  0x14   : > { %s48_s0 = ssub.s32 %s3772_s25, %s5038_s28  ;;  %p3919_p7 = por %p67_p5, %p66_p4 }
  0x15   : > { %p51_p6 = scmp.eq.s32.totalorder %s48_s0, 0  ;;  %p3484_p8 = scmp.lt.s32.totalorder %s3776_s26, 3 }
  0x16   : > { %s498_s19 = sand.u32 1, %s3764_s23   ;;  %s3017_s20 = sshll.u32 %s3772_s25, 10 }
  0x17   : > { %s3925_s18 = scalar_select %p51_p6, %s3764_s23, %s53_s29  }
  0x18   : > { %s2912_s16 = sshll.u32 %s498_s19, 6  ;;  %s5017_s7 = sld [smem:[#allocation17_spill]] }
  0x19   : > { %s502_s6 = scalar_lea.vmem [#allocation5], %s2912_s16  ;;  %p3934_p9 = pnand %p3484_p8, %p3910_p3 }
  0x1a   : > { %s510_s21 = sshll.u32 %s502_s6, 4  ;;  %s499_s0 = scalar_lea.sflag [#allocation6], %s498_s19  ;;  %s511_s21 = int_to_ptr.vmem [resolvable:$true] %s510_s21 }
  0x1b   : > { %p3620_p10 = pneg %p3934_p9  ;;  %s3631_s29 = scalar_lea.vmem %s511_s21, 1024 }
  0x1c   : > { %p3632_p11 = scmp.ne.s32.totalorder %s511_s21, %s3631_s29  ;;  %s3778_s28 = smov [#allocation5]  }
  0x1d   : > { %s3636_s25 = sshll.u32 %s3778_s28, 4  ;;  %s3637_s25 = int_to_ptr.vmem [resolvable:$false] %s3636_s25 }
  0x1e   : > { %s509_s11 = scalar_lea.hbm %s5017_s7, %s3017_s20  ;;  %p3634_p12 = pnand %p3632_p11, %p3620_p10 }
  0x1f   : > { %s3638_s7 = scalar_lea.vmem %s3637_s25, 2048  ;;  %p3639_p0 = scmp.lt.s32.totalorder %s511_s21, %s3637_s25 }
  0x20   : > { %p3635_p13 = pneg %p3634_p12  ;;  %p3640_p1 = scmp.lt.s32.totalorder %s3638_s7, %s3631_s29 }
  0x22   : > { %p3641_p2 = por %p3640_p1, %p3639_p0 }
  0x24   : > { %p3642_p3 = pnand %p3641_p2, %p3635_p13 }
  0x26   : > { %3645 = shalt.err (!%p3642_p3)
}
  0x27   : > { %s3779_s6 = smov 128   ;;  %s3780_s14 = smov 8  }
  0x28   : > { %3483 = dma.hbm_to_vmem [thread:$0]  (!%p3934_p9), %s509_s11, 1024, %s511_s21, %s499_s0, %s3779_s6, %s3779_s6, %s3780_s14  }
  0x29   : > { %p2915_p4 = scmp.ge.s32.totalorder %s3776_s26, 1  ;;  %p518_p5 = scmp.lt.s32.totalorder %s3776_s26, 4 }
  0x2b   : > { %p519_p6 = pnand %p2915_p4, %p518_p5 }
  0x2c   : > { %s524_s15 = sand.u32 (!%p519_p6), 1, %s3760_s22  }
  0x2d   : > { %522 = sbr.rel (%p519_p6) target bundleno = 4179 (0x1053), region = 76  ;;  %s2916_s16 = sshll.u32 (!%p519_p6), %s524_s15, 6 }
  0x2e   : > { %s525_s25 = scalar_lea.sflag (!%p519_p6), [#allocation6], %s524_s15  ;;  %s3945_s28 = scalar_lea.vmem (!%p519_p6), [#allocation5], %s2916_s16 }
  0x32   : > { %3743 = dma.done.wait (%p3919_p7), %s525_s25, 1024  }
  0x33   : > { %3745 = vsyncadd (%p3919_p7), %s525_s25, 4294966272  ;;  %p2917_p8 = scmp.ne.s32.totalorder %s3768_s24, 0 }
  0x35   : > { %593 = sbr.rel (%p2917_p8) target bundleno = 65 (0x41), region = 84 }
  0x3a   : > { %v594_v0 = vld [vmem:[%s4997_s12] sm:$0xff]  ;;  %vm597_vm0 = vcmask 261120   ;;  %v595_v1 = vld [vmem:[%s4997_s12 + $0x8] sm:$0xff]  ;;  %v596_v2 = vld [vmem:[%s4997_s12 + $0x10] sm:$0xff]  ;;  %vm601_vm1 = vcmask 257024   ;;  %v3781_v3 = vmov 0  }
  0x3b   : > { %598 = vst.msk [vmem:[#allocation2] sm:$0xff] %vm597_vm0, %v594_v0  ;;  %599 = vst.msk [vmem:[#allocation2 + $0x8] sm:$0xff] %vm597_vm0, %v595_v1  ;;  %v605_v4 = vld [vmem:[%s4998_s13] sm:$0xff]  ;;  %vm606_vm2 = vcmask 130048   ;;  %v3782_v5 = vmov 0.0  }
  0x3c   : > { %600 = vst.msk [vmem:[#allocation2 + $0x10] sm:$0xff] %vm597_vm0, %v596_v2  ;;  %609 = vst.msk [vmem:[#allocation9] sm:$0xff] %vm597_vm0, %v3782_v5 }
  0x3d   : > { %602 = vst.msk [vmem:[#allocation3] sm:$0xf] %vm601_vm1, %v3781_v3  ;;  %603 = vst.msk [vmem:[#allocation3 + $0x4] sm:$0xf] %vm601_vm1, %v3781_v3 }
  0x3e   : > { %604 = vst.msk [vmem:[#allocation3 + $0x8] sm:$0xf] %vm601_vm1, %v3781_v3 }
  0x3f   : > { %607 = vst.msk [vmem:[#allocation4] sm:$0xff] %vm606_vm2, %v605_v4  ;;  %608 = vst.msk [vmem:[#allocation8] sm:$0xff] %vm606_vm2, %v3782_v5 }
  0x40   : > { %610 = vst.msk [vmem:[#allocation11] sm:$0xff] %vm597_vm0, %v3782_v5 }
  0x41 PF: > { %v3972_v6 = vld [vmem:[%s4986_s1 + $0x8] sm:$0xff]   ;;  %v3783_v7 = vmov 0.0   ;;  %v3980_v8 = vld [vmem:[%s4986_s1] sm:$0xff]   ;;  %vm3784_vm3 = vmmov 0   ;;  %v3992_v11 = vld [vmem:[%s4987_s2 + $0x18] sm:$0xff]   ;;  %s3785_s25 = smov 32  }
  0x42   : > { %3146 = vmatprep.subr.bf16.mxu0 %v3783_v7  ;;  %3154 = vmatprep.subr.bf16.mxu1 %v3783_v7  ;;  %v4001_v12 = vld [vmem:[%s4987_s2 + $0x10] sm:$0xff]   ;;  %vm674_vm4 = vcmask 261120   ;;  %v4014_v14 = vld [vmem:[%s4987_s2 + $0x8] sm:$0xff]   ;;  %v4021_v15 = vld [vmem:[%s4987_s2] sm:$0xff]   ;;  %vm782_vm6 = vcmask 523264   ;;  %s5019_s6 = sld [smem:[#allocation18_spill]] }
  0x43   : > { %3147 = vmatpush3.bf16.msra.mxu0 %v3972_v6  ;;  %3150 = vmatprep.mubr.msk.bf16.mxu0 %vm3784_vm3, %v3783_v7  ;;  %v4030_v17 = vld [vmem:[%s4988_s3 + $0x18] sm:$0xff]   ;;  %v4038_v19 = vld [vmem:[%s4988_s3 + $0x10] sm:$0xff]   ;;  %v4047_v21 = vld [vmem:[%s4993_s8 + $0x1] ss:$0 sm:$0xff]  ;;  %s5020_s14 = sld [smem:[#allocation20_spill]]  ;;  %p3008_p2 = scmp.ne.s32.totalorder %s3768_s24, 2 }
  0x44   : > { %v3984_v9 = vld [vmem:[#allocation3 + $0x4] sm:$0xf]  ;;  %3148 = vmatprep.subr.bf16.mxu0 %v3783_v7  ;;  %3162 = vmatprep.mubr.msk.bf16.mxu1 %vm3784_vm3, %v3783_v7  ;;  %v650_v13 = vld [vmem:[#allocation3] sm:$0xf]  ;;  %v649_v22 = vld [vmem:[#allocation2] sm:$0xff]  ;;  %s5021_s20 = sld [smem:[#allocation19_spill]] }
  0x45   : > { %v2926_v10 = vcombine.low %v3984_v9, %v3984_v9  ;;  %3155 = vmatpush3.bf16.msra.mxu1 %v3992_v11  ;;  %v4025_v16 = vld [vmem:[#allocation3 + $0x8] sm:$0xf]  ;;  %v719_v20 = vunpack.c.l.bf16 %v650_v13  ;;  %v729_v24 = vmul.f32 %v4047_v21, %v649_v22  ;;  %v661_v28 = vld [vmem:[%s3945_s28] sm:$0xff]  ;;  %v825_v43 = vunpack.c.l.bf16 %v3984_v9 }
  0x46   : > { %3156 = vmatprep.subr.bf16.mxu1 %v3783_v7  ;;  %v2937_v18 = vcombine.low %v4025_v16, %v4025_v16  ;;  %v4053_v25 = vld [vmem:[%s4993_s8 + $0x2] ss:$0 sm:$0xff]  ;;  %v4060_v32 = vld [vmem:[%s4993_s8] ss:$0 sm:$0xff]  ;;  %v4078_v41 = vld [vmem:[%s4988_s3 + $0x8] sm:$0xff]   ;;  %v930_v2 = vunpack.c.l.bf16 %v4025_v16 }
  0x47   : > { %747 = vrot.lane.b32.xlu0 %v2926_v10, %s3785_s25  ;;  %3149 = vmatpush3.bf16.msra.mxu0 %v3980_v8  ;;  %v730_v23 = vsub.f32 1.0, %v719_v20  ;;  %v724_v26 = vmul.f32 %v4053_v25, %v719_v20  ;;  %v4085_v42 = vld [vmem:[%s4988_s3] sm:$0xff]   ;;  %v652_v45 = vld [vmem:[#allocation2 + $0x8] sm:$0xff]  ;;  %v836_v46 = vsub.f32 1.0, %v825_v43  ;;  %v656_v4 = vld [vmem:[#allocation2 + $0x10] sm:$0xff] }
  0x48   : > { %3166 = vmatprep.subr.bf16.mxu0 %v3783_v7  ;;  %v4093_v44 = vld [vmem:[%s4994_s9 + $0x1] ss:$0 sm:$0xff]  ;;  %v4099_v48 = vld [vmem:[%s4994_s9 + $0x2] ss:$0 sm:$0xff]  ;;  %v4105_v51 = vld [vmem:[%s4990_s5] ss:$0 sm:$0xff] }
  0x49   : > { %3157 = vmatpush3.bf16.msra.mxu1 %v4001_v12  ;;  %v731_v27 = vmul.f32 %v730_v23, %v729_v24  ;;  %v835_v47 = vmul.f32 %v4093_v44, %v652_v45  ;;  %v830_v49 = vmul.f32 %v4099_v48, %v825_v43  ;;  %v4111_v55 = vld [vmem:[%s4994_s9] ss:$0 sm:$0xff]  ;;  %v4145_v0 = vld [vmem:[%s4989_s4 + $0x8] sm:$0xff]   ;;  %v4160_v3 = vld [vmem:[%s4995_s10 + $0x1] ss:$0 sm:$0xff]  ;;  %v941_v9 = vsub.f32 1.0, %v930_v2 }
  0x4a   : > { %3151 = vmatmul.mubr.msk.bf16.vlgmr.msra.gmra.mxu0 %vm674_vm4, %v650_v13  ;;  %3158 = vmatprep.subr.bf16.mxu1 %v3783_v7  ;;  %v4152_v1 = vld [vmem:[%s4989_s4] sm:$0xff]   ;;  %v940_v5 = vmul.f32 %v4160_v3, %v656_v4 }
  0x4b   : > { %3174 = vmatprep.mubr.msk.bf16.mxu0 %vm3784_vm3, %v3783_v7  ;;  %3167 = vmatpush3.bf16.msra.mxu0 %v4030_v17  ;;  %v732_v29 = vadd.f32 %v731_v27, %v724_v26  ;;  %v837_v50 = vmul.f32 %v836_v46, %v835_v47  ;;  %v4166_v10 = vld [vmem:[%s4995_s10 + $0x2] ss:$0 sm:$0xff]  ;;  %v4172_v16 = vld [vmem:[%s5019_s6] ss:$0 sm:$0xff] }
  0x4c   : > { %853 = vrot.lane.b32.xlu0 %v2937_v18, %s3785_s25  ;;  %3168 = vmatprep.subr.bf16.mxu0 %v3783_v7  ;;  %v935_v13 = vmul.f32 %v4166_v10, %v930_v2  ;;  %v942_v18 = vmul.f32 %v941_v9, %v940_v5  ;;  %v4181_v27 = vld [vmem:[%s4995_s10] ss:$0 sm:$0xff] }
  0x4d   : > { %3159 = vmatpush3.bf16.msra.mxu1 %v4014_v14  ;;  %v838_v52 = vadd.f32 %v837_v50, %v830_v49 }
  0x4e   : > { %3160 = vmatprep.subr.bf16.mxu1 %v3783_v7  ;;  %v943_v20 = vadd.f32 %v942_v18, %v935_v13 }
  0x4f   : > { %3169 = vmatpush3.bf16.msra.mxu0 %v4038_v19 }
  0x50   : > { %3170 = vmatprep.subr.bf16.mxu0 %v3783_v7 }
  0x51   : > { %3161 = vmatpush3.bf16.msra.mxu1 %v4021_v15 }
  0x52   : > { %3178 = vmatprep.subr.bf16.mxu1 %v3783_v7 }
  0x53   : > { %3171 = vmatpush3.bf16.msra.mxu0 %v4078_v41 }
  0x54   : > { %3172 = vmatprep.subr.bf16.mxu0 %v3783_v7 }
  0x57   : > { %3173 = vmatpush3.bf16.msra.mxu0 %v4085_v42 }
  0x58   : > { %3186 = vmatprep.subr.bf16.mxu0 %v3783_v7 }
  0xb9   : > { %v748_v38 = vpop.permute.xlu0 %747 }
  0xbe   : > { %v854_v60 = vpop.permute.xlu0 %853 }
 0x10a   : > { %v712_v30 = vpop.f32.mrf.mxu0 }
 0x10b   : > { %v718_v31 = vadd.f32 %v712_v30, %v661_v28 }
 0x10c   : > { %v3152_v33 = vpop.f32.mrf.mxu0 }
 0x10d   : > { %v4062_v34 = vadd.f32 %v732_v29, %v718_v31 }
 0x10e   : > { %v715_v35 = vpop.f32.mrf.mxu0 }
 0x10f   : > { %vm738_vm5 = vcmp.gt.f32.partialorder %v4062_v34, %v4060_v32  ;;  %v1094_v26 = vmul.f32 %v4047_v21, %v4062_v34 }
 0x110   : > { %v4067_v36 = vsel %vm738_vm5, 1.0, %v3783_v7  ;;  %v3153_v37 = vpop.f32.mrf.mxu0 }
 0x111   : > { %v741_v39 = vpack.c.bf16 %v4067_v36, %v4067_v36  ;;  %v1095_v23 = vsub.f32 1.0, %v4067_v36  ;;  %v2952_v37 = vld [vmem:[%s3945_s28 + $0x8] sm:$0xff] }
 0x113   : > { %v751_v40 = vsel %vm674_vm4, %v741_v39, %v748_v38  ;;  %v1096_v31 = vmul.f32 %v1095_v23, %v1094_v26  ;;  %v1093_v38 = vmul.f32 %v4067_v36, %v4053_v25 }
 0x114   : > { %3163 = vmatmul.mubr.msk.bf16.vlgmr.msra.gmra.mxu1 %vm782_vm6, %v751_v40 }
 0x115   : > { %3182 = vmatprep.mubr.msk.bf16.mxu1 %vm3784_vm3, %v3783_v7  ;;  %3179 = vmatpush3.bf16.msra.mxu1 %v4145_v0  ;;  %v1097_v45 = vadd.f32 %v1096_v31, %v1093_v38 }
 0x116   : > { %3180 = vmatprep.subr.bf16.mxu1 %v3783_v7 }
 0x119   : > { %3181 = vmatpush3.bf16.msra.mxu1 %v4152_v1 }
 0x11a   : > { %3194 = vmatprep.subr.bf16.mxu1 %v3783_v7 }
 0x1d4   : > { %v819_v53 = vpop.f32.mrf.mxu1 }
 0x1d5   : > { %v820_v54 = vadd.f32 %v4105_v51, %v819_v53 }
 0x1d6   : > { %v3164_v56 = vpop.f32.mrf.mxu1 }
 0x1d7   : > { %v4113_v57 = vadd.f32 %v838_v52, %v820_v54 }
 0x1d8   : > { %v822_v58 = vpop.f32.mrf.mxu1 }
 0x1d9   : > { %vm844_vm7 = vcmp.gt.f32.partialorder %v4113_v57, %v4111_v55 }
 0x1da   : > { %v3165_v59 = vpop.f32.mrf.mxu1  ;;  %v4118_v61 = vsel %vm844_vm7, 1.0, %v3783_v7 }
 0x1db   : > { %v847_v62 = vpack.c.bf16 %v4118_v61, %v4118_v61  ;;  %v1155_v23 = vsub.f32 1.0, %v4118_v61 }
 0x1dd   : > { %1106 = vrot.lane.b32.xlu1 %v847_v62, %s3785_s25  ;;  %v857_v63 = vsel %vm674_vm4, %v847_v62, %v854_v60 }
 0x1de   : > { %3175 = vmatmul.mubr.msk.bf16.vlgmr.msra.gmra.mxu0 %vm782_vm6, %v857_v63 }
 0x1df   : > { %3187 = vmatpush3.bf16.msra.mxu0 %v3972_v6  ;;  %3190 = vmatprep.mubr.msk.bf16.mxu0 %vm3784_vm3, %v3783_v7 }
 0x1e0   : > { %3188 = vmatprep.subr.bf16.mxu0 %v3783_v7 }
 0x1e3   : > { %3189 = vmatpush3.bf16.msra.mxu0 %v3980_v8 }
 0x1e4   : > { %3206 = vmatprep.subr.bf16.mxu0 %v3783_v7 }
 0x1e6   : > { %3191 = vmatmul.mubr.msk.bf16.vlgmr.msra.gmra.mxu0 %vm674_vm4, %v741_v39 }
 0x1e7   : > { %3207 = vmatpush3.bf16.msra.mxu0 %v4030_v17  ;;  %3214 = vmatprep.mubr.msk.bf16.mxu0 %vm3784_vm3, %v3783_v7 }
 0x1e8   : > { %3208 = vmatprep.subr.bf16.mxu0 %v3783_v7 }
 0x1eb   : > { %3209 = vmatpush3.bf16.msra.mxu0 %v4038_v19 }
 0x1ec   : > { %3210 = vmatprep.subr.bf16.mxu0 %v3783_v7 }
 0x1ef   : > { %3211 = vmatpush3.bf16.msra.mxu0 %v4078_v41 }
 0x1f0   : > { %3212 = vmatprep.subr.bf16.mxu0 %v3783_v7 }
 0x1f3   : > { %3213 = vmatpush3.bf16.msra.mxu0 %v4085_v42 }
 0x1f4   : > { %3226 = vmatprep.subr.bf16.mxu0 %v3783_v7 }
 0x24f   : > { %v1107_v5 = vpop.permute.xlu1 %1106 }
 0x29e   : > { %v924_v22 = vpop.f32.mrf.mxu0 }
 0x29f   : > { %v925_v24 = vadd.f32 %v4172_v16, %v924_v22 }
 0x2a0   : > { %v3176_v28 = vpop.f32.mrf.mxu0 }
 0x2a1   : > { %v944_v29 = vadd.f32 %v943_v20, %v925_v24  ;;  %v1154_v24 = vmul.f32 %v4093_v44, %v4113_v57  ;;  %v1153_v28 = vmul.f32 %v4118_v61, %v4099_v48 }
 0x2a2   : > { %v927_v30 = vpop.f32.mrf.mxu0 }
 0x2a3   : > { %vm949_vm8 = vcmp.gt.f32.partialorder %v944_v29, %v4181_v27  ;;  %v1215_v34 = vmul.f32 %v4160_v3, %v944_v29  ;;  %v1156_v26 = vmul.f32 %v1155_v23, %v1154_v24 }
 0x2a4   : > { %v2947_v33 = vsel %vm949_vm8, 1.0, %v3783_v7  ;;  %v3177_v35 = vpop.f32.mrf.mxu0 }
 0x2a5   : > { %v1216_v39 = vsub.f32 1.0, %v2947_v33  ;;  %v952_v40 = vpack.c.bf16 %v2947_v33, %v2947_v33  ;;  %v1214_v47 = vmul.f32 %v2947_v33, %v4166_v10  ;;  %v1157_v31 = vadd.f32 %v1156_v26, %v1153_v28 }
 0x2a6   : > { %v1086_v43 = vpop.f32.mrf.mxu0 }
 0x2a7   : > { %v1092_v46 = vadd.f32 %v2952_v37, %v1086_v43  ;;  %1166 = vrot.lane.b32.xlu1 %v952_v40, %s3785_s25  ;;  %3183 = vmatmul.mubr.msk.bf16.vlgmr.msra.gmra.mxu1 %vm674_vm4, %v952_v40  ;;  %v1217_v49 = vmul.f32 %v1216_v39, %v1215_v34 }
 0x2a8   : > { %3195 = vmatpush3.bf16.msra.mxu1 %v3992_v11  ;;  %v3192_v50 = vpop.f32.mrf.mxu0  ;;  %3202 = vmatprep.mubr.msk.bf16.mxu1 %vm3784_vm3, %v3783_v7 }
 0x2a9   : > { %v1098_v52 = vadd.f32 %v1097_v45, %v1092_v46  ;;  %3196 = vmatprep.subr.bf16.mxu1 %v3783_v7  ;;  %v4196_v53 = vadd.f32 %v1217_v49, %v1214_v47 }
 0x2aa   : > { %v1089_v54 = vpop.f32.mrf.mxu0 }
 0x2ab   : > { %vm1099_vm9 = vcmp.gt.f32.partialorder %v1098_v52, %v4060_v32  ;;  %v1334_v59 = vmul.f32 %v4047_v21, %v1098_v52 }
 0x2ac   : > { %v4200_v56 = vsel %vm1099_vm9, 1.0, %v3783_v7  ;;  %3197 = vmatpush3.bf16.msra.mxu1 %v4001_v12  ;;  %v3193_v58 = vpop.f32.mrf.mxu0 }
 0x2ad   : > { %3198 = vmatprep.subr.bf16.mxu1 %v3783_v7  ;;  %v1335_v60 = vsub.f32 1.0, %v4200_v56  ;;  %v1333_v62 = vmul.f32 %v4200_v56, %v4053_v25  ;;  %v1102_v4 = vpack.c.bf16 %v4200_v56, %v4200_v56 }
 0x2af   : > { %v1336_v63 = vmul.f32 %v1335_v60, %v1334_v59  ;;  %v1110_v9 = vsel %vm674_vm4, %v1102_v4, %v1107_v5 }
 0x2b0   : > { %3199 = vmatpush3.bf16.msra.mxu1 %v4014_v14 }
 0x2b1   : > { %3200 = vmatprep.subr.bf16.mxu1 %v3783_v7  ;;  %v4210_v2 = vadd.f32 %v1336_v63, %v1333_v62  ;;  %v2960_v63 = vld [vmem:[%s3945_s28 + $0x10] sm:$0xff] }
 0x2b4   : > { %3201 = vmatpush3.bf16.msra.mxu1 %v4021_v15 }
 0x2b5   : > { %3218 = vmatprep.subr.bf16.mxu1 %v3783_v7 }
 0x2b7   : > { %3203 = vmatmul.mubr.msk.bf16.vlgmr.msra.gmra.mxu1 %vm782_vm6, %v1110_v9 }
 0x2b8   : > { %3219 = vmatpush3.bf16.msra.mxu1 %v4145_v0  ;;  %3222 = vmatprep.mubr.msk.bf16.mxu1 %vm3784_vm3, %v3783_v7 }
 0x2b9   : > { %3220 = vmatprep.subr.bf16.mxu1 %v3783_v7 }
 0x2bc   : > { %3221 = vmatpush3.bf16.msra.mxu1 %v4152_v1 }
 0x2bd   : > { %3234 = vmatprep.subr.bf16.mxu1 %v3783_v7 }
 0x319   : > { %v1167_v43 = vpop.permute.xlu1 %1166 }
 0x367   : > { %v4224_v13 = vpop.f32.mrf.mxu1 }
 0x369   : > { %v3184_v18 = vpop.f32.mrf.mxu1 }
 0x36b   : > { %v1011_v20 = vpop.f32.mrf.mxu1 }
 0x36d   : > { %v3185_v22 = vpop.f32.mrf.mxu1 }
 0x377   : > { %v1147_v29 = vpop.f32.mrf.mxu1 }
 0x378   : > { %v1148_v30 = vadd.f32 %v4105_v51, %v1147_v29  ;;  %v1104_v29 = vadd.f32 %v4200_v56, %v4067_v36 }
 0x379   : > { %v3204_v33 = vpop.f32.mrf.mxu1 }
 0x37a   : > { %v1158_v35 = vadd.f32 %v1157_v31, %v1148_v30 }
 0x37b   : > { %v1150_v37 = vpop.f32.mrf.mxu1 }
 0x37c   : > { %vm1159_vm10 = vcmp.gt.f32.partialorder %v1158_v35, %v4111_v55  ;;  %v1394_v39 = vmul.f32 %v4093_v44, %v1158_v35 }
 0x37d   : > { %v4234_v38 = vsel %vm1159_vm10, 1.0, %v3783_v7  ;;  %v3205_v34 = vpop.f32.mrf.mxu1 }
 0x37e   : > { %v1162_v57 = vpack.c.bf16 %v4234_v38, %v4234_v38  ;;  %v1395_v40 = vsub.f32 1.0, %v4234_v38  ;;  %v1393_v46 = vmul.f32 %v4234_v38, %v4099_v48 }
 0x380   : > { %1346 = vrot.lane.b32.xlu0 %v1162_v57, %s3785_s25  ;;  %v1170_v45 = vsel %vm674_vm4, %v1162_v57, %v1167_v43  ;;  %v1396_v47 = vmul.f32 %v1395_v40, %v1394_v39 }
 0x381   : > { %3215 = vmatmul.mubr.msk.bf16.vlgmr.msra.gmra.mxu0 %vm782_vm6, %v1170_v45 }
 0x382   : > { %3227 = vmatpush3.bf16.msra.mxu0 %v3972_v6  ;;  %3230 = vmatprep.mubr.msk.bf16.mxu0 %vm3784_vm3, %v3783_v7  ;;  %v4248_v49 = vadd.f32 %v1396_v47, %v1393_v46 }
 0x383   : > { %3228 = vmatprep.subr.bf16.mxu0 %v3783_v7 }
 0x386   : > { %3229 = vmatpush3.bf16.msra.mxu0 %v3980_v8 }
 0x387   : > { %3246 = vmatprep.subr.bf16.mxu0 %v3783_v7 }
 0x389   : > { %3231 = vmatmul.mubr.msk.bf16.vlgmr.msra.gmra.mxu0 %vm674_vm4, %v1102_v4 }
 0x38a   : > { %3247 = vmatpush3.bf16.msra.mxu0 %v4030_v17  ;;  %3254 = vmatprep.mubr.msk.bf16.mxu0 %vm3784_vm3, %v3783_v7 }
 0x38b   : > { %3248 = vmatprep.subr.bf16.mxu0 %v3783_v7 }
 0x38e   : > { %3249 = vmatpush3.bf16.msra.mxu0 %v4038_v19 }
 0x38f   : > { %3250 = vmatprep.subr.bf16.mxu0 %v3783_v7 }
 0x392   : > { %3251 = vmatpush3.bf16.msra.mxu0 %v4078_v41 }
 0x393   : > { %3252 = vmatprep.subr.bf16.mxu0 %v3783_v7 }
 0x396   : > { %3253 = vmatpush3.bf16.msra.mxu0 %v4085_v42 }
 0x397   : > { %3266 = vmatprep.subr.bf16.mxu0 %v3783_v7 }
 0x3f2   : > { %v1347_v39 = vpop.permute.xlu0 %1346 }
 0x441   : > { %v1207_v50 = vpop.f32.mrf.mxu0 }
 0x442   : > { %v1208_v52 = vadd.f32 %v4172_v16, %v1207_v50 }
 0x443   : > { %v3216_v54 = vpop.f32.mrf.mxu0 }
 0x444   : > { %v1219_v58 = vadd.f32 %v4196_v53, %v1208_v52 }
 0x445   : > { %v1210_v59 = vpop.f32.mrf.mxu0 }
 0x446   : > { %vm1220_vm11 = vcmp.gt.f32.partialorder %v1219_v58, %v4181_v27  ;;  %v1455_v4 = vmul.f32 %v4160_v3, %v1219_v58  ;;  %v1164_v59 = vadd.f32 %v4234_v38, %v4118_v61 }
 0x447   : > { %v2958_v60 = vsel %vm1220_vm11, 1.0, %v3783_v7  ;;  %v3217_v62 = vpop.f32.mrf.mxu0 }
 0x448   : > { %v1456_v5 = vsub.f32 1.0, %v2958_v60  ;;  %v1223_v9 = vpack.c.bf16 %v2958_v60, %v2958_v60  ;;  %v1454_v22 = vmul.f32 %v2958_v60, %v4166_v10 }
 0x449   : > { %v1326_v18 = vpop.f32.mrf.mxu0 }
 0x44a   : > { %v1332_v20 = vadd.f32 %v2960_v63, %v1326_v18  ;;  %1406 = vrot.lane.b32.xlu1 %v1223_v9, %s3785_s25  ;;  %3223 = vmatmul.mubr.msk.bf16.vlgmr.msra.gmra.mxu1 %vm674_vm4, %v1223_v9  ;;  %v1457_v53 = vmul.f32 %v1456_v5, %v1455_v4 }
 0x44b   : > { %3235 = vmatpush3.bf16.msra.mxu1 %v3992_v11  ;;  %v3232_v23 = vpop.f32.mrf.mxu0  ;;  %3242 = vmatprep.mubr.msk.bf16.mxu1 %vm3784_vm3, %v3783_v7 }
 0x44c   : > { %v1338_v24 = vadd.f32 %v4210_v2, %v1332_v20  ;;  %3236 = vmatprep.subr.bf16.mxu1 %v3783_v7  ;;  %v4278_v26 = vadd.f32 %v1457_v53, %v1454_v22 }
 0x44d   : > { %v1329_v28 = vpop.f32.mrf.mxu0 }
 0x44e   : > { %vm1339_vm12 = vcmp.gt.f32.partialorder %v1338_v24, %v4060_v32  ;;  %v1574_v35 = vmul.f32 %v4047_v21, %v1338_v24 }
 0x44f   : > { %v2962_v30 = vsel %vm1339_vm12, 1.0, %v3783_v7  ;;  %3237 = vmatpush3.bf16.msra.mxu1 %v4001_v12  ;;  %v3233_v31 = vpop.f32.mrf.mxu0 }
 0x450   : > { %v4285_v33 = vadd.f32 %v2962_v30, %v1104_v29  ;;  %3238 = vmatprep.subr.bf16.mxu1 %v3783_v7  ;;  %v1575_v2 = vsub.f32 1.0, %v2962_v30  ;;  %v1573_v37 = vmul.f32 %v2962_v30, %v4053_v25  ;;  %v1342_v56 = vpack.c.bf16 %v2962_v30, %v2962_v30  ;;  %v2968_v31 = vld [vmem:[%s3945_s28 + $0x18] sm:$0xff] }
 0x452   : > { %v1576_v34 = vmul.f32 %v1575_v2, %v1574_v35  ;;  %v1350_v57 = vsel %vm674_vm4, %v1342_v56, %v1347_v39 }
 0x453   : > { %3239 = vmatpush3.bf16.msra.mxu1 %v4014_v14 }
 0x454   : > { %3240 = vmatprep.subr.bf16.mxu1 %v3783_v7  ;;  %v4292_v36 = vadd.f32 %v1576_v34, %v1573_v37 }
 0x457   : > { %3241 = vmatpush3.bf16.msra.mxu1 %v4021_v15 }
 0x458   : > { %3258 = vmatprep.subr.bf16.mxu1 %v3783_v7 }
 0x45a   : > { %3243 = vmatmul.mubr.msk.bf16.vlgmr.msra.gmra.mxu1 %vm782_vm6, %v1350_v57 }
 0x45b   : > { %3259 = vmatpush3.bf16.msra.mxu1 %v4145_v0  ;;  %3262 = vmatprep.mubr.msk.bf16.mxu1 %vm3784_vm3, %v3783_v7 }
 0x45c   : > { %3260 = vmatprep.subr.bf16.mxu1 %v3783_v7 }
 0x45f   : > { %3261 = vmatpush3.bf16.msra.mxu1 %v4152_v1 }
 0x460   : > { %3274 = vmatprep.subr.bf16.mxu1 %v3783_v7 }
 0x4bc   : > { %v1407_v18 = vpop.permute.xlu1 %1406 }
 0x50a   : > { %v4304_v40 = vpop.f32.mrf.mxu1 }
 0x50c   : > { %v3224_v43 = vpop.f32.mrf.mxu1 }
 0x50e   : > { %v1264_v45 = vpop.f32.mrf.mxu1 }
 0x510   : > { %v3225_v46 = vpop.f32.mrf.mxu1 }
 0x51a   : > { %v1387_v47 = vpop.f32.mrf.mxu1 }
 0x51b   : > { %v1388_v50 = vadd.f32 %v4105_v51, %v1387_v47 }
 0x51c   : > { %v3244_v52 = vpop.f32.mrf.mxu1 }
 0x51d   : > { %v1398_v54 = vadd.f32 %v4248_v49, %v1388_v50 }
 0x51e   : > { %v1390_v58 = vpop.f32.mrf.mxu1 }
 0x51f   : > { %vm1399_vm13 = vcmp.gt.f32.partialorder %v1398_v54, %v4111_v55  ;;  %v1634_v4 = vmul.f32 %v4093_v44, %v1398_v54 }
 0x520   : > { %v2964_v60 = vsel %vm1399_vm13, 1.0, %v3783_v7  ;;  %v3245_v62 = vpop.f32.mrf.mxu1  ;;  %vm1029_vm13 = vcmask 130048  }
 0x521   : > { %v4312_v63 = vadd.f32 %v2964_v60, %v1164_v59  ;;  %v1402_v5 = vpack.c.bf16 %v2964_v60, %v2964_v60  ;;  %v1635_v9 = vsub.f32 1.0, %v2964_v60  ;;  %v1633_v20 = vmul.f32 %v2964_v60, %v4099_v48 }
 0x523   : > { %1586 = vrot.lane.b32.xlu0 %v1402_v5, %s3785_s25  ;;  %v1410_v49 = vsel %vm674_vm4, %v1402_v5, %v1407_v18  ;;  %v1636_v22 = vmul.f32 %v1635_v9, %v1634_v4 }
 0x524   : > { %3255 = vmatmul.mubr.msk.bf16.vlgmr.msra.gmra.mxu0 %vm782_vm6, %v1410_v49 }
 0x525   : > { %3267 = vmatpush3.bf16.msra.mxu0 %v3972_v6  ;;  %3270 = vmatprep.mubr.msk.bf16.mxu0 %vm3784_vm3, %v3783_v7  ;;  %v4322_v61 = vadd.f32 %v1636_v22, %v1633_v20 }
 0x526   : > { %3268 = vmatprep.subr.bf16.mxu0 %v3783_v7 }
 0x529   : > { %3269 = vmatpush3.bf16.msra.mxu0 %v3980_v8 }
 0x52a   : > { %3286 = vmatprep.subr.bf16.mxu0 %v3783_v7 }
 0x52c   : > { %3271 = vmatmul.mubr.msk.bf16.vlgmr.msra.gmra.mxu0 %vm674_vm4, %v1342_v56 }
 0x52d   : > { %3287 = vmatpush3.bf16.msra.mxu0 %v4030_v17  ;;  %3294 = vmatprep.mubr.msk.bf16.mxu0 %vm3784_vm3, %v3783_v7 }
 0x52e   : > { %3288 = vmatprep.subr.bf16.mxu0 %v3783_v7 }
 0x531   : > { %3289 = vmatpush3.bf16.msra.mxu0 %v4038_v19 }
 0x532   : > { %3290 = vmatprep.subr.bf16.mxu0 %v3783_v7 }
 0x535   : > { %3291 = vmatpush3.bf16.msra.mxu0 %v4078_v41 }
 0x536   : > { %3292 = vmatprep.subr.bf16.mxu0 %v3783_v7 }
 0x539   : > { %3293 = vmatpush3.bf16.msra.mxu0 %v4085_v42 }
 0x53a   : > { %3306 = vmatprep.subr.bf16.mxu0 %v3783_v7 }
 0x595   : > { %v1587_v4 = vpop.permute.xlu0 %1586 }
 0x5e4   : > { %v1447_v38 = vpop.f32.mrf.mxu0 }
 0x5e5   : > { %v1448_v53 = vadd.f32 %v4172_v16, %v1447_v38 }
 0x5e6   : > { %v3256_v23 = vpop.f32.mrf.mxu0 }
 0x5e7   : > { %v1459_v24 = vadd.f32 %v4278_v26, %v1448_v53 }
 0x5e8   : > { %v1450_v28 = vpop.f32.mrf.mxu0 }
 0x5e9   : > { %vm1460_vm14 = vcmp.gt.f32.partialorder %v1459_v24, %v4181_v27  ;;  %v1695_v35 = vmul.f32 %v4160_v3, %v1459_v24 }
 0x5ea   : > { %v2966_v29 = vsel %vm1460_vm14, 1.0, %v3783_v7  ;;  %v3257_v30 = vpop.f32.mrf.mxu0 }
 0x5eb   : > { %v1696_v2 = vsub.f32 1.0, %v2966_v29  ;;  %v1463_v37 = vpack.c.bf16 %v2966_v29, %v2966_v29  ;;  %v1694_v39 = vmul.f32 %v2966_v29, %v4166_v10 }
 0x5ec   : > { %v1566_v34 = vpop.f32.mrf.mxu0 }
 0x5ed   : > { %v1572_v56 = vadd.f32 %v2968_v31, %v1566_v34  ;;  %1646 = vrot.lane.b32.xlu1 %v1463_v37, %s3785_s25  ;;  %3263 = vmatmul.mubr.msk.bf16.vlgmr.msra.gmra.mxu1 %vm674_vm4, %v1463_v37  ;;  %v1697_v26 = vmul.f32 %v1696_v2, %v1695_v35 }
 0x5ee   : > { %3275 = vmatpush3.bf16.msra.mxu1 %v3992_v11  ;;  %v3272_v57 = vpop.f32.mrf.mxu0  ;;  %3282 = vmatprep.mubr.msk.bf16.mxu1 %vm3784_vm3, %v3783_v7 }
 0x5ef   : > { %v1578_v43 = vadd.f32 %v4292_v36, %v1572_v56  ;;  %3276 = vmatprep.subr.bf16.mxu1 %v3783_v7  ;;  %v4352_v45 = vadd.f32 %v1697_v26, %v1694_v39 }
 0x5f0   : > { %v1569_v46 = vpop.f32.mrf.mxu0 }
 0x5f1   : > { %vm1579_vm15 = vcmp.gt.f32.partialorder %v1578_v43, %v4060_v32  ;;  %v1814_v54 = vmul.f32 %v4047_v21, %v1578_v43 }
 0x5f2   : > { %v2970_v47 = vsel %vm1579_vm15, 1.0, %v3783_v7  ;;  %3277 = vmatpush3.bf16.msra.mxu1 %v4001_v12  ;;  %v3273_v50 = vpop.f32.mrf.mxu0 }
 0x5f3   : > { %v4358_v52 = vadd.f32 %v2970_v47, %v4285_v33  ;;  %3278 = vmatprep.subr.bf16.mxu1 %v3783_v7  ;;  %v1815_v36 = vsub.f32 1.0, %v2970_v47  ;;  %v1813_v58 = vmul.f32 %v2970_v47, %v4053_v25  ;;  %v1582_v62 = vpack.c.bf16 %v2970_v47, %v2970_v47  ;;  %v2976_v50 = vld [vmem:[%s3945_s28 + $0x20] sm:$0xff] }
 0x5f5   : > { %v1816_v59 = vmul.f32 %v1815_v36, %v1814_v54  ;;  %v1590_v33 = vsel %vm674_vm4, %v1582_v62, %v1587_v4 }
 0x5f6   : > { %3279 = vmatpush3.bf16.msra.mxu1 %v4014_v14 }
 0x5f7   : > { %3280 = vmatprep.subr.bf16.mxu1 %v3783_v7  ;;  %v4365_v60 = vadd.f32 %v1816_v59, %v1813_v58 }
 0x5fa   : > { %3281 = vmatpush3.bf16.msra.mxu1 %v4021_v15 }
 0x5fb   : > { %3298 = vmatprep.subr.bf16.mxu1 %v3783_v7 }
 0x5fd   : > { %3283 = vmatmul.mubr.msk.bf16.vlgmr.msra.gmra.mxu1 %vm782_vm6, %v1590_v33 }
 0x5fe   : > { %3299 = vmatpush3.bf16.msra.mxu1 %v4145_v0  ;;  %3302 = vmatprep.mubr.msk.bf16.mxu1 %vm3784_vm3, %v3783_v7 }
 0x5ff   : > { %3300 = vmatprep.subr.bf16.mxu1 %v3783_v7 }
 0x602   : > { %3301 = vmatpush3.bf16.msra.mxu1 %v4152_v1 }
 0x603   : > { %3314 = vmatprep.subr.bf16.mxu1 %v3783_v7 }
 0x65f   : > { %v1647_v2 = vpop.permute.xlu1 %1646 }
 0x6ad   : > { %v4377_v5 = vpop.f32.mrf.mxu1 }
 0x6af   : > { %v3264_v9 = vpop.f32.mrf.mxu1 }
 0x6b1   : > { %v1504_v18 = vpop.f32.mrf.mxu1 }
 0x6b3   : > { %v3265_v49 = vpop.f32.mrf.mxu1 }
 0x6bd   : > { %v1627_v20 = vpop.f32.mrf.mxu1 }
 0x6be   : > { %v1628_v22 = vadd.f32 %v4105_v51, %v1627_v20 }
 0x6bf   : > { %v3284_v38 = vpop.f32.mrf.mxu1 }
 0x6c0   : > { %v1638_v53 = vadd.f32 %v4322_v61, %v1628_v22 }
 0x6c1   : > { %v1630_v23 = vpop.f32.mrf.mxu1 }
 0x6c2   : > { %vm1639_vm0 = vcmp.gt.f32.partialorder %v1638_v53, %v4111_v55  ;;  %v1874_v30 = vmul.f32 %v4093_v44, %v1638_v53 }
 0x6c3   : > { %v2972_v24 = vsel %vm1639_vm0, 1.0, %v3783_v7  ;;  %v3285_v28 = vpop.f32.mrf.mxu1  ;;  %vm2728_vm0 = vcmask 257024  }
 0x6c4   : > { %v4384_v29 = vadd.f32 %v2972_v24, %v4312_v63  ;;  %v1642_v31 = vpack.c.bf16 %v2972_v24, %v2972_v24  ;;  %v1875_v35 = vsub.f32 1.0, %v2972_v24  ;;  %v1873_v61 = vmul.f32 %v2972_v24, %v4099_v48 }
 0x6c6   : > { %1826 = vrot.lane.b32.xlu0 %v1642_v31, %s3785_s25  ;;  %v1650_v37 = vsel %vm674_vm4, %v1642_v31, %v1647_v2  ;;  %v1876_v34 = vmul.f32 %v1875_v35, %v1874_v30 }
 0x6c7   : > { %3295 = vmatmul.mubr.msk.bf16.vlgmr.msra.gmra.mxu0 %vm782_vm6, %v1650_v37 }
 0x6c8   : > { %3307 = vmatpush3.bf16.msra.mxu0 %v3972_v6  ;;  %3310 = vmatprep.mubr.msk.bf16.mxu0 %vm3784_vm3, %v3783_v7  ;;  %v4394_v63 = vadd.f32 %v1876_v34, %v1873_v61 }
 0x6c9   : > { %3308 = vmatprep.subr.bf16.mxu0 %v3783_v7 }
 0x6cc   : > { %3309 = vmatpush3.bf16.msra.mxu0 %v3980_v8 }
 0x6cd   : > { %3326 = vmatprep.subr.bf16.mxu0 %v3783_v7 }
 0x6cf   : > { %3311 = vmatmul.mubr.msk.bf16.vlgmr.msra.gmra.mxu0 %vm674_vm4, %v1582_v62 }
 0x6d0   : > { %3327 = vmatpush3.bf16.msra.mxu0 %v4030_v17  ;;  %3334 = vmatprep.mubr.msk.bf16.mxu0 %vm3784_vm3, %v3783_v7 }
 0x6d1   : > { %3328 = vmatprep.subr.bf16.mxu0 %v3783_v7 }
 0x6d4   : > { %3329 = vmatpush3.bf16.msra.mxu0 %v4038_v19 }
 0x6d5   : > { %3330 = vmatprep.subr.bf16.mxu0 %v3783_v7 }
 0x6d8   : > { %3331 = vmatpush3.bf16.msra.mxu0 %v4078_v41 }
 0x6d9   : > { %3332 = vmatprep.subr.bf16.mxu0 %v3783_v7 }
 0x6dc   : > { %3333 = vmatpush3.bf16.msra.mxu0 %v4085_v42 }
 0x6dd   : > { %3346 = vmatprep.subr.bf16.mxu0 %v3783_v7 }
 0x787   : > { %v1687_v56 = vpop.f32.mrf.mxu0 }
 0x788   : > { %v1688_v39 = vadd.f32 %v4172_v16, %v1687_v56 }
 0x789   : > { %v3296_v26 = vpop.f32.mrf.mxu0 }
 0x78a   : > { %v1699_v57 = vadd.f32 %v4352_v45, %v1688_v39 }
 0x78b   : > { %v1690_v43 = vpop.f32.mrf.mxu0 }
 0x78c   : > { %vm1700_vm1 = vcmp.gt.f32.partialorder %v1699_v57, %v4181_v27  ;;  %v1935_v54 = vmul.f32 %v4160_v3, %v1699_v57 }
 0x78d   : > { %v2974_v46 = vsel %vm1700_vm1, 1.0, %v3783_v7  ;;  %v3297_v47 = vpop.f32.mrf.mxu0 }
 0x78e   : > { %v1936_v36 = vsub.f32 1.0, %v2974_v46  ;;  %v1703_v58 = vpack.c.bf16 %v2974_v46, %v2974_v46  ;;  %v1934_v4 = vmul.f32 %v2974_v46, %v4166_v10 }
 0x78f   : > { %v1806_v59 = vpop.f32.mrf.mxu0 }
 0x790   : > { %v1812_v62 = vadd.f32 %v2976_v50, %v1806_v59  ;;  %1886 = vrot.lane.b32.xlu1 %v1703_v58, %s3785_s25  ;;  %3303 = vmatmul.mubr.msk.bf16.vlgmr.msra.gmra.mxu1 %vm674_vm4, %v1703_v58  ;;  %v1937_v45 = vmul.f32 %v1936_v36, %v1935_v54 }
 0x791   : > { %3315 = vmatpush3.bf16.msra.mxu1 %v3992_v11  ;;  %v3312_v33 = vpop.f32.mrf.mxu0  ;;  %3322 = vmatprep.mubr.msk.bf16.mxu1 %vm3784_vm3, %v3783_v7 }
 0x792   : > { %v1818_v9 = vadd.f32 %v4365_v60, %v1812_v62  ;;  %3316 = vmatprep.subr.bf16.mxu1 %v3783_v7  ;;  %v4424_v18 = vadd.f32 %v1937_v45, %v1934_v4  ;;  %v2984_v33 = vld [vmem:[%s3945_s28 + $0x28] sm:$0xff] }
 0x793   : > { %v1809_v49 = vpop.f32.mrf.mxu0 }
 0x794   : > { %vm1819_vm2 = vcmp.gt.f32.partialorder %v1818_v9, %v4060_v32  ;;  %v2054_v53 = vmul.f32 %v4047_v21, %v1818_v9 }
 0x795   : > { %v2978_v20 = vsel %vm1819_vm2, 1.0, %v3783_v7  ;;  %3317 = vmatpush3.bf16.msra.mxu1 %v4001_v12  ;;  %v3313_v22 = vpop.f32.mrf.mxu0  ;;  %v1827_v12 = vpop.permute.xlu0 %1826 }
 0x796   : > { %v4430_v38 = vadd.f32 %v2978_v20, %v4358_v52  ;;  %3318 = vmatprep.subr.bf16.mxu1 %v3783_v7  ;;  %v2055_v60 = vsub.f32 1.0, %v2978_v20  ;;  %v2053_v23 = vmul.f32 %v2978_v20, %v4053_v25  ;;  %v1822_v30 = vpack.c.bf16 %v2978_v20, %v2978_v20 }
 0x798   : > { %v2056_v24 = vmul.f32 %v2055_v60, %v2054_v53  ;;  %v1830_v52 = vsel %vm674_vm4, %v1822_v30, %v1827_v12 }
 0x799   : > { %3319 = vmatpush3.bf16.msra.mxu1 %v4014_v14 }
 0x79a   : > { %3320 = vmatprep.subr.bf16.mxu1 %v3783_v7  ;;  %v4437_v28 = vadd.f32 %v2056_v24, %v2053_v23 }
 0x79d   : > { %3321 = vmatpush3.bf16.msra.mxu1 %v4021_v15 }
 0x79e   : > { %3338 = vmatprep.subr.bf16.mxu1 %v3783_v7 }
 0x7a0   : > { %3323 = vmatmul.mubr.msk.bf16.vlgmr.msra.gmra.mxu1 %vm782_vm6, %v1830_v52 }
 0x7a1   : > { %3339 = vmatpush3.bf16.msra.mxu1 %v4145_v0  ;;  %3342 = vmatprep.mubr.msk.bf16.mxu1 %vm3784_vm3, %v3783_v7 }
 0x7a2   : > { %3340 = vmatprep.subr.bf16.mxu1 %v3783_v7 }
 0x7a5   : > { %3341 = vmatpush3.bf16.msra.mxu1 %v4152_v1 }
 0x7a6   : > { %3354 = vmatprep.subr.bf16.mxu1 %v3783_v7 }
 0x802   : > { %v1887_v36 = vpop.permute.xlu1 %1886 }
 0x850   : > { %v4449_v31 = vpop.f32.mrf.mxu1 }
 0x852   : > { %v3304_v35 = vpop.f32.mrf.mxu1 }
 0x853   : > { %v4503_v35 = vld [vmem:[%s4987_s2 + $0x10] sm:$0xff]  }
 0x854   : > { %v1744_v2 = vpop.f32.mrf.mxu1 }
 0x856   : > { %v3305_v37 = vpop.f32.mrf.mxu1 }
 0x860   : > { %v1867_v61 = vpop.f32.mrf.mxu1 }
 0x861   : > { %v1868_v34 = vadd.f32 %v4105_v51, %v1867_v61 }
 0x862   : > { %v3324_v56 = vpop.f32.mrf.mxu1 }
 0x863   : > { %v1878_v39 = vadd.f32 %v4394_v63, %v1868_v34 }
 0x864   : > { %v1870_v26 = vpop.f32.mrf.mxu1 }
 0x865   : > { %vm1879_vm5 = vcmp.gt.f32.partialorder %v1878_v39, %v4111_v55  ;;  %v2114_v47 = vmul.f32 %v4093_v44, %v1878_v39 }
 0x866   : > { %v2980_v57 = vsel %vm1879_vm5, 1.0, %v3783_v7  ;;  %v3325_v43 = vpop.f32.mrf.mxu1 }
 0x867   : > { %v4456_v46 = vadd.f32 %v2980_v57, %v4384_v29  ;;  %v1882_v50 = vpack.c.bf16 %v2980_v57, %v2980_v57  ;;  %v2115_v54 = vsub.f32 1.0, %v2980_v57  ;;  %v2113_v63 = vmul.f32 %v2980_v57, %v4099_v48 }
 0x869   : > { %2066 = vrot.lane.b32.xlu0 %v1882_v50, %s3785_s25  ;;  %v1890_v58 = vsel %vm674_vm4, %v1882_v50, %v1887_v36  ;;  %v2116_v59 = vmul.f32 %v2115_v54, %v2114_v47 }
 0x86a   : > { %3335 = vmatmul.mubr.msk.bf16.vlgmr.msra.gmra.mxu0 %vm782_vm6, %v1890_v58 }
 0x86b   : > { %3347 = vmatpush3.bf16.msra.mxu0 %v3972_v6  ;;  %3350 = vmatprep.mubr.msk.bf16.mxu0 %vm3784_vm3, %v3783_v7  ;;  %v4466_v29 = vadd.f32 %v2116_v59, %v2113_v63 }
 0x86c   : > { %3348 = vmatprep.subr.bf16.mxu0 %v3783_v7 }
 0x86f   : > { %3349 = vmatpush3.bf16.msra.mxu0 %v3980_v8 }
 0x870   : > { %3366 = vmatprep.subr.bf16.mxu0 %v3783_v7 }
 0x872   : > { %3351 = vmatmul.mubr.msk.bf16.vlgmr.msra.gmra.mxu0 %vm674_vm4, %v1822_v30 }
 0x873   : > { %3367 = vmatpush3.bf16.msra.mxu0 %v4030_v17  ;;  %3374 = vmatprep.mubr.msk.bf16.mxu0 %vm3784_vm3, %v3783_v7 }
 0x874   : > { %3368 = vmatprep.subr.bf16.mxu0 %v3783_v7 }
 0x877   : > { %3369 = vmatpush3.bf16.msra.mxu0 %v4038_v19 }
 0x878   : > { %3370 = vmatprep.subr.bf16.mxu0 %v3783_v7 }
 0x87b   : > { %3371 = vmatpush3.bf16.msra.mxu0 %v4078_v41 }
 0x87c   : > { %3372 = vmatprep.subr.bf16.mxu0 %v3783_v7 }
 0x87f   : > { %3373 = vmatpush3.bf16.msra.mxu0 %v4085_v42 }
 0x880   : > { %3386 = vmatprep.subr.bf16.mxu0 %v3783_v7 }
 0x8db   : > { %v2067_v39 = vpop.permute.xlu0 %2066 }
 0x92a   : > { %v1927_v6 = vpop.f32.mrf.mxu0 }
 0x92b   : > { %v1928_v8 = vadd.f32 %v4172_v16, %v1927_v6 }
 0x92c   : > { %v3336_v17 = vpop.f32.mrf.mxu0 }
 0x92d   : > { %v1939_v62 = vadd.f32 %v4424_v18, %v1928_v8 }
 0x92e   : > { %v1930_v4 = vpop.f32.mrf.mxu0 }
 0x92f   : > { %vm1940_vm7 = vcmp.gt.f32.partialorder %v1939_v62, %v4181_v27  ;;  %v2175_v9 = vmul.f32 %v4160_v3, %v1939_v62  ;;  %v4571_v62 = vld [vmem:[%s4988_s3 + $0x10] sm:$0xff]  }
 0x930   : > { %v2982_v19 = vsel %vm1940_vm7, 1.0, %v3783_v7  ;;  %v3337_v45 = vpop.f32.mrf.mxu0 }
 0x931   : > { %v2176_v49 = vsub.f32 1.0, %v2982_v19  ;;  %v1943_v20 = vpack.c.bf16 %v2982_v19, %v2982_v19  ;;  %v2174_v60 = vmul.f32 %v2982_v19, %v4166_v10 }
 0x932   : > { %v2046_v22 = vpop.f32.mrf.mxu0 }
 0x933   : > { %v2052_v53 = vadd.f32 %v2984_v33, %v2046_v22  ;;  %2126 = vrot.lane.b32.xlu1 %v1943_v20, %s3785_s25  ;;  %3343 = vmatmul.mubr.msk.bf16.vlgmr.msra.gmra.mxu1 %vm674_vm4, %v1943_v20  ;;  %v2177_v18 = vmul.f32 %v2176_v49, %v2175_v9  ;;  %v2992_v22 = vld [vmem:[%s3945_s28 + $0x30] sm:$0xff] }
 0x934   : > { %3355 = vmatpush3.bf16.msra.mxu1 %v3992_v11  ;;  %v3352_v23 = vpop.f32.mrf.mxu0  ;;  %3362 = vmatprep.mubr.msk.bf16.mxu1 %vm3784_vm3, %v3783_v7 }
 0x935   : > { %v2058_v24 = vadd.f32 %v4437_v28, %v2052_v53  ;;  %3356 = vmatprep.subr.bf16.mxu1 %v3783_v7  ;;  %v4496_v30 = vadd.f32 %v2177_v18, %v2174_v60 }
 0x936   : > { %v2049_v12 = vpop.f32.mrf.mxu0 }
 0x937   : > { %vm2059_vm8 = vcmp.gt.f32.partialorder %v2058_v24, %v4060_v32  ;;  %v2294_v28 = vmul.f32 %v4047_v21, %v2058_v24 }
 0x938   : > { %v2986_v52 = vsel %vm2059_vm8, 1.0, %v3783_v7  ;;  %3357 = vmatpush3.bf16.msra.mxu1 %v4503_v35  ;;  %v3353_v11 = vpop.f32.mrf.mxu0 }
 0x939   : > { %v4507_v2 = vadd.f32 %v2986_v52, %v4430_v38  ;;  %3358 = vmatprep.subr.bf16.mxu1 %v3783_v7  ;;  %v2295_v37 = vsub.f32 1.0, %v2986_v52  ;;  %v2293_v32 = vmul.f32 %v2986_v52, %v4053_v25  ;;  %v2062_v56 = vpack.c.bf16 %v2986_v52, %v2986_v52 }
 0x93b   : > { %v2296_v61 = vmul.f32 %v2295_v37, %v2294_v28  ;;  %v2070_v21 = vsel %vm674_vm4, %v2062_v56, %v2067_v39  ;;  %v3602_v28 = vld [vmem:[%s4993_s8 + $0x1] ss:$0 sm:$0xff] }
 0x93c   : > { %3359 = vmatpush3.bf16.msra.mxu1 %v4014_v14 }
 0x93d   : > { %3360 = vmatprep.subr.bf16.mxu1 %v3783_v7  ;;  %v4514_v34 = vadd.f32 %v2296_v61, %v2293_v32 }
 0x940   : > { %3361 = vmatpush3.bf16.msra.mxu1 %v4021_v15 }
 0x941   : > { %3378 = vmatprep.subr.bf16.mxu1 %v3783_v7 }
 0x943   : > { %3363 = vmatmul.mubr.msk.bf16.vlgmr.msra.gmra.mxu1 %vm782_vm6, %v2070_v21  ;;  %v4621_v21 = vld [vmem:[%s4987_s2 + $0x8] sm:$0xff]  }
 0x944   : > { %3379 = vmatpush3.bf16.msra.mxu1 %v4145_v0  ;;  %3382 = vmatprep.mubr.msk.bf16.mxu1 %vm3784_vm3, %v3783_v7 }
 0x945   : > { %3380 = vmatprep.subr.bf16.mxu1 %v3783_v7 }
 0x948   : > { %3381 = vmatpush3.bf16.msra.mxu1 %v4152_v1 }
 0x949   : > { %3394 = vmatprep.subr.bf16.mxu1 %v3783_v7 }
 0x9a5   : > { %v2127_v8 = vpop.permute.xlu1 %2126 }
 0x9f3   : > { %v4526_v14 = vpop.f32.mrf.mxu1 }
 0x9f5   : > { %v3344_v15 = vpop.f32.mrf.mxu1 }
 0x9f7   : > { %v1984_v25 = vpop.f32.mrf.mxu1 }
 0x9f8   : > { %v4630_v25 = vld [vmem:[%s4987_s2] sm:$0xff]  }
 0x9f9   : > { %v3345_v38 = vpop.f32.mrf.mxu1 }
 0xa03   : > { %v2107_v26 = vpop.f32.mrf.mxu1 }
 0xa04   : > { %v2108_v57 = vadd.f32 %v4105_v51, %v2107_v26 }
 0xa05   : > { %v3364_v43 = vpop.f32.mrf.mxu1 }
 0xa06   : > { %v2118_v47 = vadd.f32 %v4466_v29, %v2108_v57 }
 0xa07   : > { %v2110_v50 = vpop.f32.mrf.mxu1 }
 0xa08   : > { %vm2119_vm9 = vcmp.gt.f32.partialorder %v2118_v47, %v4111_v55  ;;  %v2354_v63 = vmul.f32 %v4093_v44, %v2118_v47  ;;  %v4543_v55 = vld [vmem:[%s4986_s1 + $0x8] sm:$0xff]  }
 0xa09   : > { %v2988_v54 = vsel %vm2119_vm9, 1.0, %v3783_v7  ;;  %v3365_v36 = vpop.f32.mrf.mxu1 }
 0xa0a   : > { %v4533_v58 = vadd.f32 %v2988_v54, %v4456_v46  ;;  %v2122_v59 = vpack.c.bf16 %v2988_v54, %v2988_v54  ;;  %v2355_v6 = vsub.f32 1.0, %v2988_v54  ;;  %v2353_v29 = vmul.f32 %v2988_v54, %v4099_v48  ;;  %v4554_v48 = vld [vmem:[%s4986_s1] sm:$0xff]   ;;  %v4562_v46 = vld [vmem:[%s4988_s3 + $0x18] sm:$0xff]  }
 0xa0b   : > { %v1015_v54 = vlaneseq }
 0xa0c   : > { %2306 = vrot.lane.b32.xlu0 %v2122_v59, %s3785_s25  ;;  %v2130_v51 = vsel %vm674_vm4, %v2122_v59, %v2127_v8  ;;  %v2356_v17 = vmul.f32 %v2355_v6, %v2354_v63  ;;  %v4650_v59 = vld [vmem:[%s4990_s5] ss:$0 sm:$0xff] }
 0xa0d   : > { %3375 = vmatmul.mubr.msk.bf16.vlgmr.msra.gmra.mxu0 %vm782_vm6, %v2130_v51  ;;  %v1016_v36 = vshrl.u32 %v1015_v54, 7 }
 0xa0e   : > { %3387 = vmatpush3.bf16.msra.mxu0 %v4543_v55  ;;  %3390 = vmatprep.mubr.msk.bf16.mxu0 %vm3784_vm3, %v3783_v7  ;;  %v4548_v44 = vadd.f32 %v2356_v17, %v2353_v29 }
 0xa0f   : > { %3388 = vmatprep.subr.bf16.mxu0 %v3783_v7  ;;  %v1017_v29 = vsub.s32 0, %v1016_v36 }
 0xa12   : > { %3389 = vmatpush3.bf16.msra.mxu0 %v4554_v48 }
 0xa13   : > { %3406 = vmatprep.subr.bf16.mxu0 %v3783_v7 }
 0xa15   : > { %3391 = vmatmul.mubr.msk.bf16.vlgmr.msra.gmra.mxu0 %vm674_vm4, %v2062_v56 }
 0xa16   : > { %3407 = vmatpush3.bf16.msra.mxu0 %v4562_v46  ;;  %3414 = vmatprep.mubr.msk.bf16.mxu0 %vm3784_vm3, %v3783_v7 }
 0xa17   : > { %3408 = vmatprep.subr.bf16.mxu0 %v3783_v7 }
 0xa1a   : > { %3409 = vmatpush3.bf16.msra.mxu0 %v4571_v62 }
 0xa1b   : > { %3410 = vmatprep.subr.bf16.mxu0 %v3783_v7 }
 0xa1e   : > { %3411 = vmatpush3.bf16.msra.mxu0 %v4078_v41 }
 0xa1f   : > { %3412 = vmatprep.subr.bf16.mxu0 %v3783_v7 }
 0xa22   : > { %3413 = vmatpush3.bf16.msra.mxu0 %v4085_v42 }
 0xa23   : > { %3426 = vmatprep.subr.bf16.mxu0 %v3783_v7 }
 0xa7e   : > { %v2307_v38 = vpop.permute.xlu0 %2306 }
 0xacd   : > { %v2167_v4 = vpop.f32.mrf.mxu0 }
 0xace   : > { %v2168_v19 = vadd.f32 %v4172_v16, %v2167_v4  ;;  %v4657_v4 = vld [vmem:[%s4994_s9] ss:$0 sm:$0xff] }
 0xacf   : > { %v3376_v45 = vpop.f32.mrf.mxu0 }
 0xad0   : > { %v2179_v33 = vadd.f32 %v4496_v30, %v2168_v19  ;;  %v4663_v19 = vld [vmem:[%s5021_s20] ss:$0 sm:$0xff] }
 0xad1   : > { %v2170_v9 = vpop.f32.mrf.mxu0 }
 0xad2   : > { %vm2180_vm10 = vcmp.gt.f32.partialorder %v2179_v33, %v4181_v27  ;;  %v2415_v41 = vmul.f32 %v4160_v3, %v2179_v33  ;;  %v4591_v27 = vld [vmem:[%s4987_s2 + $0x18] sm:$0xff]  }
 0xad3   : > { %v2990_v49 = vsel %vm2180_vm10, 1.0, %v3783_v7  ;;  %v3377_v20 = vpop.f32.mrf.mxu0 }
 0xad4   : > { %v2416_v53 = vsub.f32 1.0, %v2990_v49  ;;  %v2183_v60 = vpack.c.bf16 %v2990_v49, %v2990_v49  ;;  %v2414_v16 = vmul.f32 %v2990_v49, %v4166_v10  ;;  %v4603_v10 = vld [vmem:[%s4993_s8] ss:$0 sm:$0xff] }
 0xad5   : > { %v2286_v42 = vpop.f32.mrf.mxu0 }
 0xad6   : > { %v2292_v18 = vadd.f32 %v2992_v22, %v2286_v42  ;;  %2366 = vrot.lane.b32.xlu1 %v2183_v60, %s3785_s25  ;;  %3383 = vmatmul.mubr.msk.bf16.vlgmr.msra.gmra.mxu1 %vm674_vm4, %v2183_v60  ;;  %v2417_v23 = vmul.f32 %v2416_v53, %v2415_v41  ;;  %v1009_v42 = vadd.f32 %v4663_v19, %v4224_v13 }
 0xad7   : > { %3395 = vmatpush3.bf16.msra.mxu1 %v4591_v27  ;;  %v3392_v24 = vpop.f32.mrf.mxu0  ;;  %3402 = vmatprep.mubr.msk.bf16.mxu1 %vm3784_vm3, %v3783_v7 }
 0xad8   : > { %v2298_v3 = vadd.f32 %v4514_v34, %v2292_v18  ;;  %3396 = vmatprep.subr.bf16.mxu1 %v3783_v7  ;;  %v4598_v30 = vadd.f32 %v2417_v23, %v2414_v16  ;;  %v3603_v34 = vld [vmem:[%s4993_s8 + $0x2] ss:$0 sm:$0xff]  ;;  %v659_v24 = vld [vmem:[#allocation4] sm:$0xff] }
 0xad9   : > { %v2289_v12 = vpop.f32.mrf.mxu0  ;;  %v3609_v16 = vld [vmem:[%s4994_s9 + $0x2] ss:$0 sm:$0xff] }
 0xada   : > { %vm2299_vm11 = vcmp.gt.f32.partialorder %v2298_v3, %v4603_v10  ;;  %v2534_v37 = vmul.f32 %v3602_v28, %v2298_v3 }
 0xadb   : > { %v2994_v52 = vsel %vm2299_vm11, 1.0, %v3783_v7  ;;  %3397 = vmatpush3.bf16.msra.mxu1 %v4503_v35  ;;  %v3393_v11 = vpop.f32.mrf.mxu0 }
 0xadc   : > { %3398 = vmatprep.subr.bf16.mxu1 %v3783_v7  ;;  %v4613_v32 = vadd.f32 %v2994_v52, %v4507_v2  ;;  %v2535_v61 = vsub.f32 1.0, %v2994_v52  ;;  %v2533_v56 = vmul.f32 %v3603_v34, %v2994_v52  ;;  %v2302_v2 = vpack.c.bf16 %v2994_v52, %v2994_v52  ;;  %v3610_v34 = vld [vmem:[%s4988_s3 + $0x8] sm:$0xff]  }
 0xadd   : > { %v1262_v52 = vadd.f32 %v4663_v19, %v4304_v40 }
 0xade   : > { %v2536_v39 = vmul.f32 %v2535_v61, %v2534_v37  ;;  %v2310_v26 = vsel %vm674_vm4, %v2302_v2, %v2307_v38  ;;  %v1742_v61 = vadd.f32 %v4663_v19, %v4449_v31  ;;  %v1982_v31 = vadd.f32 %v4663_v19, %v4526_v14 }
 0xadf   : > { %3399 = vmatpush3.bf16.msra.mxu1 %v4621_v21 }
 0xae0   : > { %3400 = vmatprep.subr.bf16.mxu1 %v3783_v7  ;;  %v4625_v15 = vadd.f32 %v2536_v39, %v2533_v56  ;;  %v3611_v56 = vld [vmem:[%s4988_s3] sm:$0xff]  }
 0xae3   : > { %3401 = vmatpush3.bf16.msra.mxu1 %v4630_v25 }
 0xae4   : > { %3418 = vmatprep.subr.bf16.mxu1 %v3783_v7 }
 0xae6   : > { %3403 = vmatmul.mubr.msk.bf16.vlgmr.msra.gmra.mxu1 %vm782_vm6, %v2310_v26 }
 0xae7   : > { %3419 = vmatpush3.bf16.msra.mxu1 %v4145_v0  ;;  %3422 = vmatprep.mubr.msk.bf16.mxu1 %vm3784_vm3, %v3783_v7  ;;  %v620_v0 = vld [vmem:[%s5020_s14] sm:$0x1]  ;;  %s4881_s14 = sshll.u32 %s3768_s24, 3 }
 0xae8   : > { %3420 = vmatprep.subr.bf16.mxu1 %v3783_v7  ;;  %v621_v51 = vsub.f32 1.0, %v620_v0  ;;  %v4672_v41 = vrot.slane %v620_v0, %v1017_v29  ;;  %s1047_s15 = sadd.s32 1, %s4881_s14  ;;  %p1041_p7 = scmp.gt.s32.totalorder %s4881_s14, 10 }
 0xae9   : > { %p1281_p9 = scmp.gt.s32.totalorder %s1047_s15, 10  ;;  %s1287_s11 = sadd.s32 2, %s4881_s14 }
 0xaea   : > { %v4674_v53 = vrot.slane %v621_v51, %v1017_v29  ;;  %v1020_v13 = vmul.f32 %v4672_v41, %v659_v24  ;;  %s1042_s16 = scalar_select %p1041_p7, 1, 0 }
 0xaeb   : > { %3421 = vmatpush3.bf16.msra.mxu1 %v4152_v1  ;;  %s1282_s27 = scalar_select %p1281_p9, 1, 0 }
 0xaec   : > { %3434 = vmatprep.subr.bf16.mxu1 %v3783_v7  ;;  %v1027_v12 = vmul.f32 %v4674_v53, %v1009_v42  ;;  %v1988_v38 = vmul.f32 %v1982_v31, %v4674_v53  ;;  %s1527_s30 = sadd.s32 3, %s4881_s14  ;;  %p4887_p10 = scmp.gt.s32.totalorder %s1287_s11, 10 }
 0xaed   : > { %s1283_s20 = scvt.s32.f32 %s1282_s27  ;;  %p4891_p11 = scmp.gt.s32.totalorder %s1527_s30, 10 }
 0xaee   : > { %v4696_v11 = vadd.f32 %v1027_v12, %v1020_v13  ;;  %s1043_s17 = scvt.s32.f32 %s1042_s16  ;;  %s2007_s29 = sadd.s32 5, %s4881_s14 }
 0xaef   : > { %s1522_s0 = scalar_select %p4887_p10, 1, 0 }
 0xaf0   : > { %v1267_v40 = vmul.f32 %v4696_v11, %v4672_v41  ;;  %p4906_p13 = scmp.gt.s32.totalorder %s2007_s29, 10  ;;  %s2247_s30 = sadd.s32 6, %s4881_s14 }
 0xaf1   : > { %s1523_s7 = scvt.s32.f32 %s1522_s0  ;;  %p4918_p0 = scmp.gt.s32.totalorder %s2247_s30, 10 }
 0xaf2   : > { %s2242_s19 = scalar_select %p4906_p13, 1, 0 }
 0xaf4   : > { %s2243_s0 = scvt.s32.f32 %s2242_s19 }
 0xb48   : > { %v2367_v60 = vpop.permute.xlu1 %2366 }
 0xb96   : > { %v4642_v57 = vpop.f32.mrf.mxu1 }
 0xb98   : > { %v3384_v43 = vpop.f32.mrf.mxu1 }
 0xb99   : > { %v2222_v43 = vadd.f32 %v4663_v19, %v4642_v57 }
 0xb9a   : > { %v2224_v47 = vpop.f32.mrf.mxu1 }
 0xb9b   : > { %v1030_v47 = vsel %vm1029_vm13, %v4696_v11, -inf  ;;  %v2228_v54 = vmul.f32 %v2222_v43, %v4674_v53 }
 0xb9c   : > { %v3385_v50 = vpop.f32.mrf.mxu1 }
 0xba6   : > { %v2347_v63 = vpop.f32.mrf.mxu1 }
 0xba7   : > { %v2348_v1 = vadd.f32 %v4650_v59, %v2347_v63 }
 0xba8   : > { %v3404_v6 = vpop.f32.mrf.mxu1 }
 0xba9   : > { %v2358_v8 = vadd.f32 %v4548_v44, %v2348_v1  ;;  %v3608_v44 = vld [vmem:[%s4994_s9 + $0x1] ss:$0 sm:$0xff]  ;;  %v4756_v6 = vld [vmem:[%s5019_s6] ss:$0 sm:$0xff] }
 0xbaa   : > { %v2350_v17 = vpop.f32.mrf.mxu1 }
 0xbab   : > { %vm2359_vm12 = vcmp.gt.f32.partialorder %v2358_v8, %v4657_v4  ;;  %v2594_v9 = vmul.f32 %v3608_v44, %v2358_v8 }
 0xbac   : > { %v2996_v45 = vsel %vm2359_vm12, 1.0, %v3783_v7  ;;  %v3405_v33 = vpop.f32.mrf.mxu1 }
 0xbad   : > { %v2362_v49 = vpack.c.bf16 %v2996_v45, %v2996_v45  ;;  %v4670_v20 = vadd.f32 %v2996_v45, %v4533_v58  ;;  %v2595_v22 = vsub.f32 1.0, %v2996_v45  ;;  %v2593_v23 = vmul.f32 %v3609_v16, %v2996_v45  ;;  %v4763_v45 = vld [vmem:[%s4995_s10] ss:$0 sm:$0xff]  ;;  %v3615_v16 = vld [vmem:[%s4995_s10 + $0x2] ss:$0 sm:$0xff] }
 0xbaf   : > { %2546 = vrot.lane.b32.xlu0 %v2362_v49, %s3785_s25  ;;  %v2370_v18 = vsel %vm674_vm4, %v2362_v49, %v2367_v60  ;;  %v2596_v58 = vmul.f32 %v2595_v22, %v2594_v9  ;;  %v3000_v9 = vld [vmem:[%s3945_s28 + $0x38] sm:$0xff]  ;;  %v3614_v49 = vld [vmem:[%s4995_s10 + $0x1] ss:$0 sm:$0xff]  ;;  %s1767_s28 = sadd.s32 4, %s4881_s14 }
 0xbb0   : > { %3415 = vmatmul.mubr.msk.bf16.vlgmr.msra.gmra.mxu0 %vm782_vm6, %v2370_v18  ;;  %p4902_p12 = scmp.gt.s32.totalorder %s1767_s28, 10 }
 0xbb1   : > { %3427 = vmatpush3.bf16.msra.mxu0 %v4543_v55  ;;  %3430 = vmatprep.mubr.msk.bf16.mxu0 %vm3784_vm3, %v3783_v7  ;;  %v4687_v3 = vadd.f32 %v2596_v58, %v2593_v23  ;;  %v1268_v55 = vmul.f32 %v1262_v52, %v4674_v53  ;;  %s2482_s28 = scalar_select %p4918_p0, 1, 0 }
 0xbb2   : > { %3428 = vmatprep.subr.bf16.mxu0 %v3783_v7  ;;  %s2002_s27 = scalar_select %p4902_p12, 1, 0 }
 0xbb3   : > { %v4708_v28 = vadd.f32 %v1268_v55, %v1267_v40  ;;  %v2735_v40 = vld [vmem:[#allocation9] sm:$0xff] }
 0xbb4   : > { %s2003_s21 = scvt.s32.f32 %s2002_s27 }
 0xbb5   : > { %3429 = vmatpush3.bf16.msra.mxu0 %v4554_v48  ;;  %v1502_v48 = vadd.f32 %v4663_v19, %v4377_v5 }
 0xbb6   : > { %3446 = vmatprep.subr.bf16.mxu0 %v3783_v7 }
 0xbb7   : > { %v1508_v37 = vmul.f32 %v1502_v48, %v4674_v53 }
 0xbb8   : > { %3431 = vmatmul.mubr.msk.bf16.vlgmr.msra.gmra.mxu0 %vm674_vm4, %v2302_v2 }
 0xbb9   : > { %3447 = vmatpush3.bf16.msra.mxu0 %v4562_v46  ;;  %3454 = vmatprep.mubr.msk.bf16.mxu0 %vm3784_vm3, %v3783_v7  ;;  %v1507_v46 = vmul.f32 %v4708_v28, %v4672_v41 }
 0xbba   : > { %3448 = vmatprep.subr.bf16.mxu0 %v3783_v7 }
 0xbbb   : > { %v4721_v5 = vadd.f32 %v1508_v37, %v1507_v46 }
 0xbbd   : > { %3449 = vmatpush3.bf16.msra.mxu0 %v4571_v62  ;;  %v1748_v62 = vmul.f32 %v1742_v61, %v4674_v53  ;;  %v1747_v39 = vmul.f32 %v4721_v5, %v4672_v41  ;;  %v1510_v14 = vsel %vm1029_vm13, %v4721_v5, -inf }
 0xbbe   : > { %3450 = vmatprep.subr.bf16.mxu0 %v3783_v7 }
 0xbbf   : > { %v4731_v2 = vadd.f32 %v1748_v62, %v1747_v39 }
 0xbc1   : > { %3451 = vmatpush3.bf16.msra.mxu0 %v3610_v34  ;;  %v1987_v26 = vmul.f32 %v4731_v2, %v4672_v41  ;;  %v1750_v57 = vsel %vm1029_vm13, %v4731_v2, -inf }
 0xbc2   : > { %3452 = vmatprep.subr.bf16.mxu0 %v3783_v7 }
 0xbc3   : > { %v4740_v50 = vadd.f32 %v1988_v38, %v1987_v26 }
 0xbc5   : > { %3453 = vmatpush3.bf16.msra.mxu0 %v3611_v56  ;;  %v2227_v36 = vmul.f32 %v4740_v50, %v4672_v41  ;;  %v1990_v46 = vsel %vm1029_vm13, %v4740_v50, -inf }
 0xbc7   : > { %v4747_v63 = vadd.f32 %v2228_v54, %v2227_v36 }
 0xbc9   : > { %v2230_v0 = vsel %vm1029_vm13, %v4747_v63, -inf }
 0xbce   : > { %1031 = vmax.xlane.f32.xlu0 %v1030_v47 }
 0xbd2   : > { %1511 = vmax.xlane.f32.xlu0 %v1510_v14 }
 0xbd6   : > { %1751 = vmax.xlane.f32.xlu0 %v1750_v57 }
 0xbda   : > { %2231 = vmax.xlane.f32.xlu0 %v2230_v0  ;;  %v2467_v0 = vmul.f32 %v4747_v63, %v4672_v41 }
 0xc70   : > { %v2407_v1 = vpop.f32.mrf.mxu0 }
 0xc71   : > { %v2408_v8 = vadd.f32 %v4756_v6, %v2407_v1 }
 0xc72   : > { %v3416_v51 = vpop.f32.mrf.mxu0 }
 0xc73   : > { %v2419_v29 = vadd.f32 %v4598_v30, %v2408_v8 }
 0xc74   : > { %v2410_v17 = vpop.f32.mrf.mxu0 }
 0xc75   : > { %vm2420_vm14 = vcmp.gt.f32.partialorder %v2419_v29, %v4763_v45  ;;  %v2655_v22 = vmul.f32 %v3614_v49, %v2419_v29 }
 0xc76   : > { %v2998_v33 = vsel %vm2420_vm14, 1.0, %v3783_v7  ;;  %v3417_v44 = vpop.f32.mrf.mxu0 }
 0xc77   : > { %v2656_v60 = vsub.f32 1.0, %v2998_v33  ;;  %v2423_v42 = vpack.c.bf16 %v2998_v33, %v2998_v33  ;;  %v2654_v23 = vmul.f32 %v3615_v16, %v2998_v33  ;;  %v2738_v16 = vld [vmem:[#allocation11] sm:$0xff] }
 0xc78   : > { %v2526_v30 = vpop.f32.mrf.mxu0 }
 0xc79   : > { %v2532_v18 = vadd.f32 %v3000_v9, %v2526_v30  ;;  %2606 = vrot.lane.b32.xlu1 %v2423_v42, %s3785_s25  ;;  %3423 = vmatmul.mubr.msk.bf16.vlgmr.msra.gmra.mxu1 %vm674_vm4, %v2423_v42  ;;  %v2657_v58 = vmul.f32 %v2656_v60, %v2655_v22  ;;  %s1762_s25 = scalar_select %p4891_p11, 1, 0 }
 0xc7a   : > { %3435 = vmatpush3.bf16.msra.mxu1 %v4591_v27  ;;  %v3432_v24 = vpop.f32.mrf.mxu0  ;;  %3442 = vmatprep.mubr.msk.bf16.mxu1 %vm3784_vm3, %v3783_v7 }
 0xc7b   : > { %v2538_v13 = vadd.f32 %v4625_v15, %v2532_v18  ;;  %3436 = vmatprep.subr.bf16.mxu1 %v3783_v7  ;;  %v4781_v12 = vadd.f32 %v2657_v58, %v2654_v23  ;;  %s1763_s16 = scvt.s32.f32 %s1762_s25  ;;  %s2483_s25 = scvt.s32.f32 %s2482_s28 }
 0xc7c   : > { %v2529_v52 = vpop.f32.mrf.mxu0 }
 0xc7d   : > { %vm2539_vm15 = vcmp.gt.f32.partialorder %v2538_v13, %v4603_v10  ;;  %2727 = vst.msk [vmem:[#allocation2] sm:$0xff] %vm674_vm4, %v2538_v13  ;;  %v2547_v10 = vpop.permute.xlu0 %2546 }
 0xc7e   : > { %v3002_v55 = vsel %vm2539_vm15, 1.0, %v3783_v7  ;;  %3437 = vmatpush3.bf16.msra.mxu1 %v4503_v35  ;;  %v3433_v27 = vpop.f32.mrf.mxu0 }
 0xc7f   : > { %v2542_v48 = vpack.c.bf16 %v3002_v55, %v3002_v55  ;;  %v2544_v37 = vadd.f32 %v3002_v55, %v4613_v32  ;;  %3438 = vmatprep.subr.bf16.mxu1 %v3783_v7  ;;  %v3616_v32 = vld [vmem:[%s4989_s4 + $0x8] sm:$0xff]  }
 0xc81   : > { %2729 = vst.msk [vmem:[#allocation3] sm:$0xf] %vm2728_vm0, %v2542_v48  ;;  %v2736_v15 = vadd.f32 %v2735_v40, %v2544_v37  ;;  %v2550_v35 = vsel %vm674_vm4, %v2542_v48, %v2547_v10  ;;  %v1032_v61 = vpop.xlane.xlu0 %1031 }
 0xc82   : > { %3439 = vmatpush3.bf16.msra.mxu1 %v4621_v21  ;;  %v3617_v21 = vld [vmem:[%s4989_s4] sm:$0xff]   ;;  %v1033_v56 = vsub.f32 %v4696_v11, %v1032_v61 }
 0xc83   : > { %2737 = vst.msk [vmem:[#allocation9] sm:$0xff] %vm674_vm4, %v2736_v15  ;;  %3440 = vmatprep.subr.bf16.mxu1 %v3783_v7 }
 0xc84   : > { %v1034_v31 = vmul.f32 1.442695, %v1033_v56 }
 0xc85   : > { %v1512_v39 = vpop.xlane.xlu0 %1511 }
 0xc86   : > { %3441 = vmatpush3.bf16.msra.mxu1 %v4630_v25  ;;  %v1270_v25 = vsel %vm1029_vm13, %v4708_v28, -inf  ;;  %v1513_v38 = vsub.f32 %v4721_v5, %v1512_v39  ;;  %3563 = vpow2.f32 %v1034_v31 }
 0xc87   : > { %3458 = vmatprep.subr.bf16.mxu1 %v3783_v7 }
 0xc88   : > { %v1514_v43 = vmul.f32 1.442695, %v1513_v38 }
 0xc89   : > { %3443 = vmatmul.mubr.msk.bf16.vlgmr.msra.gmra.mxu1 %vm782_vm6, %v2550_v35 }
 0xc8a   : > { %3459 = vmatpush3.bf16.msra.mxu1 %v3616_v32  ;;  %3462 = vmatprep.mubr.msk.bf16.mxu1 %vm3784_vm3, %v3783_v7  ;;  %3565 = vpow2.f32 %v1514_v43 }
 0xc8b   : > { %3460 = vmatprep.subr.bf16.mxu1 %v3783_v7 }
 0xc8e   : > { %3461 = vmatpush3.bf16.msra.mxu1 %v3617_v21  ;;  %v1752_v21 = vpop.xlane.xlu0 %1751 }
 0xc9d   : > { %1271 = vmax.xlane.f32.xlu1 %v1270_v25  ;;  %v1753_v25 = vsub.f32 %v4731_v2, %v1752_v21 }
 0xc9f   : > { %v1754_v61 = vmul.f32 1.442695, %v1753_v25 }
 0xca1   : > { %1991 = vmax.xlane.f32.xlu1 %v1990_v46  ;;  %v2232_v46 = vpop.xlane.xlu0 %2231 }
 0xceb   : > { %v2607_v34 = vpop.permute.xlu1 %2606 }
 0xd26   : > { %v4810_v62 = vpop.xlane.xlu1 %1271 }
 0xd2a   : > { %v1992_v26 = vpop.xlane.xlu1 %1991 }
 0xd2b   : > { %v1993_v47 = vsub.f32 %v4740_v50, %v1992_v26  ;;  %v4823_v50 = vpop.eup %3563 }
 0xd2c   : > { %v1036_v29 = vsel %vm1029_vm13, %v4823_v50, 0.0  ;;  %v4827_v17 = vpop.eup %3565 }
 0xd2d   : > { %v1994_v54 = vmul.f32 1.442695, %v1993_v47  ;;  %v1516_v33 = vsel %vm1029_vm13, %v4827_v17, 0.0 }
 0xd2f   : > { %3567 = vpow2.f32 %v1994_v54 }
 0xd39   : > { %v2461_v14 = vpop.f32.mrf.mxu1 }
 0xd3a   : > { %v2462_v36 = vadd.f32 %v4663_v19, %v2461_v14 }
 0xd3b   : > { %v3424_v57 = vpop.f32.mrf.mxu1 }
 0xd3c   : > { %v2468_v11 = vmul.f32 %v2462_v36, %v4674_v53  ;;  %v4831_v44 = vpop.eup %3567 }
 0xd3d   : > { %v2464_v1 = vpop.f32.mrf.mxu1  ;;  %v1996_v42 = vsel %vm1029_vm13, %v4831_v44, 0.0 }
 0xd3e   : > { %v4819_v8 = vadd.f32 %v2468_v11, %v2467_v0 }
 0xd3f   : > { %v3425_v5 = vpop.f32.mrf.mxu1 }
 0xd40   : > { %v2470_v51 = vsel %vm1029_vm13, %v4819_v8, -inf  ;;  %v2707_v31 = vmul.f32 %v4819_v8, %v4672_v41 }
 0xd41   : > { %2471 = vmax.xlane.f32.xlu1 %v2470_v51 }
 0xd45   : > { %1037 = vadd.xlane.f32.xlu1 %v1036_v29 }
 0xd49   : > { %v2587_v9 = vpop.f32.mrf.mxu1  ;;  %1517 = vadd.xlane.f32.xlu1 %v1516_v33 }
 0xd4a   : > { %v2588_v49 = vadd.f32 %v4650_v59, %v2587_v9 }
 0xd4b   : > { %v3444_v22 = vpop.f32.mrf.mxu1 }
 0xd4c   : > { %v2598_v60 = vadd.f32 %v4687_v3, %v2588_v49  ;;  %v1284_v22 = vstv %s1283_s20  ;;  %s2487_s20 = sadd.s32 7, %s4881_s14 }
 0xd4d   : > { %v2590_v30 = vpop.f32.mrf.mxu1  ;;  %1997 = vadd.xlane.f32.xlu1 %v1996_v42  ;;  %p2721_p1 = scmp.gt.s32.totalorder %s2487_s20, 10 }
 0xd4e   : > { %vm2599_vm3 = vcmp.gt.f32.partialorder %v2598_v60, %v4657_v4  ;;  %2730 = vst.msk [vmem:[#allocation2 + $0x8] sm:$0xff] %vm674_vm4, %v2598_v60  ;;  %v1044_v30 = vstv %s1043_s17 }
 0xd4f   : > { %v3004_v18 = vsel %vm2599_vm3, 1.0, %v3783_v7  ;;  %v3445_v23 = vpop.f32.mrf.mxu1  ;;  %s2722_s14 = scalar_select %p2721_p1, 1, 0 }
 0xd50   : > { %v2602_v58 = vpack.c.bf16 %v3004_v18, %v3004_v18  ;;  %v2604_v24 = vadd.f32 %v3004_v18, %v4670_v20 }
 0xd51   : > { %s2723_s29 = scvt.s32.f32 %s2722_s14 }
 0xd52   : > { %2731 = vst.msk [vmem:[#allocation3 + $0x4] sm:$0xf] %vm2728_vm0, %v2602_v58  ;;  %v2739_v59 = vadd.f32 %v2738_v16, %v2604_v24  ;;  %v2610_v3 = vsel %vm674_vm4, %v2602_v58, %v2607_v34  ;;  %v1524_v24 = vstv %s1523_s7 }
 0xd53   : > { %3455 = vmatmul.mubr.msk.bf16.vlgmr.msra.gmra.mxu0 %vm782_vm6, %v2610_v3 }
 0xd54   : > { %2740 = vst.msk [vmem:[#allocation11] sm:$0xff] %vm674_vm4, %v2739_v59 }
 0xdca   : > { %v2472_v13 = vpop.xlane.xlu1 %2471 }
 0xdcb   : > { %v2473_v4 = vsub.f32 %v4819_v8, %v2472_v13  ;;  %v1764_v13 = vstv %s1763_s16 }
 0xdcd   : > { %v2474_v52 = vmul.f32 1.442695, %v2473_v4 }
 0xdce   : > { %v1038_v11 = vpop.xlane.xlu1 %1037 }
 0xdcf   : > { %3569 = vpow2.f32 %v2474_v52 }
 0xdd2   : > { %v1518_v8 = vpop.xlane.xlu1 %1517 }
 0xdd6   : > { %v1998_v51 = vpop.xlane.xlu1 %1997 }
 0xddc   : > { %v4846_v55 = vpop.eup %3569 }
 0xddd   : > { %v2476_v40 = vsel %vm1029_vm13, %v4846_v55, 0.0 }
 0xdde   : > { %2477 = vadd.xlane.f32.xlu1 %v2476_v40 }
 0xe13   : > { %v2647_v20 = vpop.f32.mrf.mxu0 }
 0xe14   : > { %v2648_v27 = vadd.f32 %v4756_v6, %v2647_v20  ;;  %v1273_v6 = vsub.f32 %v4708_v28, %v4810_v62 }
 0xe15   : > { %v3456_v48 = vpop.f32.mrf.mxu0 }
 0xe16   : > { %v2659_v37 = vadd.f32 %v4781_v12, %v2648_v27  ;;  %v1274_v12 = vmul.f32 1.442695, %v1273_v6 }
 0xe17   : > { %v2650_v15 = vpop.f32.mrf.mxu0 }
 0xe18   : > { %vm2660_vm6 = vcmp.gt.f32.partialorder %v2659_v37, %v4763_v45  ;;  %2732 = vst.msk [vmem:[#allocation2 + $0x10] sm:$0xff] %vm674_vm4, %v2659_v37  ;;  %v2233_v45 = vsub.f32 %v4747_v63, %v2232_v46  ;;  %3571 = vpow2.f32 %v1274_v12  ;;  %v2004_v37 = vstv %s2003_s21 }
 0xe19   : > { %v3006_v10 = vsel %vm2660_vm6, 1.0, %v3783_v7  ;;  %v3457_v35 = vpop.f32.mrf.mxu0  ;;  %3573 = vpow2.f32 %v1754_v61  ;;  %v2484_v46 = vstv %s2483_s25 }
 0xe1a   : > { %v2663_v32 = vpack.c.bf16 %v3006_v10, %v3006_v10  ;;  %v2234_v7 = vmul.f32 1.442695, %v2233_v45  ;;  %v2244_v35 = vstv %s2243_s0 }
 0xe1c   : > { %2733 = vst.msk [vmem:[#allocation3 + $0x8] sm:$0xf] %vm2728_vm0, %v2663_v32  ;;  %3463 = vmatmul.mubr.msk.bf16.vlgmr.msra.gmra.mxu1 %vm674_vm4, %v2663_v32  ;;  %3575 = vpow2.f32 %v2234_v7 }
 0xe25   : > { %v3572_v26 = vpop.eup %3571 }
 0xe26   : > { %v1276_v43 = vsel %vm1029_vm13, %v3572_v26, 0.0  ;;  %v4868_v47 = vpop.eup %3573 }
 0xe29   : > { %v4872_v41 = vpop.eup %3575 }
 0xe67   : > { %v2478_v18 = vpop.xlane.xlu1 %2477 }
 0xedc   : > { %v2701_v34 = vpop.f32.mrf.mxu1 }
 0xedd   : > { %v2702_v56 = vadd.f32 %v4663_v19, %v2701_v34  ;;  %v1756_v19 = vsel %vm1029_vm13, %v4868_v47, 0.0 }
 0xede   : > { %v3464_v39 = vpop.f32.mrf.mxu1 }
 0xedf   : > { %v2708_v28 = vmul.f32 %v2702_v56, %v4674_v53  ;;  %v2236_v53 = vsel %vm1029_vm13, %v4872_v41, 0.0 }
 0xee0   : > { %v2704_v62 = vpop.f32.mrf.mxu1 }
 0xee1   : > { %v2709_v2 = vadd.f32 %v2708_v28, %v2707_v31  ;;  %v2741_v31 = vld [vmem:[#allocation8] sm:$0xff] }
 0xee2   : > { %v3465_v38 = vpop.f32.mrf.mxu1 }
 0xee3   : > { %2734 = vst.msk [vmem:[#allocation4] sm:$0xff] %vm1029_vm13, %v2709_v2  ;;  %v2710_v63 = vsel %vm1029_vm13, %v2709_v2, -inf }
 0xee4   : > { %2711 = vmax.xlane.f32.xlu0 %v2710_v63 }
 0xee8   : > { %1277 = vadd.xlane.f32.xlu0 %v1276_v43 }
 0xeec   : > { %1757 = vadd.xlane.f32.xlu0 %v1756_v19 }
 0xef0   : > { %2237 = vadd.xlane.f32.xlu0 %v2236_v53 }
 0xf6d   : > { %v2712_v54 = vpop.xlane.xlu0 %2711 }
 0xf6e   : > { %v2713_v14 = vsub.f32 %v2709_v2, %v2712_v54 }
 0xf70   : > { %v2714_v36 = vmul.f32 1.442695, %v2713_v14 }
 0xf71   : > { %v1278_v1 = vpop.xlane.xlu0 %1277 }
 0xf72   : > { %3577 = vpow2.f32 %v2714_v36 }
 0xf73   : > { %3579 = vrcp.f32 %v1278_v1 }
 0xf74   : > { %3581 = vrcp.f32 %v1038_v11 }
 0xf75   : > { %v1758_v5 = vpop.xlane.xlu0 %1757  ;;  %3583 = vrcp.f32 %v1518_v8 }
 0xf76   : > { %3585 = vrcp.f32 %v1758_v5 }
 0xf77   : > { %3587 = vrcp.f32 %v1998_v51 }
 0xf79   : > { %v2238_v33 = vpop.xlane.xlu0 %2237 }
 0xf7a   : > { %3589 = vrcp.f32 %v2238_v33 }
 0xf7b   : > { %3591 = vrcp.f32 %v2478_v18 }
 0xf7f   : > { %v4876_v57 = vpop.eup %3577 }
 0xf80   : > { %v2716_v0 = vsel %vm1029_vm13, %v4876_v57, 0.0  ;;  %v3580_v29 = vpop.eup %3579 }
 0xf81   : > { %2717 = vadd.xlane.f32.xlu0 %v2716_v0  ;;  %v3582_v9 = vpop.eup %3581  ;;  %v1280_v49 = vmul.f32 %v3580_v29, %v3572_v26 }
 0xf82   : > { %v1040_v60 = vmul.f32 %v3582_v9, %v4823_v50  ;;  %v3584_v42 = vpop.eup %3583 }
 0xf83   : > { %v1285_v16 = vmul.f32 %v1284_v22, %v1280_v49  ;;  %v3586_v23 = vpop.eup %3585  ;;  %v1520_v58 = vmul.f32 %v3584_v42, %v4827_v17 }
 0xf84   : > { %v1045_v50 = vmul.f32 %v1044_v30, %v1040_v60  ;;  %v1760_v3 = vmul.f32 %v3586_v23, %v4868_v47  ;;  %v3588_v52 = vpop.eup %3587 }
 0xf85   : > { %v1525_v4 = vmul.f32 %v1524_v24, %v1520_v58  ;;  %v2000_v48 = vmul.f32 %v3588_v52, %v4831_v44  ;;  %v2724_v44 = vstv %s2723_s29 }
 0xf86   : > { %v1286_v59 = vadd.f32 %v1285_v16, %v1045_v50  ;;  %v1765_v20 = vmul.f32 %v1764_v13, %v1760_v3 }
 0xf87   : > { %v3590_v27 = vpop.eup %3589  ;;  %v2005_v32 = vmul.f32 %v2004_v37, %v2000_v48 }
 0xf88   : > { %v1526_v40 = vadd.f32 %v1525_v4, %v1286_v59  ;;  %v2240_v10 = vmul.f32 %v3590_v27, %v4872_v41  ;;  %v3592_v21 = vpop.eup %3591 }
 0xf89   : > { %v2480_v12 = vmul.f32 %v3592_v21, %v4846_v55 }
 0xf8a   : > { %v1766_v15 = vadd.f32 %v1765_v20, %v1526_v40  ;;  %v2245_v25 = vmul.f32 %v2244_v35, %v2240_v10 }
 0xf8b   : > { %v2485_v7 = vmul.f32 %v2484_v46, %v2480_v12 }
 0xf8c   : > { %v2006_v6 = vadd.f32 %v2005_v32, %v1766_v15 }
 0xf8e   : > { %v2246_v61 = vadd.f32 %v2245_v25, %v2006_v6 }
 0xf90   : > { %v2486_v56 = vadd.f32 %v2485_v7, %v2246_v61 }
0x100a   : > { %v2718_v17 = vpop.xlane.xlu0 %2717 }
0x100b   : > { %3593 = vrcp.f32 %v2718_v17 }
0x1018   : > { %v3594_v45 = vpop.eup %3593 }
0x1019   : > { %v2720_v34 = vmul.f32 %v3594_v45, %v4876_v57 }
0x101b   : > { %v2725_v39 = vmul.f32 %v2724_v44, %v2720_v34 }
0x101d   : > { %v2726_v28 = vadd.f32 %v2725_v39, %v2486_v56  ;;  %2747 = sbr.rel (%p3008_p2) target bundleno = 4134 (0x1026), region = 88 }
0x101f   : > { %v2742_v62 = vadd.f32 %v2741_v31, %v2726_v28 }
0x1021   : > { %2743 = vst.msk [vmem:[#allocation8] sm:$0xff] %vm1029_vm13, %v2742_v62 }
0x1022   : > { %v2748_v2 = vld [vmem:[#allocation9] sm:$0xff]  ;;  %v2751_v38 = vld [vmem:[#allocation11] sm:$0xff] }
0x1023   : > { %v2749_v55 = vmul.f32 0.041666668, %v2748_v2  ;;  %v2752_v63 = vmul.f32 0.041666668, %v2751_v38 }
0x1025   : > { %2750 = vst.msk [vmem:[#allocation9] sm:$0xff] %vm674_vm4, %v2749_v55  ;;  %2753 = vst.msk [vmem:[#allocation11] sm:$0xff] %vm674_vm4, %v2752_v63 }
0x1026 PF: > { %s5027_s7 = sadd.s32 4294967295, %s3776_s26   ;;  %s3786_s16 = smov [#allocation9]  }
0x1027   : > { %p4934_p3 = scmp.eq.s32.totalorder %s5027_s7, 2  ;;  %s2776_s11 = sshll.u32 %s3786_s16, 4  ;;  %s2777_s11 = int_to_ptr.vmem [resolvable:$true] %s2776_s11 }
0x1028   : > { %s3646_s24 = scalar_lea.vmem %s2777_s11, 128  ;;  %p3653_p8 = scmp.lt.s32.totalorder %s2777_s11, %s2777_s11 }
0x1029   : > { %p3647_p4 = scmp.ne.s32.totalorder %s2777_s11, %s3646_s24  ;;  %p3654_p7 = scmp.lt.s32.totalorder %s3646_s24, %s3646_s24 }
0x102b   : > { %p3648_p5 = pnand %p3647_p4, %p4934_p3  ;;  %p3655_p9 = por %p3654_p7, %p3653_p8 }
0x102d   : > { %p3649_p6 = pneg %p3648_p5 }
0x102f   : > { %p3656_p10 = pnand %p3655_p9, %p3649_p6 }
0x1031   : > { %3659 = shalt.err (!%p3656_p10)
}
0x1032   : > { %s5029_s19 = sld [smem:[#allocation22_spill]]  ;;  %s3787_s20 = smov [#allocation8]  }
0x1033   : > { %s2763_s21 = sshll.u32 %s3787_s20, 4  ;;  %s3788_s17 = smov [#allocation11]   ;;  %s2764_s21 = int_to_ptr.vmem [resolvable:$true] %s2763_s21 }
0x1034   : > { %s2789_s0 = sshll.u32 %s3788_s17, 4  ;;  %s3670_s28 = scalar_lea.vmem %s2764_s21, 128  ;;  %s2790_s0 = int_to_ptr.vmem [resolvable:$true] %s2789_s0 }
0x1035   : > { %p3671_p11 = scmp.ne.s32.totalorder %s2764_s21, %s3670_s28  ;;  %p3677_p0 = scmp.lt.s32.totalorder %s2764_s21, %s2764_s21 }
0x1036   : > { %p3678_p1 = scmp.lt.s32.totalorder %s3670_s28, %s3670_s28 }
0x1037   : > { %p3672_p12 = pnand %p3671_p11, %p4934_p3 }
0x1038   : > { %3471 = dma.vmem_to_hbm [thread:$0]  (%p4934_p3), %s2777_s11, 128, %s5029_s19, [#allocation10]  }
0x1039   : > { %p3673_p13 = pneg %p3672_p12  ;;  %p3679_p2 = por %p3678_p1, %p3677_p0 }
0x103b   : > { %p3680_p4 = pnand %p3679_p2, %p3673_p13 }
0x103d   : > { %3683 = shalt.err (!%p3680_p4)
}
0x103e   : > { %s5030_s29 = sld [smem:[#allocation21_spill]]  ;;  %s3694_s7 = scalar_lea.vmem %s2790_s0, 128 }
0x103f   : > { %p3695_p5 = scmp.ne.s32.totalorder %s2790_s0, %s3694_s7  ;;  %p3701_p7 = scmp.lt.s32.totalorder %s2790_s0, %s2790_s0 }
0x1040   : > { %p3702_p9 = scmp.lt.s32.totalorder %s3694_s7, %s3694_s7 }
0x1041   : > { %p3696_p6 = pnand %p3695_p5, %p4934_p3 }
0x1042   : > { %p3703_p10 = por %p3702_p9, %p3701_p7 }
0x1043   : > { %p3697_p8 = pneg %p3696_p6 }
0x1044   : > { %3469 = dma.vmem_to_hbm [thread:$0]  (%p4934_p3), %s2764_s21, 128, %s5030_s29, [#allocation7]  }
0x1045   : > { %p3704_p11 = pnand %p3703_p10, %p3697_p8 }
0x1047   : > { %3707 = shalt.err (!%p3704_p11)
}
0x1048   : > { %s5031_s24 = sld [smem:[#allocation23_spill]] }
0x104e   : > { %3473 = dma.vmem_to_hbm [thread:$0]  (%p4934_p3), %s2790_s0, 128, %s5031_s24, [#allocation10]  }
0x104f   : > { %3747 = dma.done.wait (%p4934_p3), [#allocation7], 128  }
0x1050   : > { %3749 = vsyncadd (%p4934_p3), [#allocation7], 4294967168 }
0x1051   : > { %3751 = dma.done.wait (%p4934_p3), [#allocation10], 256  }
0x1052   : > { %3753 = vsyncadd (%p4934_p3), [#allocation10], 4294967040 }
0x1053 PF: > { %s32_s26 = sadd.s32 1, %s3776_s26   ;;  %s5032_s24 = sld [smem:[#allocation15_spill]] }
0x1054   : > { %p29_p12 = scmp.ge.s32.totalorder %s32_s26, 5   ;;  %s5033_s25 = sld [smem:[#allocation16_spill]] }
0x1055   : > { %s5034_s21 = smov %s3760_s22  ;;  %s5035_s22 = smov %s3764_s23 }
0x1056   : > { %s5036_s23 = smov %s3925_s18  ;;  %31 = sbr.rel (!%p29_p12) target bundleno = 14 (0xe), region = 157 }
0x105b   :  { %2810 = vsyncpa [#allocation6], 1 }
0x105c   :  { %2812 = vsyncpa [#allocation6 + $0x1], 1 }
0x105d   :  { %2813 = vsyncpa [#allocation7], 1 }
0x105e   :  { %2815 = vsyncpa [#allocation7 + $0x1], 1 }
0x105f   :  { %2816 = vsyncpa [#allocation10], 1 }

</bundles_post_ra>
